<compile_context>
chip_gen: v6e
topology: v6e:2x2x1
jax: 0.10.0
libtpu: 0.0.40
codegen_flags: <defaults>
</compile_context>

<pallas_src>
import functools

import jax
import jax.numpy as jnp
import numpy as np
from jax.experimental import pallas as pl
from jax.experimental.pallas import tpu as pltpu


HEAD_SPECS = [
    ("lat_lon", 2),
    ("lat_bin", 100),
    ("lon_bin", 100),
    ("quadtree_10_1000", 11399),
    ("drive_side", 2),
    ("land_cover", 12),
    ("climate", 31),
    ("soil", 15),
    ("dist_sea", 1),
]
TOTAL_HEAD_OUT = sum(d for _, d in HEAD_SPECS)           # 11662
HEAD_OUT_PAD = ((TOTAL_HEAD_OUT + 127) // 128) * 128     # 11776 (lane dense)
HEAD_TILE_N = 512                                        # 11776 % 512 == 0


# -----------------------------------------------------------------------------
# Kernel 1: fused FPN level (lateral 1x1 + top-down add + 3x3 conv + mean pool)
# -----------------------------------------------------------------------------
def _fpn_level_kernel(*refs, has_td):
    if has_td:
        (feat_ref, td_ref, mask_ref, lat_w_ref, lat_b_ref, fpn_w_ref,
         fpn_b_ref, last_ref, pooled_ref) = refs
    else:
        (feat_ref, mask_ref, lat_w_ref, lat_b_ref, fpn_w_ref,
         fpn_b_ref, last_ref, pooled_ref) = refs
        td_ref = None
    cout = lat_w_ref.shape[1]

    # lateral 1x1 conv == per-pixel matmul on the MXU, bias add on the VPU.
    x = jnp.dot(feat_ref[0], lat_w_ref[...],
                preferred_element_type=jnp.float32) + lat_b_ref[...]
    if has_td:
        x = x + td_ref[0]                 # top-down (nearest-resized) add
    last_ref[0] = x                       # consumed by the next (finer) level

    # 3x3 'same' conv fused with global mean pooling:
    # masked + 1/HW-scaled per-tap spatial sums for all 9 taps in one matmul.
    s = jnp.dot(mask_ref[...], x, preferred_element_type=jnp.float32)  # (9, C)
    acc = jnp.zeros((1, cout), jnp.float32)
    for k in range(9):
        acc = acc + jnp.dot(s[k:k + 1, :], fpn_w_ref[k],
                            preferred_element_type=jnp.float32)
    pooled_ref[0] = acc + fpn_b_ref[...]


def _tap_masks(h, w):
    """(9, H*W) f32: entry [k, p] = 1/(H*W) if source pixel p contributes to
    tap k of a zero-padded 3x3 'same' conv, else 0."""
    hw = h * w
    r = np.arange(hw)
    row, col = r // w, r % w
    m = np.zeros((9, hw), np.float32)
    for k in range(9):
        dy, dx = k // 3 - 1, k % 3 - 1
        valid = ((row >= max(0, dy)) & (row < h + min(0, dy)) &
                 (col >= max(0, dx)) & (col < w + min(0, dx)))
        m[k] = valid.astype(np.float32) / hw
    return jnp.asarray(m)


def fpn_level(feature_flat, top_down_flat, lat_w, lat_b, fpn_w9, fpn_b, h, w):
    """One fused FPN level.

    feature_flat: (N, H*W, Cin); top_down_flat: (N, H*W, Cout) or None.
    Returns (last_feature_flat (N, H*W, Cout), pooled (N, Cout)).
    """
    n, hw, cin = feature_flat.shape
    cout = lat_w.shape[1]
    assert hw == h * w and hw % 8 == 0 and cout % 128 == 0
    has_td = top_down_flat is not None

    arrays = [feature_flat]
    in_specs = [pl.BlockSpec((1, hw, cin), lambda b: (b, 0, 0))]
    if has_td:
        arrays.append(top_down_flat)
        in_specs.append(pl.BlockSpec((1, hw, cout), lambda b: (b, 0, 0)))
    arrays += [_tap_masks(h, w), lat_w, lat_b.reshape(1, cout), fpn_w9,
               fpn_b.reshape(1, cout)]
    in_specs += [
        pl.BlockSpec((9, hw), lambda b: (0, 0)),
        pl.BlockSpec((cin, cout), lambda b: (0, 0)),
        pl.BlockSpec((1, cout), lambda b: (0, 0)),
        pl.BlockSpec((9, cout, cout), lambda b: (0, 0, 0)),
        pl.BlockSpec((1, cout), lambda b: (0, 0)),
    ]

    last, pooled = pl.pallas_call(
        functools.partial(_fpn_level_kernel, has_td=has_td),
        out_shape=(jax.ShapeDtypeStruct((n, hw, cout), jnp.float32),
                   jax.ShapeDtypeStruct((n, 1, cout), jnp.float32)),
        grid=(n,),
        in_specs=in_specs,
        out_specs=(pl.BlockSpec((1, hw, cout), lambda b: (b, 0, 0)),
                   pl.BlockSpec((1, 1, cout), lambda b: (b, 0, 0))),
        compiler_params=pltpu.CompilerParams(
            dimension_semantics=("parallel",)),   # shard batch across TCs (v7x)
    )(*arrays)
    return last, pooled[:, 0, :]


# -----------------------------------------------------------------------------
# Kernel 2: all 9 linear heads fused into one N-tiled matmul (bf16 weights)
# -----------------------------------------------------------------------------
def _head_matmul_kernel(a_ref, w_ref, b_ref, o_ref):
    o_ref[...] = (jnp.dot(a_ref[...], w_ref[...],
                          preferred_element_type=jnp.float32)
                  + b_ref[...]).astype(o_ref.dtype)


def fused_heads(feat, head_w, head_b, tile_n=HEAD_TILE_N):
    """feat: (M, K) f32.  head_w: (K, Npad) bf16.  head_b: (1, Npad) f32."""
    m, k = feat.shape
    k2, n_pad = head_w.shape
    assert k == k2 and n_pad % tile_n == 0 and tile_n % 128 == 0
    a = feat.astype(jnp.bfloat16)   # halve streamed bytes; f32 accumulation
    return pl.pallas_call(
        _head_matmul_kernel,
        out_shape=jax.ShapeDtypeStruct((m, n_pad), jnp.float32),
        grid=(n_pad // tile_n,),
        in_specs=[
            pl.BlockSpec((m, k), lambda j: (0, 0)),
            pl.BlockSpec((k, tile_n), lambda j: (0, j)),
            pl.BlockSpec((1, tile_n), lambda j: (0, j)),
        ],
        out_specs=pl.BlockSpec((m, tile_n), lambda j: (0, j)),
        compiler_params=pltpu.CompilerParams(
            dimension_semantics=("parallel",)),
    )(a, head_w, head_b)


# -----------------------------------------------------------------------------
# Plain-JAX glue: backbone stub, nearest-neighbor resize, parameter init
# -----------------------------------------------------------------------------
def nearest_resize(x, out_h, out_w):
    """F.interpolate(mode='nearest') semantics: src = floor(dst * in / out)."""
    n, h, w, c = x.shape
    hi = (jnp.arange(out_h) * h) // out_h
    wi = (jnp.arange(out_w) * w) // out_w
    return x[:, hi][:, :, wi]


def backbone_stub(x_nhwc, proj_params, strides):
    # TODO(synk): pretrained vit_base_patch16_224.dino backbone replaced by a
    # deterministic patch-average + projection stub (multi-scale NHWC features).
    n, h, w, c = x_nhwc.shape
    feats = []
    for (pw, pb), s in zip(proj_params, strides):
        xs = x_nhwc.reshape(n, h // s, s, w // s, s, c).mean(axis=(2, 4))
        feats.append(jnp.einsum("nhwc,cd->nhwd", xs, pw) + pb)
    return feats


def init_params(key, in_channels_list, out_channels):
    keys = iter(jax.random.split(key, 6 * len(in_channels_list) + 2))
    scale = 0.02
    params = {"lateral": [], "fpn": [], "proj": []}
    for cin in in_channels_list:
        params["lateral"].append((
            scale * jax.random.normal(next(keys), (cin, out_channels), jnp.float32),
            scale * jax.random.normal(next(keys), (out_channels,), jnp.float32)))
        params["fpn"].append((
            scale * jax.random.normal(next(keys), (9, out_channels, out_channels),
                                      jnp.float32),
            scale * jax.random.normal(next(keys), (out_channels,), jnp.float32)))
        params["proj"].append((
            scale * jax.random.normal(next(keys), (3, cin), jnp.float32),
            scale * jax.random.normal(next(keys), (cin,), jnp.float32)))

    dim = out_channels * len(in_channels_list)
    hw_ = scale * jax.random.normal(next(keys), (dim, TOTAL_HEAD_OUT), jnp.float32)
    hb_ = scale * jax.random.normal(next(keys), (TOTAL_HEAD_OUT,), jnp.float32)
    # pad the fused head weights to a lane-dense 128 multiple; store bf16 to
    # halve HBM traffic on the (memory-bound) head matmul.
    params["head_w"] = jnp.pad(
        hw_, ((0, 0), (0, HEAD_OUT_PAD - TOTAL_HEAD_OUT))).astype(jnp.bfloat16)
    params["head_b"] = jnp.pad(
        hb_, (0, HEAD_OUT_PAD - TOTAL_HEAD_OUT)).reshape(1, HEAD_OUT_PAD)
    return params


# -----------------------------------------------------------------------------
# Forward pass
# -----------------------------------------------------------------------------
def fpn_pooled_features(features, lateral_params, fpn_params):
    """FeaturePyramidNetwork + per-level global mean pool.

    One fused Pallas call per level; the nearest-neighbor top-down resize is
    thin gather glue between levels.  Returns pooled (N, Cout) per level in
    the original (finest-first) order."""
    n = features[0].shape[0]
    cout = lateral_params[0][0].shape[1]
    pooled = [None] * len(features)
    last_flat, last_shape = None, None

    for lvl in range(len(features) - 1, -1, -1):
        _, h, w, _ = features[lvl].shape
        feat_flat = features[lvl].reshape(n, h * w, -1)
        if last_flat is None:
            td_flat = None
        else:
            lh, lw_ = last_shape
            td = nearest_resize(last_flat.reshape(n, lh, lw_, cout), h, w)
            td_flat = td.reshape(n, h * w, cout)
        lat_w, lat_b = lateral_params[lvl]
        fpn_w, fpn_b = fpn_params[lvl]
        last_flat, pooled[lvl] = fpn_level(
            feat_flat, td_flat, lat_w, lat_b, fpn_w, fpn_b, h, w)
        last_shape = (h, w)
    return pooled


def geoformer_forward(x_nchw, params, strides):
    x = jnp.transpose(x_nchw, (0, 2, 3, 1)).astype(jnp.float32)   # NCHW -> NHWC
    features = backbone_stub(x, params["proj"], strides)
    pooled = fpn_pooled_features(features, params["lateral"], params["fpn"])
    feat = jnp.concatenate(pooled, axis=1)                         # (N, dim)

    head_out = fused_heads(feat, params["head_w"], params["head_b"])
    head_out = head_out[:, :TOTAL_HEAD_OUT]
    slices, off = {}, 0
    for name, d in HEAD_SPECS:
        slices[name] = head_out[:, off:off + d]
        off += d
    return {
        "latitude": slices["lat_lon"][:, 0],
        "longitude": slices["lat_lon"][:, 1],
        "lat_bin": slices["lat_bin"],
        "lon_bin": slices["lon_bin"],
        "quadtree_10_1000": slices["quadtree_10_1000"],
        "drive_side": slices["drive_side"],
        "land_cover": slices["land_cover"],
        "climate": slices["climate"],
        "soil": slices["soil"],
        "dist_sea": jnp.squeeze(slices["dist_sea"], axis=1),
    }


def fpn_pool_reference(features, lateral_params, fpn_params):
    """Plain-JAX (XLA, highest precision) reference for FPN + mean-pool."""
    hp = jax.lax.Precision.HIGHEST
    pooled = [None] * len(features)
    last = None
    for lvl in range(len(features) - 1, -1, -1):
        feat = features[lvl]
        h, w = feat.shape[1], feat.shape[2]
        lat_w, lat_b = lateral_params[lvl]
        fpn_w, fpn_b = fpn_params[lvl]
        lateral = jnp.einsum("nhwc,cd->nhwd", feat, lat_w, precision=hp) + lat_b
        if last is not None:
            lateral = lateral + nearest_resize(last, h, w)
        last = lateral
        pad = jnp.pad(last, ((0, 0), (1, 1), (1, 1), (0, 0)))
        out = jnp.zeros(last.shape[:3] + (fpn_w.shape[-1],), jnp.float32) + fpn_b
        for k in range(9):
            dy, dx = k // 3, k % 3
            out = out + jnp.einsum("nhwc,cd->nhwd",
                                   pad[:, dy:dy + h, dx:dx + w, :], fpn_w[k],
                                   precision=hp)
        pooled[lvl] = out.mean(axis=(1, 2))
    return jnp.concatenate(pooled, axis=1)


# -----------------------------------------------------------------------------
# Main
# -----------------------------------------------------------------------------
if __name__ == "__main__":
    key = jax.random.PRNGKey(0)
    kx, kp = jax.random.split(key)

    # Small, module-consistent stand-in shapes: batch=2, 3x32x32 image,
    # 3 backbone levels of 128 channels (stand-in for ViT's 768),
    # FPN out_channels=128 (stand-in for 256) -> every channel dim lane-dense.
    batch, img = 2, 32
    in_channels_list = [128, 128, 128]
    strides = [2, 4, 8]                      # feature maps 16x16, 8x8, 4x4
    out_channels = 128

    x = jax.random.normal(kx, (batch, 3, img, img), jnp.float32)
    params = init_params(kp, in_channels_list, out_channels)

    fwd = jax.jit(functools.partial(geoformer_forward, strides=strides))
    outputs = fwd(x, params)
    jax.block_until_ready(outputs)

    # numeric sanity: fused FPN+pool kernels vs plain-JAX reference
    x_nhwc = jnp.transpose(x, (0, 2, 3, 1))
    feats = backbone_stub(x_nhwc, params["proj"], strides)
    pooled_k = jnp.concatenate(
        fpn_pooled_features(feats, params["lateral"], params["fpn"]), axis=1)
    pooled_r = fpn_pool_reference(feats, params["lateral"], params["fpn"])
    err = float(jnp.max(jnp.abs(pooled_k - pooled_r)) /
                (jnp.max(jnp.abs(pooled_r)) + 1e-12))
    assert err < 3e-2, f"FPN kernel mismatch vs reference: rel-max-err={err}"

    # shape sanity checks
    assert outputs["latitude"].shape == (batch,)
    assert outputs["longitude"].shape == (batch,)
    assert outputs["lat_bin"].shape == (batch, 100)
    assert outputs["lon_bin"].shape == (batch, 100)
    assert outputs["quadtree_10_1000"].shape == (batch, 11399)
    assert outputs["drive_side"].shape == (batch, 2)
    assert outputs["land_cover"].shape == (batch, 12)
    assert outputs["climate"].shape == (batch, 31)
    assert outputs["soil"].shape == (batch, 15)
    assert outputs["dist_sea"].shape == (batch,)
    print("KERNEL_OK")
</pallas_src>

<mosaic_0001>
module attributes {stable_mosaic.version = 11 : i64} {
  func.func @_fpn_level_kernel(%arg0: i32, %arg1: memref<1x16x128xf32, #tpu.memory_space<vmem>>, %arg2: memref<9x16xf32, #tpu.memory_space<vmem>>, %arg3: memref<128x128xf32, #tpu.memory_space<vmem>>, %arg4: memref<1x128xf32, #tpu.memory_space<vmem>>, %arg5: memref<9x128x128xf32, #tpu.memory_space<vmem>>, %arg6: memref<1x128xf32, #tpu.memory_space<vmem>>, %arg7: memref<1x16x128xf32, #tpu.memory_space<vmem>>, %arg8: memref<1x1x128xf32, #tpu.memory_space<vmem>>) attributes {dimension_semantics = [#tpu.dimension_semantics<parallel>], iteration_bounds = array<i64: 2>, scalar_prefetch = 0 : i64, scratch_operands = 0 : i64, tpu.core_type = #tpu.core_type<tc>, window_params = [{transform_indices = @transform_0, window_bounds = array<i64: 1, 16, 128>}, {pipeline_mode = #tpu.pipeline_mode<synchronous>, transform_indices = @transform_1, window_bounds = array<i64: 9, 16>}, {pipeline_mode = #tpu.pipeline_mode<synchronous>, transform_indices = @transform_2, window_bounds = array<i64: 128, 128>}, {pipeline_mode = #tpu.pipeline_mode<synchronous>, transform_indices = @transform_3, window_bounds = array<i64: 1, 128>}, {pipeline_mode = #tpu.pipeline_mode<synchronous>, transform_indices = @transform_4, window_bounds = array<i64: 9, 128, 128>}, {pipeline_mode = #tpu.pipeline_mode<synchronous>, transform_indices = @transform_5, window_bounds = array<i64: 1, 128>}, {transform_indices = @transform_6, window_bounds = array<i64: 1, 16, 128>}, {transform_indices = @transform_7, window_bounds = array<i64: 1, 1, 128>}]} {
    %c0 = arith.constant 0 : index
    %c0_0 = arith.constant 0 : index
    %c0_1 = arith.constant 0 : index
    %0 = vector.load %arg1[%c0, %c0_0, %c0_1] : memref<1x16x128xf32, #tpu.memory_space<vmem>>, vector<1x16x128xf32>
    %1 = vector.shape_cast %0 : vector<1x16x128xf32> to vector<16x128xf32>
    %c0_2 = arith.constant 0 : index
    %c0_3 = arith.constant 0 : index
    %2 = vector.load %arg3[%c0_2, %c0_3] : memref<128x128xf32, #tpu.memory_space<vmem>>, vector<128x128xf32>
    %cst = arith.constant dense<0.000000e+00> : vector<16x128xf32>
    %3 = tpu.matmul %1, %2, %cst {dimension_numbers = #tpu.dot_dimension_numbers<[1], [0], [0], [1], [0, 0, 1, 1], [], []>} : vector<16x128xf32>, vector<128x128xf32>, vector<16x128xf32> -> vector<16x128xf32>
    %c0_4 = arith.constant 0 : index
    %c0_5 = arith.constant 0 : index
    %4 = vector.load %arg4[%c0_4, %c0_5] : memref<1x128xf32, #tpu.memory_space<vmem>>, vector<1x128xf32>
    %5 = vector.broadcast %4 : vector<1x128xf32> to vector<16x128xf32>
    %6 = arith.addf %3, %5 : vector<16x128xf32>
    %c0_6 = arith.constant 0 : index
    %c0_7 = arith.constant 0 : index
    %c0_8 = arith.constant 0 : index
    %7 = vector.load %arg7[%c0_6, %c0_7, %c0_8] : memref<1x16x128xf32, #tpu.memory_space<vmem>>, vector<1x16x128xf32>
    %8 = vector.shape_cast %7 : vector<1x16x128xf32> to vector<16x128xf32>
    %9 = vector.shape_cast %6 : vector<16x128xf32> to vector<1x16x128xf32>
    tpu.vector_store %arg7[%c0_6, %c0_7, %c0_8], %9 {strides = array<i32>} : memref<1x16x128xf32, #tpu.memory_space<vmem>>, vector<1x16x128xf32>,
    %c0_9 = arith.constant 0 : index
    %c0_10 = arith.constant 0 : index
    %10 = vector.load %arg2[%c0_9, %c0_10] : memref<9x16xf32, #tpu.memory_space<vmem>>, vector<9x16xf32>
    %cst_11 = arith.constant dense<0.000000e+00> : vector<9x128xf32>
    %11 = tpu.matmul %10, %6, %cst_11 {dimension_numbers = #tpu.dot_dimension_numbers<[1], [0], [0], [1], [0, 0, 1, 1], [], []>} : vector<9x16xf32>, vector<16x128xf32>, vector<9x128xf32> -> vector<9x128xf32>
    %cst_12 = arith.constant 0.000000e+00 : f32
    %12 = vector.broadcast %cst_12 : f32 to vector<1x128xf32>
    %13 = vector.extract_strided_slice %11 {offsets = [0, 0], sizes = [1, 128], strides = [1, 1]} : vector<9x128xf32> to vector<1x128xf32>
    %c0_13 = arith.constant 0 : index
    %c0_14 = arith.constant 0 : index
    %c0_15 = arith.constant 0 : index
    %14 = vector.load %arg5[%c0_13, %c0_14, %c0_15] : memref<9x128x128xf32, #tpu.memory_space<vmem>>, vector<1x128x128xf32>
    %15 = vector.shape_cast %14 : vector<1x128x128xf32> to vector<128x128xf32>
    %cst_16 = arith.constant dense<0.000000e+00> : vector<1x128xf32>
    %16 = tpu.matmul %13, %15, %cst_16 {dimension_numbers = #tpu.dot_dimension_numbers<[1], [0], [0], [1], [0, 0, 1, 1], [], []>} : vector<1x128xf32>, vector<128x128xf32>, vector<1x128xf32> -> vector<1x128xf32>
    %17 = arith.addf %12, %16 : vector<1x128xf32>
    %18 = vector.extract_strided_slice %11 {offsets = [1, 0], sizes = [1, 128], strides = [1, 1]} : vector<9x128xf32> to vector<1x128xf32>
    %c1 = arith.constant 1 : index
    %c0_17 = arith.constant 0 : index
    %c0_18 = arith.constant 0 : index
    %19 = vector.load %arg5[%c1, %c0_17, %c0_18] : memref<9x128x128xf32, #tpu.memory_space<vmem>>, vector<1x128x128xf32>
    %20 = vector.shape_cast %19 : vector<1x128x128xf32> to vector<128x128xf32>
    %cst_19 = arith.constant dense<0.000000e+00> : vector<1x128xf32>
    %21 = tpu.matmul %18, %20, %cst_19 {dimension_numbers = #tpu.dot_dimension_numbers<[1], [0], [0], [1], [0, 0, 1, 1], [], []>} : vector<1x128xf32>, vector<128x128xf32>, vector<1x128xf32> -> vector<1x128xf32>
    %22 = arith.addf %17, %21 : vector<1x128xf32>
    %23 = vector.extract_strided_slice %11 {offsets = [2, 0], sizes = [1, 128], strides = [1, 1]} : vector<9x128xf32> to vector<1x128xf32>
    %c2 = arith.constant 2 : index
    %c0_20 = arith.constant 0 : index
    %c0_21 = arith.constant 0 : index
    %24 = vector.load %arg5[%c2, %c0_20, %c0_21] : memref<9x128x128xf32, #tpu.memory_space<vmem>>, vector<1x128x128xf32>
    %25 = vector.shape_cast %24 : vector<1x128x128xf32> to vector<128x128xf32>
    %cst_22 = arith.constant dense<0.000000e+00> : vector<1x128xf32>
    %26 = tpu.matmul %23, %25, %cst_22 {dimension_numbers = #tpu.dot_dimension_numbers<[1], [0], [0], [1], [0, 0, 1, 1], [], []>} : vector<1x128xf32>, vector<128x128xf32>, vector<1x128xf32> -> vector<1x128xf32>
    %27 = arith.addf %22, %26 : vector<1x128xf32>
    %28 = vector.extract_strided_slice %11 {offsets = [3, 0], sizes = [1, 128], strides = [1, 1]} : vector<9x128xf32> to vector<1x128xf32>
    %c3 = arith.constant 3 : index
    %c0_23 = arith.constant 0 : index
    %c0_24 = arith.constant 0 : index
    %29 = vector.load %arg5[%c3, %c0_23, %c0_24] : memref<9x128x128xf32, #tpu.memory_space<vmem>>, vector<1x128x128xf32>
    %30 = vector.shape_cast %29 : vector<1x128x128xf32> to vector<128x128xf32>
    %cst_25 = arith.constant dense<0.000000e+00> : vector<1x128xf32>
    %31 = tpu.matmul %28, %30, %cst_25 {dimension_numbers = #tpu.dot_dimension_numbers<[1], [0], [0], [1], [0, 0, 1, 1], [], []>} : vector<1x128xf32>, vector<128x128xf32>, vector<1x128xf32> -> vector<1x128xf32>
    %32 = arith.addf %27, %31 : vector<1x128xf32>
    %33 = vector.extract_strided_slice %11 {offsets = [4, 0], sizes = [1, 128], strides = [1, 1]} : vector<9x128xf32> to vector<1x128xf32>
    %c4 = arith.constant 4 : index
    %c0_26 = arith.constant 0 : index
    %c0_27 = arith.constant 0 : index
    %34 = vector.load %arg5[%c4, %c0_26, %c0_27] : memref<9x128x128xf32, #tpu.memory_space<vmem>>, vector<1x128x128xf32>
    %35 = vector.shape_cast %34 : vector<1x128x128xf32> to vector<128x128xf32>
    %cst_28 = arith.constant dense<0.000000e+00> : vector<1x128xf32>
    %36 = tpu.matmul %33, %35, %cst_28 {dimension_numbers = #tpu.dot_dimension_numbers<[1], [0], [0], [1], [0, 0, 1, 1], [], []>} : vector<1x128xf32>, vector<128x128xf32>, vector<1x128xf32> -> vector<1x128xf32>
    %37 = arith.addf %32, %36 : vector<1x128xf32>
    %38 = vector.extract_strided_slice %11 {offsets = [5, 0], sizes = [1, 128], strides = [1, 1]} : vector<9x128xf32> to vector<1x128xf32>
    %c5 = arith.constant 5 : index
    %c0_29 = arith.constant 0 : index
    %c0_30 = arith.constant 0 : index
    %39 = vector.load %arg5[%c5, %c0_29, %c0_30] : memref<9x128x128xf32, #tpu.memory_space<vmem>>, vector<1x128x128xf32>
    %40 = vector.shape_cast %39 : vector<1x128x128xf32> to vector<128x128xf32>
    %cst_31 = arith.constant dense<0.000000e+00> : vector<1x128xf32>
    %41 = tpu.matmul %38, %40, %cst_31 {dimension_numbers = #tpu.dot_dimension_numbers<[1], [0], [0], [1], [0, 0, 1, 1], [], []>} : vector<1x128xf32>, vector<128x128xf32>, vector<1x128xf32> -> vector<1x128xf32>
    %42 = arith.addf %37, %41 : vector<1x128xf32>
    %43 = vector.extract_strided_slice %11 {offsets = [6, 0], sizes = [1, 128], strides = [1, 1]} : vector<9x128xf32> to vector<1x128xf32>
    %c6 = arith.constant 6 : index
    %c0_32 = arith.constant 0 : index
    %c0_33 = arith.constant 0 : index
    %44 = vector.load %arg5[%c6, %c0_32, %c0_33] : memref<9x128x128xf32, #tpu.memory_space<vmem>>, vector<1x128x128xf32>
    %45 = vector.shape_cast %44 : vector<1x128x128xf32> to vector<128x128xf32>
    %cst_34 = arith.constant dense<0.000000e+00> : vector<1x128xf32>
    %46 = tpu.matmul %43, %45, %cst_34 {dimension_numbers = #tpu.dot_dimension_numbers<[1], [0], [0], [1], [0, 0, 1, 1], [], []>} : vector<1x128xf32>, vector<128x128xf32>, vector<1x128xf32> -> vector<1x128xf32>
    %47 = arith.addf %42, %46 : vector<1x128xf32>
    %48 = vector.extract_strided_slice %11 {offsets = [7, 0], sizes = [1, 128], strides = [1, 1]} : vector<9x128xf32> to vector<1x128xf32>
    %c7 = arith.constant 7 : index
    %c0_35 = arith.constant 0 : index
    %c0_36 = arith.constant 0 : index
    %49 = vector.load %arg5[%c7, %c0_35, %c0_36] : memref<9x128x128xf32, #tpu.memory_space<vmem>>, vector<1x128x128xf32>
    %50 = vector.shape_cast %49 : vector<1x128x128xf32> to vector<128x128xf32>
    %cst_37 = arith.constant dense<0.000000e+00> : vector<1x128xf32>
    %51 = tpu.matmul %48, %50, %cst_37 {dimension_numbers = #tpu.dot_dimension_numbers<[1], [0], [0], [1], [0, 0, 1, 1], [], []>} : vector<1x128xf32>, vector<128x128xf32>, vector<1x128xf32> -> vector<1x128xf32>
    %52 = arith.addf %47, %51 : vector<1x128xf32>
    %53 = vector.extract_strided_slice %11 {offsets = [8, 0], sizes = [1, 128], strides = [1, 1]} : vector<9x128xf32> to vector<1x128xf32>
    %c8 = arith.constant 8 : index
    %c0_38 = arith.constant 0 : index
    %c0_39 = arith.constant 0 : index
    %54 = vector.load %arg5[%c8, %c0_38, %c0_39] : memref<9x128x128xf32, #tpu.memory_space<vmem>>, vector<1x128x128xf32>
    %55 = vector.shape_cast %54 : vector<1x128x128xf32> to vector<128x128xf32>
    %cst_40 = arith.constant dense<0.000000e+00> : vector<1x128xf32>
    %56 = tpu.matmul %53, %55, %cst_40 {dimension_numbers = #tpu.dot_dimension_numbers<[1], [0], [0], [1], [0, 0, 1, 1], [], []>} : vector<1x128xf32>, vector<128x128xf32>, vector<1x128xf32> -> vector<1x128xf32>
    %57 = arith.addf %52, %56 : vector<1x128xf32>
    %c0_41 = arith.constant 0 : index
    %c0_42 = arith.constant 0 : index
    %58 = vector.load %arg6[%c0_41, %c0_42] : memref<1x128xf32, #tpu.memory_space<vmem>>, vector<1x128xf32>
    %59 = arith.addf %57, %58 : vector<1x128xf32>
    %c0_43 = arith.constant 0 : index
    %c0_44 = arith.constant 0 : index
    %c0_45 = arith.constant 0 : index
    %60 = vector.load %arg8[%c0_43, %c0_44, %c0_45] : memref<1x1x128xf32, #tpu.memory_space<vmem>>, vector<1x1x128xf32>
    %61 = vector.shape_cast %60 : vector<1x1x128xf32> to vector<1x128xf32>
    %62 = vector.shape_cast %59 : vector<1x128xf32> to vector<1x1x128xf32>
    tpu.vector_store %arg8[%c0_43, %c0_44, %c0_45], %62 {strides = array<i32>} : memref<1x1x128xf32, #tpu.memory_space<vmem>>, vector<1x1x128xf32>,
    return
  }
  func.func @transform_0(%arg0: i32) -> (i32, i32, i32) {
    %c0_i32 = arith.constant 0 : i32
    %c0_i32_0 = arith.constant 0 : i32
    %c0_i32_1 = arith.constant 0 : i32
    return %arg0, %c0_i32, %c0_i32_0 : i32, i32, i32
  }
  func.func @transform_1(%arg0: i32) -> (i32, i32) {
    %c0_i32 = arith.constant 0 : i32
    %c0_i32_0 = arith.constant 0 : i32
    %c0_i32_1 = arith.constant 0 : i32
    return %c0_i32, %c0_i32_0 : i32, i32
  }
  func.func @transform_2(%arg0: i32) -> (i32, i32) {
    %c0_i32 = arith.constant 0 : i32
    %c0_i32_0 = arith.constant 0 : i32
    %c0_i32_1 = arith.constant 0 : i32
    return %c0_i32, %c0_i32_0 : i32, i32
  }
  func.func @transform_3(%arg0: i32) -> (i32, i32) {
    %c0_i32 = arith.constant 0 : i32
    %c0_i32_0 = arith.constant 0 : i32
    %c0_i32_1 = arith.constant 0 : i32
    return %c0_i32, %c0_i32_0 : i32, i32
  }
  func.func @transform_4(%arg0: i32) -> (i32, i32, i32) {
    %c0_i32 = arith.constant 0 : i32
    %c0_i32_0 = arith.constant 0 : i32
    %c0_i32_1 = arith.constant 0 : i32
    %c0_i32_2 = arith.constant 0 : i32
    return %c0_i32, %c0_i32_0, %c0_i32_1 : i32, i32, i32
  }
  func.func @transform_5(%arg0: i32) -> (i32, i32) {
    %c0_i32 = arith.constant 0 : i32
    %c0_i32_0 = arith.constant 0 : i32
    %c0_i32_1 = arith.constant 0 : i32
    return %c0_i32, %c0_i32_0 : i32, i32
  }
  func.func @transform_6(%arg0: i32) -> (i32, i32, i32) {
    %c0_i32 = arith.constant 0 : i32
    %c0_i32_0 = arith.constant 0 : i32
    %c0_i32_1 = arith.constant 0 : i32
    return %arg0, %c0_i32, %c0_i32_0 : i32, i32, i32
  }
  func.func @transform_7(%arg0: i32) -> (i32, i32, i32) {
    %c0_i32 = arith.constant 0 : i32
    %c0_i32_0 = arith.constant 0 : i32
    %c0_i32_1 = arith.constant 0 : i32
    return %arg0, %c0_i32, %c0_i32_0 : i32, i32, i32
  }
}

module attributes {stable_mosaic.version = 11 : i64} {
  func.func @_fpn_level_kernel(%arg0: i32, %arg1: memref<1x64x128xf32, #tpu.memory_space<vmem>>, %arg2: memref<1x64x128xf32, #tpu.memory_space<vmem>>, %arg3: memref<9x64xf32, #tpu.memory_space<vmem>>, %arg4: memref<128x128xf32, #tpu.memory_space<vmem>>, %arg5: memref<1x128xf32, #tpu.memory_space<vmem>>, %arg6: memref<9x128x128xf32, #tpu.memory_space<vmem>>, %arg7: memref<1x128xf32, #tpu.memory_space<vmem>>, %arg8: memref<1x64x128xf32, #tpu.memory_space<vmem>>, %arg9: memref<1x1x128xf32, #tpu.memory_space<vmem>>) attributes {dimension_semantics = [#tpu.dimension_semantics<parallel>], iteration_bounds = array<i64: 2>, scalar_prefetch = 0 : i64, scratch_operands = 0 : i64, tpu.core_type = #tpu.core_type<tc>, window_params = [{transform_indices = @transform_0, window_bounds = array<i64: 1, 64, 128>}, {transform_indices = @transform_1, window_bounds = array<i64: 1, 64, 128>}, {pipeline_mode = #tpu.pipeline_mode<synchronous>, transform_indices = @transform_2, window_bounds = array<i64: 9, 64>}, {pipeline_mode = #tpu.pipeline_mode<synchronous>, transform_indices = @transform_3, window_bounds = array<i64: 128, 128>}, {pipeline_mode = #tpu.pipeline_mode<synchronous>, transform_indices = @transform_4, window_bounds = array<i64: 1, 128>}, {pipeline_mode = #tpu.pipeline_mode<synchronous>, transform_indices = @transform_5, window_bounds = array<i64: 9, 128, 128>}, {pipeline_mode = #tpu.pipeline_mode<synchronous>, transform_indices = @transform_6, window_bounds = array<i64: 1, 128>}, {transform_indices = @transform_7, window_bounds = array<i64: 1, 64, 128>}, {transform_indices = @transform_8, window_bounds = array<i64: 1, 1, 128>}]} {
    %c0 = arith.constant 0 : index
    %c0_0 = arith.constant 0 : index
    %c0_1 = arith.constant 0 : index
    %0 = vector.load %arg1[%c0, %c0_0, %c0_1] : memref<1x64x128xf32, #tpu.memory_space<vmem>>, vector<1x64x128xf32>
    %1 = vector.shape_cast %0 : vector<1x64x128xf32> to vector<64x128xf32>
    %c0_2 = arith.constant 0 : index
    %c0_3 = arith.constant 0 : index
    %2 = vector.load %arg4[%c0_2, %c0_3] : memref<128x128xf32, #tpu.memory_space<vmem>>, vector<128x128xf32>
    %cst = arith.constant dense<0.000000e+00> : vector<64x128xf32>
    %3 = tpu.matmul %1, %2, %cst {dimension_numbers = #tpu.dot_dimension_numbers<[1], [0], [0], [1], [0, 0, 1, 1], [], []>} : vector<64x128xf32>, vector<128x128xf32>, vector<64x128xf32> -> vector<64x128xf32>
    %c0_4 = arith.constant 0 : index
    %c0_5 = arith.constant 0 : index
    %4 = vector.load %arg5[%c0_4, %c0_5] : memref<1x128xf32, #tpu.memory_space<vmem>>, vector<1x128xf32>
    %5 = vector.broadcast %4 : vector<1x128xf32> to vector<64x128xf32>
    %6 = arith.addf %3, %5 : vector<64x128xf32>
    %c0_6 = arith.constant 0 : index
    %c0_7 = arith.constant 0 : index
    %c0_8 = arith.constant 0 : index
    %7 = vector.load %arg2[%c0_6, %c0_7, %c0_8] : memref<1x64x128xf32, #tpu.memory_space<vmem>>, vector<1x64x128xf32>
    %8 = vector.shape_cast %7 : vector<1x64x128xf32> to vector<64x128xf32>
    %9 = arith.addf %6, %8 : vector<64x128xf32>
    %c0_9 = arith.constant 0 : index
    %c0_10 = arith.constant 0 : index
    %c0_11 = arith.constant 0 : index
    %10 = vector.load %arg8[%c0_9, %c0_10, %c0_11] : memref<1x64x128xf32, #tpu.memory_space<vmem>>, vector<1x64x128xf32>
    %11 = vector.shape_cast %10 : vector<1x64x128xf32> to vector<64x128xf32>
    %12 = vector.shape_cast %9 : vector<64x128xf32> to vector<1x64x128xf32>
    tpu.vector_store %arg8[%c0_9, %c0_10, %c0_11], %12 {strides = array<i32>} : memref<1x64x128xf32, #tpu.memory_space<vmem>>, vector<1x64x128xf32>,
    %c0_12 = arith.constant 0 : index
    %c0_13 = arith.constant 0 : index
    %13 = vector.load %arg3[%c0_12, %c0_13] : memref<9x64xf32, #tpu.memory_space<vmem>>, vector<9x64xf32>
    %cst_14 = arith.constant dense<0.000000e+00> : vector<9x128xf32>
    %14 = tpu.matmul %13, %9, %cst_14 {dimension_numbers = #tpu.dot_dimension_numbers<[1], [0], [0], [1], [0, 0, 1, 1], [], []>} : vector<9x64xf32>, vector<64x128xf32>, vector<9x128xf32> -> vector<9x128xf32>
    %cst_15 = arith.constant 0.000000e+00 : f32
    %15 = vector.broadcast %cst_15 : f32 to vector<1x128xf32>
    %16 = vector.extract_strided_slice %14 {offsets = [0, 0], sizes = [1, 128], strides = [1, 1]} : vector<9x128xf32> to vector<1x128xf32>
    %c0_16 = arith.constant 0 : index
    %c0_17 = arith.constant 0 : index
    %c0_18 = arith.constant 0 : index
    %17 = vector.load %arg6[%c0_16, %c0_17, %c0_18] : memref<9x128x128xf32, #tpu.memory_space<vmem>>, vector<1x128x128xf32>
    %18 = vector.shape_cast %17 : vector<1x128x128xf32> to vector<128x128xf32>
    %cst_19 = arith.constant dense<0.000000e+00> : vector<1x128xf32>
    %19 = tpu.matmul %16, %18, %cst_19 {dimension_numbers = #tpu.dot_dimension_numbers<[1], [0], [0], [1], [0, 0, 1, 1], [], []>} : vector<1x128xf32>, vector<128x128xf32>, vector<1x128xf32> -> vector<1x128xf32>
    %20 = arith.addf %15, %19 : vector<1x128xf32>
    %21 = vector.extract_strided_slice %14 {offsets = [1, 0], sizes = [1, 128], strides = [1, 1]} : vector<9x128xf32> to vector<1x128xf32>
    %c1 = arith.constant 1 : index
    %c0_20 = arith.constant 0 : index
    %c0_21 = arith.constant 0 : index
    %22 = vector.load %arg6[%c1, %c0_20, %c0_21] : memref<9x128x128xf32, #tpu.memory_space<vmem>>, vector<1x128x128xf32>
    %23 = vector.shape_cast %22 : vector<1x128x128xf32> to vector<128x128xf32>
    %cst_22 = arith.constant dense<0.000000e+00> : vector<1x128xf32>
    %24 = tpu.matmul %21, %23, %cst_22 {dimension_numbers = #tpu.dot_dimension_numbers<[1], [0], [0], [1], [0, 0, 1, 1], [], []>} : vector<1x128xf32>, vector<128x128xf32>, vector<1x128xf32> -> vector<1x128xf32>
    %25 = arith.addf %20, %24 : vector<1x128xf32>
    %26 = vector.extract_strided_slice %14 {offsets = [2, 0], sizes = [1, 128], strides = [1, 1]} : vector<9x128xf32> to vector<1x128xf32>
    %c2 = arith.constant 2 : index
    %c0_23 = arith.constant 0 : index
    %c0_24 = arith.constant 0 : index
    %27 = vector.load %arg6[%c2, %c0_23, %c0_24] : memref<9x128x128xf32, #tpu.memory_space<vmem>>, vector<1x128x128xf32>
    %28 = vector.shape_cast %27 : vector<1x128x128xf32> to vector<128x128xf32>
    %cst_25 = arith.constant dense<0.000000e+00> : vector<1x128xf32>
    %29 = tpu.matmul %26, %28, %cst_25 {dimension_numbers = #tpu.dot_dimension_numbers<[1], [0], [0], [1], [0, 0, 1, 1], [], []>} : vector<1x128xf32>, vector<128x128xf32>, vector<1x128xf32> -> vector<1x128xf32>
    %30 = arith.addf %25, %29 : vector<1x128xf32>
    %31 = vector.extract_strided_slice %14 {offsets = [3, 0], sizes = [1, 128], strides = [1, 1]} : vector<9x128xf32> to vector<1x128xf32>
    %c3 = arith.constant 3 : index
    %c0_26 = arith.constant 0 : index
    %c0_27 = arith.constant 0 : index
    %32 = vector.load %arg6[%c3, %c0_26, %c0_27] : memref<9x128x128xf32, #tpu.memory_space<vmem>>, vector<1x128x128xf32>
    %33 = vector.shape_cast %32 : vector<1x128x128xf32> to vector<128x128xf32>
    %cst_28 = arith.constant dense<0.000000e+00> : vector<1x128xf32>
    %34 = tpu.matmul %31, %33, %cst_28 {dimension_numbers = #tpu.dot_dimension_numbers<[1], [0], [0], [1], [0, 0, 1, 1], [], []>} : vector<1x128xf32>, vector<128x128xf32>, vector<1x128xf32> -> vector<1x128xf32>
    %35 = arith.addf %30, %34 : vector<1x128xf32>
    %36 = vector.extract_strided_slice %14 {offsets = [4, 0], sizes = [1, 128], strides = [1, 1]} : vector<9x128xf32> to vector<1x128xf32>
    %c4 = arith.constant 4 : index
    %c0_29 = arith.constant 0 : index
    %c0_30 = arith.constant 0 : index
    %37 = vector.load %arg6[%c4, %c0_29, %c0_30] : memref<9x128x128xf32, #tpu.memory_space<vmem>>, vector<1x128x128xf32>
    %38 = vector.shape_cast %37 : vector<1x128x128xf32> to vector<128x128xf32>
    %cst_31 = arith.constant dense<0.000000e+00> : vector<1x128xf32>
    %39 = tpu.matmul %36, %38, %cst_31 {dimension_numbers = #tpu.dot_dimension_numbers<[1], [0], [0], [1], [0, 0, 1, 1], [], []>} : vector<1x128xf32>, vector<128x128xf32>, vector<1x128xf32> -> vector<1x128xf32>
    %40 = arith.addf %35, %39 : vector<1x128xf32>
    %41 = vector.extract_strided_slice %14 {offsets = [5, 0], sizes = [1, 128], strides = [1, 1]} : vector<9x128xf32> to vector<1x128xf32>
    %c5 = arith.constant 5 : index
    %c0_32 = arith.constant 0 : index
    %c0_33 = arith.constant 0 : index
    %42 = vector.load %arg6[%c5, %c0_32, %c0_33] : memref<9x128x128xf32, #tpu.memory_space<vmem>>, vector<1x128x128xf32>
    %43 = vector.shape_cast %42 : vector<1x128x128xf32> to vector<128x128xf32>
    %cst_34 = arith.constant dense<0.000000e+00> : vector<1x128xf32>
    %44 = tpu.matmul %41, %43, %cst_34 {dimension_numbers = #tpu.dot_dimension_numbers<[1], [0], [0], [1], [0, 0, 1, 1], [], []>} : vector<1x128xf32>, vector<128x128xf32>, vector<1x128xf32> -> vector<1x128xf32>
    %45 = arith.addf %40, %44 : vector<1x128xf32>
    %46 = vector.extract_strided_slice %14 {offsets = [6, 0], sizes = [1, 128], strides = [1, 1]} : vector<9x128xf32> to vector<1x128xf32>
    %c6 = arith.constant 6 : index
    %c0_35 = arith.constant 0 : index
    %c0_36 = arith.constant 0 : index
    %47 = vector.load %arg6[%c6, %c0_35, %c0_36] : memref<9x128x128xf32, #tpu.memory_space<vmem>>, vector<1x128x128xf32>
    %48 = vector.shape_cast %47 : vector<1x128x128xf32> to vector<128x128xf32>
    %cst_37 = arith.constant dense<0.000000e+00> : vector<1x128xf32>
    %49 = tpu.matmul %46, %48, %cst_37 {dimension_numbers = #tpu.dot_dimension_numbers<[1], [0], [0], [1], [0, 0, 1, 1], [], []>} : vector<1x128xf32>, vector<128x128xf32>, vector<1x128xf32> -> vector<1x128xf32>
    %50 = arith.addf %45, %49 : vector<1x128xf32>
    %51 = vector.extract_strided_slice %14 {offsets = [7, 0], sizes = [1, 128], strides = [1, 1]} : vector<9x128xf32> to vector<1x128xf32>
    %c7 = arith.constant 7 : index
    %c0_38 = arith.constant 0 : index
    %c0_39 = arith.constant 0 : index
    %52 = vector.load %arg6[%c7, %c0_38, %c0_39] : memref<9x128x128xf32, #tpu.memory_space<vmem>>, vector<1x128x128xf32>
    %53 = vector.shape_cast %52 : vector<1x128x128xf32> to vector<128x128xf32>
    %cst_40 = arith.constant dense<0.000000e+00> : vector<1x128xf32>
    %54 = tpu.matmul %51, %53, %cst_40 {dimension_numbers = #tpu.dot_dimension_numbers<[1], [0], [0], [1], [0, 0, 1, 1], [], []>} : vector<1x128xf32>, vector<128x128xf32>, vector<1x128xf32> -> vector<1x128xf32>
    %55 = arith.addf %50, %54 : vector<1x128xf32>
    %56 = vector.extract_strided_slice %14 {offsets = [8, 0], sizes = [1, 128], strides = [1, 1]} : vector<9x128xf32> to vector<1x128xf32>
    %c8 = arith.constant 8 : index
    %c0_41 = arith.constant 0 : index
    %c0_42 = arith.constant 0 : index
    %57 = vector.load %arg6[%c8, %c0_41, %c0_42] : memref<9x128x128xf32, #tpu.memory_space<vmem>>, vector<1x128x128xf32>
    %58 = vector.shape_cast %57 : vector<1x128x128xf32> to vector<128x128xf32>
    %cst_43 = arith.constant dense<0.000000e+00> : vector<1x128xf32>
    %59 = tpu.matmul %56, %58, %cst_43 {dimension_numbers = #tpu.dot_dimension_numbers<[1], [0], [0], [1], [0, 0, 1, 1], [], []>} : vector<1x128xf32>, vector<128x128xf32>, vector<1x128xf32> -> vector<1x128xf32>
    %60 = arith.addf %55, %59 : vector<1x128xf32>
    %c0_44 = arith.constant 0 : index
    %c0_45 = arith.constant 0 : index
    %61 = vector.load %arg7[%c0_44, %c0_45] : memref<1x128xf32, #tpu.memory_space<vmem>>, vector<1x128xf32>
    %62 = arith.addf %60, %61 : vector<1x128xf32>
    %c0_46 = arith.constant 0 : index
    %c0_47 = arith.constant 0 : index
    %c0_48 = arith.constant 0 : index
    %63 = vector.load %arg9[%c0_46, %c0_47, %c0_48] : memref<1x1x128xf32, #tpu.memory_space<vmem>>, vector<1x1x128xf32>
    %64 = vector.shape_cast %63 : vector<1x1x128xf32> to vector<1x128xf32>
    %65 = vector.shape_cast %62 : vector<1x128xf32> to vector<1x1x128xf32>
    tpu.vector_store %arg9[%c0_46, %c0_47, %c0_48], %65 {strides = array<i32>} : memref<1x1x128xf32, #tpu.memory_space<vmem>>, vector<1x1x128xf32>,
    return
  }
  func.func @transform_0(%arg0: i32) -> (i32, i32, i32) {
    %c0_i32 = arith.constant 0 : i32
    %c0_i32_0 = arith.constant 0 : i32
    %c0_i32_1 = arith.constant 0 : i32
    return %arg0, %c0_i32, %c0_i32_0 : i32, i32, i32
  }
  func.func @transform_1(%arg0: i32) -> (i32, i32, i32) {
    %c0_i32 = arith.constant 0 : i32
    %c0_i32_0 = arith.constant 0 : i32
    %c0_i32_1 = arith.constant 0 : i32
    return %arg0, %c0_i32, %c0_i32_0 : i32, i32, i32
  }
  func.func @transform_2(%arg0: i32) -> (i32, i32) {
    %c0_i32 = arith.constant 0 : i32
    %c0_i32_0 = arith.constant 0 : i32
    %c0_i32_1 = arith.constant 0 : i32
    return %c0_i32, %c0_i32_0 : i32, i32
  }
  func.func @transform_3(%arg0: i32) -> (i32, i32) {
    %c0_i32 = arith.constant 0 : i32
    %c0_i32_0 = arith.constant 0 : i32
    %c0_i32_1 = arith.constant 0 : i32
    return %c0_i32, %c0_i32_0 : i32, i32
  }
  func.func @transform_4(%arg0: i32) -> (i32, i32) {
    %c0_i32 = arith.constant 0 : i32
    %c0_i32_0 = arith.constant 0 : i32
    %c0_i32_1 = arith.constant 0 : i32
    return %c0_i32, %c0_i32_0 : i32, i32
  }
  func.func @transform_5(%arg0: i32) -> (i32, i32, i32) {
    %c0_i32 = arith.constant 0 : i32
    %c0_i32_0 = arith.constant 0 : i32
    %c0_i32_1 = arith.constant 0 : i32
    %c0_i32_2 = arith.constant 0 : i32
    return %c0_i32, %c0_i32_0, %c0_i32_1 : i32, i32, i32
  }
  func.func @transform_6(%arg0: i32) -> (i32, i32) {
    %c0_i32 = arith.constant 0 : i32
    %c0_i32_0 = arith.constant 0 : i32
    %c0_i32_1 = arith.constant 0 : i32
    return %c0_i32, %c0_i32_0 : i32, i32
  }
  func.func @transform_7(%arg0: i32) -> (i32, i32, i32) {
    %c0_i32 = arith.constant 0 : i32
    %c0_i32_0 = arith.constant 0 : i32
    %c0_i32_1 = arith.constant 0 : i32
    return %arg0, %c0_i32, %c0_i32_0 : i32, i32, i32
  }
  func.func @transform_8(%arg0: i32) -> (i32, i32, i32) {
    %c0_i32 = arith.constant 0 : i32
    %c0_i32_0 = arith.constant 0 : i32
    %c0_i32_1 = arith.constant 0 : i32
    return %arg0, %c0_i32, %c0_i32_0 : i32, i32, i32
  }
}

module attributes {stable_mosaic.version = 11 : i64} {
  func.func @_fpn_level_kernel(%arg0: i32, %arg1: memref<1x256x128xf32, #tpu.memory_space<vmem>>, %arg2: memref<1x256x128xf32, #tpu.memory_space<vmem>>, %arg3: memref<9x256xf32, #tpu.memory_space<vmem>>, %arg4: memref<128x128xf32, #tpu.memory_space<vmem>>, %arg5: memref<1x128xf32, #tpu.memory_space<vmem>>, %arg6: memref<9x128x128xf32, #tpu.memory_space<vmem>>, %arg7: memref<1x128xf32, #tpu.memory_space<vmem>>, %arg8: memref<1x256x128xf32, #tpu.memory_space<vmem>>, %arg9: memref<1x1x128xf32, #tpu.memory_space<vmem>>) attributes {dimension_semantics = [#tpu.dimension_semantics<parallel>], iteration_bounds = array<i64: 2>, scalar_prefetch = 0 : i64, scratch_operands = 0 : i64, tpu.core_type = #tpu.core_type<tc>, window_params = [{transform_indices = @transform_0, window_bounds = array<i64: 1, 256, 128>}, {transform_indices = @transform_1, window_bounds = array<i64: 1, 256, 128>}, {pipeline_mode = #tpu.pipeline_mode<synchronous>, transform_indices = @transform_2, window_bounds = array<i64: 9, 256>}, {pipeline_mode = #tpu.pipeline_mode<synchronous>, transform_indices = @transform_3, window_bounds = array<i64: 128, 128>}, {pipeline_mode = #tpu.pipeline_mode<synchronous>, transform_indices = @transform_4, window_bounds = array<i64: 1, 128>}, {pipeline_mode = #tpu.pipeline_mode<synchronous>, transform_indices = @transform_5, window_bounds = array<i64: 9, 128, 128>}, {pipeline_mode = #tpu.pipeline_mode<synchronous>, transform_indices = @transform_6, window_bounds = array<i64: 1, 128>}, {transform_indices = @transform_7, window_bounds = array<i64: 1, 256, 128>}, {transform_indices = @transform_8, window_bounds = array<i64: 1, 1, 128>}]} {
    %c0 = arith.constant 0 : index
    %c0_0 = arith.constant 0 : index
    %c0_1 = arith.constant 0 : index
    %0 = vector.load %arg1[%c0, %c0_0, %c0_1] : memref<1x256x128xf32, #tpu.memory_space<vmem>>, vector<1x256x128xf32>
    %1 = vector.shape_cast %0 : vector<1x256x128xf32> to vector<256x128xf32>
    %c0_2 = arith.constant 0 : index
    %c0_3 = arith.constant 0 : index
    %2 = vector.load %arg4[%c0_2, %c0_3] : memref<128x128xf32, #tpu.memory_space<vmem>>, vector<128x128xf32>
    %cst = arith.constant dense<0.000000e+00> : vector<256x128xf32>
    %3 = tpu.matmul %1, %2, %cst {dimension_numbers = #tpu.dot_dimension_numbers<[1], [0], [0], [1], [0, 0, 1, 1], [], []>} : vector<256x128xf32>, vector<128x128xf32>, vector<256x128xf32> -> vector<256x128xf32>
    %c0_4 = arith.constant 0 : index
    %c0_5 = arith.constant 0 : index
    %4 = vector.load %arg5[%c0_4, %c0_5] : memref<1x128xf32, #tpu.memory_space<vmem>>, vector<1x128xf32>
    %5 = vector.broadcast %4 : vector<1x128xf32> to vector<256x128xf32>
    %6 = arith.addf %3, %5 : vector<256x128xf32>
    %c0_6 = arith.constant 0 : index
    %c0_7 = arith.constant 0 : index
    %c0_8 = arith.constant 0 : index
    %7 = vector.load %arg2[%c0_6, %c0_7, %c0_8] : memref<1x256x128xf32, #tpu.memory_space<vmem>>, vector<1x256x128xf32>
    %8 = vector.shape_cast %7 : vector<1x256x128xf32> to vector<256x128xf32>
    %9 = arith.addf %6, %8 : vector<256x128xf32>
    %c0_9 = arith.constant 0 : index
    %c0_10 = arith.constant 0 : index
    %c0_11 = arith.constant 0 : index
    %10 = vector.load %arg8[%c0_9, %c0_10, %c0_11] : memref<1x256x128xf32, #tpu.memory_space<vmem>>, vector<1x256x128xf32>
    %11 = vector.shape_cast %10 : vector<1x256x128xf32> to vector<256x128xf32>
    %12 = vector.shape_cast %9 : vector<256x128xf32> to vector<1x256x128xf32>
    tpu.vector_store %arg8[%c0_9, %c0_10, %c0_11], %12 {strides = array<i32>} : memref<1x256x128xf32, #tpu.memory_space<vmem>>, vector<1x256x128xf32>,
    %c0_12 = arith.constant 0 : index
    %c0_13 = arith.constant 0 : index
    %13 = vector.load %arg3[%c0_12, %c0_13] : memref<9x256xf32, #tpu.memory_space<vmem>>, vector<9x256xf32>
    %cst_14 = arith.constant dense<0.000000e+00> : vector<9x128xf32>
    %14 = tpu.matmul %13, %9, %cst_14 {dimension_numbers = #tpu.dot_dimension_numbers<[1], [0], [0], [1], [0, 0, 1, 1], [], []>} : vector<9x256xf32>, vector<256x128xf32>, vector<9x128xf32> -> vector<9x128xf32>
    %cst_15 = arith.constant 0.000000e+00 : f32
    %15 = vector.broadcast %cst_15 : f32 to vector<1x128xf32>
    %16 = vector.extract_strided_slice %14 {offsets = [0, 0], sizes = [1, 128], strides = [1, 1]} : vector<9x128xf32> to vector<1x128xf32>
    %c0_16 = arith.constant 0 : index
    %c0_17 = arith.constant 0 : index
    %c0_18 = arith.constant 0 : index
    %17 = vector.load %arg6[%c0_16, %c0_17, %c0_18] : memref<9x128x128xf32, #tpu.memory_space<vmem>>, vector<1x128x128xf32>
    %18 = vector.shape_cast %17 : vector<1x128x128xf32> to vector<128x128xf32>
    %cst_19 = arith.constant dense<0.000000e+00> : vector<1x128xf32>
    %19 = tpu.matmul %16, %18, %cst_19 {dimension_numbers = #tpu.dot_dimension_numbers<[1], [0], [0], [1], [0, 0, 1, 1], [], []>} : vector<1x128xf32>, vector<128x128xf32>, vector<1x128xf32> -> vector<1x128xf32>
    %20 = arith.addf %15, %19 : vector<1x128xf32>
    %21 = vector.extract_strided_slice %14 {offsets = [1, 0], sizes = [1, 128], strides = [1, 1]} : vector<9x128xf32> to vector<1x128xf32>
    %c1 = arith.constant 1 : index
    %c0_20 = arith.constant 0 : index
    %c0_21 = arith.constant 0 : index
    %22 = vector.load %arg6[%c1, %c0_20, %c0_21] : memref<9x128x128xf32, #tpu.memory_space<vmem>>, vector<1x128x128xf32>
    %23 = vector.shape_cast %22 : vector<1x128x128xf32> to vector<128x128xf32>
    %cst_22 = arith.constant dense<0.000000e+00> : vector<1x128xf32>
    %24 = tpu.matmul %21, %23, %cst_22 {dimension_numbers = #tpu.dot_dimension_numbers<[1], [0], [0], [1], [0, 0, 1, 1], [], []>} : vector<1x128xf32>, vector<128x128xf32>, vector<1x128xf32> -> vector<1x128xf32>
    %25 = arith.addf %20, %24 : vector<1x128xf32>
    %26 = vector.extract_strided_slice %14 {offsets = [2, 0], sizes = [1, 128], strides = [1, 1]} : vector<9x128xf32> to vector<1x128xf32>
    %c2 = arith.constant 2 : index
    %c0_23 = arith.constant 0 : index
    %c0_24 = arith.constant 0 : index
    %27 = vector.load %arg6[%c2, %c0_23, %c0_24] : memref<9x128x128xf32, #tpu.memory_space<vmem>>, vector<1x128x128xf32>
    %28 = vector.shape_cast %27 : vector<1x128x128xf32> to vector<128x128xf32>
    %cst_25 = arith.constant dense<0.000000e+00> : vector<1x128xf32>
    %29 = tpu.matmul %26, %28, %cst_25 {dimension_numbers = #tpu.dot_dimension_numbers<[1], [0], [0], [1], [0, 0, 1, 1], [], []>} : vector<1x128xf32>, vector<128x128xf32>, vector<1x128xf32> -> vector<1x128xf32>
    %30 = arith.addf %25, %29 : vector<1x128xf32>
    %31 = vector.extract_strided_slice %14 {offsets = [3, 0], sizes = [1, 128], strides = [1, 1]} : vector<9x128xf32> to vector<1x128xf32>
    %c3 = arith.constant 3 : index
    %c0_26 = arith.constant 0 : index
    %c0_27 = arith.constant 0 : index
    %32 = vector.load %arg6[%c3, %c0_26, %c0_27] : memref<9x128x128xf32, #tpu.memory_space<vmem>>, vector<1x128x128xf32>
    %33 = vector.shape_cast %32 : vector<1x128x128xf32> to vector<128x128xf32>
    %cst_28 = arith.constant dense<0.000000e+00> : vector<1x128xf32>
    %34 = tpu.matmul %31, %33, %cst_28 {dimension_numbers = #tpu.dot_dimension_numbers<[1], [0], [0], [1], [0, 0, 1, 1], [], []>} : vector<1x128xf32>, vector<128x128xf32>, vector<1x128xf32> -> vector<1x128xf32>
    %35 = arith.addf %30, %34 : vector<1x128xf32>
    %36 = vector.extract_strided_slice %14 {offsets = [4, 0], sizes = [1, 128], strides = [1, 1]} : vector<9x128xf32> to vector<1x128xf32>
    %c4 = arith.constant 4 : index
    %c0_29 = arith.constant 0 : index
    %c0_30 = arith.constant 0 : index
    %37 = vector.load %arg6[%c4, %c0_29, %c0_30] : memref<9x128x128xf32, #tpu.memory_space<vmem>>, vector<1x128x128xf32>
    %38 = vector.shape_cast %37 : vector<1x128x128xf32> to vector<128x128xf32>
    %cst_31 = arith.constant dense<0.000000e+00> : vector<1x128xf32>
    %39 = tpu.matmul %36, %38, %cst_31 {dimension_numbers = #tpu.dot_dimension_numbers<[1], [0], [0], [1], [0, 0, 1, 1], [], []>} : vector<1x128xf32>, vector<128x128xf32>, vector<1x128xf32> -> vector<1x128xf32>
    %40 = arith.addf %35, %39 : vector<1x128xf32>
    %41 = vector.extract_strided_slice %14 {offsets = [5, 0], sizes = [1, 128], strides = [1, 1]} : vector<9x128xf32> to vector<1x128xf32>
    %c5 = arith.constant 5 : index
    %c0_32 = arith.constant 0 : index
    %c0_33 = arith.constant 0 : index
    %42 = vector.load %arg6[%c5, %c0_32, %c0_33] : memref<9x128x128xf32, #tpu.memory_space<vmem>>, vector<1x128x128xf32>
    %43 = vector.shape_cast %42 : vector<1x128x128xf32> to vector<128x128xf32>
    %cst_34 = arith.constant dense<0.000000e+00> : vector<1x128xf32>
    %44 = tpu.matmul %41, %43, %cst_34 {dimension_numbers = #tpu.dot_dimension_numbers<[1], [0], [0], [1], [0, 0, 1, 1], [], []>} : vector<1x128xf32>, vector<128x128xf32>, vector<1x128xf32> -> vector<1x128xf32>
    %45 = arith.addf %40, %44 : vector<1x128xf32>
    %46 = vector.extract_strided_slice %14 {offsets = [6, 0], sizes = [1, 128], strides = [1, 1]} : vector<9x128xf32> to vector<1x128xf32>
    %c6 = arith.constant 6 : index
    %c0_35 = arith.constant 0 : index
    %c0_36 = arith.constant 0 : index
    %47 = vector.load %arg6[%c6, %c0_35, %c0_36] : memref<9x128x128xf32, #tpu.memory_space<vmem>>, vector<1x128x128xf32>
    %48 = vector.shape_cast %47 : vector<1x128x128xf32> to vector<128x128xf32>
    %cst_37 = arith.constant dense<0.000000e+00> : vector<1x128xf32>
    %49 = tpu.matmul %46, %48, %cst_37 {dimension_numbers = #tpu.dot_dimension_numbers<[1], [0], [0], [1], [0, 0, 1, 1], [], []>} : vector<1x128xf32>, vector<128x128xf32>, vector<1x128xf32> -> vector<1x128xf32>
    %50 = arith.addf %45, %49 : vector<1x128xf32>
    %51 = vector.extract_strided_slice %14 {offsets = [7, 0], sizes = [1, 128], strides = [1, 1]} : vector<9x128xf32> to vector<1x128xf32>
    %c7 = arith.constant 7 : index
    %c0_38 = arith.constant 0 : index
    %c0_39 = arith.constant 0 : index
    %52 = vector.load %arg6[%c7, %c0_38, %c0_39] : memref<9x128x128xf32, #tpu.memory_space<vmem>>, vector<1x128x128xf32>
    %53 = vector.shape_cast %52 : vector<1x128x128xf32> to vector<128x128xf32>
    %cst_40 = arith.constant dense<0.000000e+00> : vector<1x128xf32>
    %54 = tpu.matmul %51, %53, %cst_40 {dimension_numbers = #tpu.dot_dimension_numbers<[1], [0], [0], [1], [0, 0, 1, 1], [], []>} : vector<1x128xf32>, vector<128x128xf32>, vector<1x128xf32> -> vector<1x128xf32>
    %55 = arith.addf %50, %54 : vector<1x128xf32>
    %56 = vector.extract_strided_slice %14 {offsets = [8, 0], sizes = [1, 128], strides = [1, 1]} : vector<9x128xf32> to vector<1x128xf32>
    %c8 = arith.constant 8 : index
    %c0_41 = arith.constant 0 : index
    %c0_42 = arith.constant 0 : index
    %57 = vector.load %arg6[%c8, %c0_41, %c0_42] : memref<9x128x128xf32, #tpu.memory_space<vmem>>, vector<1x128x128xf32>
    %58 = vector.shape_cast %57 : vector<1x128x128xf32> to vector<128x128xf32>
    %cst_43 = arith.constant dense<0.000000e+00> : vector<1x128xf32>
    %59 = tpu.matmul %56, %58, %cst_43 {dimension_numbers = #tpu.dot_dimension_numbers<[1], [0], [0], [1], [0, 0, 1, 1], [], []>} : vector<1x128xf32>, vector<128x128xf32>, vector<1x128xf32> -> vector<1x128xf32>
    %60 = arith.addf %55, %59 : vector<1x128xf32>
    %c0_44 = arith.constant 0 : index
    %c0_45 = arith.constant 0 : index
    %61 = vector.load %arg7[%c0_44, %c0_45] : memref<1x128xf32, #tpu.memory_space<vmem>>, vector<1x128xf32>
    %62 = arith.addf %60, %61 : vector<1x128xf32>
    %c0_46 = arith.constant 0 : index
    %c0_47 = arith.constant 0 : index
    %c0_48 = arith.constant 0 : index
    %63 = vector.load %arg9[%c0_46, %c0_47, %c0_48] : memref<1x1x128xf32, #tpu.memory_space<vmem>>, vector<1x1x128xf32>
    %64 = vector.shape_cast %63 : vector<1x1x128xf32> to vector<1x128xf32>
    %65 = vector.shape_cast %62 : vector<1x128xf32> to vector<1x1x128xf32>
    tpu.vector_store %arg9[%c0_46, %c0_47, %c0_48], %65 {strides = array<i32>} : memref<1x1x128xf32, #tpu.memory_space<vmem>>, vector<1x1x128xf32>,
    return
  }
  func.func @transform_0(%arg0: i32) -> (i32, i32, i32) {
    %c0_i32 = arith.constant 0 : i32
    %c0_i32_0 = arith.constant 0 : i32
    %c0_i32_1 = arith.constant 0 : i32
    return %arg0, %c0_i32, %c0_i32_0 : i32, i32, i32
  }
  func.func @transform_1(%arg0: i32) -> (i32, i32, i32) {
    %c0_i32 = arith.constant 0 : i32
    %c0_i32_0 = arith.constant 0 : i32
    %c0_i32_1 = arith.constant 0 : i32
    return %arg0, %c0_i32, %c0_i32_0 : i32, i32, i32
  }
  func.func @transform_2(%arg0: i32) -> (i32, i32) {
    %c0_i32 = arith.constant 0 : i32
    %c0_i32_0 = arith.constant 0 : i32
    %c0_i32_1 = arith.constant 0 : i32
    return %c0_i32, %c0_i32_0 : i32, i32
  }
  func.func @transform_3(%arg0: i32) -> (i32, i32) {
    %c0_i32 = arith.constant 0 : i32
    %c0_i32_0 = arith.constant 0 : i32
    %c0_i32_1 = arith.constant 0 : i32
    return %c0_i32, %c0_i32_0 : i32, i32
  }
  func.func @transform_4(%arg0: i32) -> (i32, i32) {
    %c0_i32 = arith.constant 0 : i32
    %c0_i32_0 = arith.constant 0 : i32
    %c0_i32_1 = arith.constant 0 : i32
    return %c0_i32, %c0_i32_0 : i32, i32
  }
  func.func @transform_5(%arg0: i32) -> (i32, i32, i32) {
    %c0_i32 = arith.constant 0 : i32
    %c0_i32_0 = arith.constant 0 : i32
    %c0_i32_1 = arith.constant 0 : i32
    %c0_i32_2 = arith.constant 0 : i32
    return %c0_i32, %c0_i32_0, %c0_i32_1 : i32, i32, i32
  }
  func.func @transform_6(%arg0: i32) -> (i32, i32) {
    %c0_i32 = arith.constant 0 : i32
    %c0_i32_0 = arith.constant 0 : i32
    %c0_i32_1 = arith.constant 0 : i32
    return %c0_i32, %c0_i32_0 : i32, i32
  }
  func.func @transform_7(%arg0: i32) -> (i32, i32, i32) {
    %c0_i32 = arith.constant 0 : i32
    %c0_i32_0 = arith.constant 0 : i32
    %c0_i32_1 = arith.constant 0 : i32
    return %arg0, %c0_i32, %c0_i32_0 : i32, i32, i32
  }
  func.func @transform_8(%arg0: i32) -> (i32, i32, i32) {
    %c0_i32 = arith.constant 0 : i32
    %c0_i32_0 = arith.constant 0 : i32
    %c0_i32_1 = arith.constant 0 : i32
    return %arg0, %c0_i32, %c0_i32_0 : i32, i32, i32
  }
}

module attributes {stable_mosaic.version = 11 : i64} {
  func.func @_head_matmul_kernel(%arg0: i32, %arg1: memref<2x384xbf16, #tpu.memory_space<vmem>>, %arg2: memref<384x512xbf16, #tpu.memory_space<vmem>>, %arg3: memref<1x512xf32, #tpu.memory_space<vmem>>, %arg4: memref<2x512xf32, #tpu.memory_space<vmem>>) attributes {dimension_semantics = [#tpu.dimension_semantics<parallel>], iteration_bounds = array<i64: 23>, scalar_prefetch = 0 : i64, scratch_operands = 0 : i64, tpu.core_type = #tpu.core_type<tc>, window_params = [{pipeline_mode = #tpu.pipeline_mode<synchronous>, transform_indices = @transform_0, window_bounds = array<i64: 2, 384>}, {transform_indices = @transform_1, window_bounds = array<i64: 384, 512>}, {transform_indices = @transform_2, window_bounds = array<i64: 1, 512>}, {transform_indices = @transform_3, window_bounds = array<i64: 2, 512>}]} {
    %c0 = arith.constant 0 : index
    %c0_0 = arith.constant 0 : index
    %0 = vector.load %arg1[%c0, %c0_0] : memref<2x384xbf16, #tpu.memory_space<vmem>>, vector<2x384xbf16>
    %c0_1 = arith.constant 0 : index
    %c0_2 = arith.constant 0 : index
    %1 = vector.load %arg2[%c0_1, %c0_2] : memref<384x512xbf16, #tpu.memory_space<vmem>>, vector<384x512xbf16>
    %cst = arith.constant dense<0.000000e+00> : vector<2x512xf32>
    %2 = tpu.matmul %0, %1, %cst {dimension_numbers = #tpu.dot_dimension_numbers<[1], [0], [0], [1], [0, 0, 1, 1], [], []>} : vector<2x384xbf16>, vector<384x512xbf16>, vector<2x512xf32> -> vector<2x512xf32>
    %c0_3 = arith.constant 0 : index
    %c0_4 = arith.constant 0 : index
    %3 = vector.load %arg3[%c0_3, %c0_4] : memref<1x512xf32, #tpu.memory_space<vmem>>, vector<1x512xf32>
    %4 = vector.broadcast %3 : vector<1x512xf32> to vector<2x512xf32>
    %5 = arith.addf %2, %4 : vector<2x512xf32>
    %c0_5 = arith.constant 0 : index
    %c0_6 = arith.constant 0 : index
    %6 = vector.load %arg4[%c0_5, %c0_6] : memref<2x512xf32, #tpu.memory_space<vmem>>, vector<2x512xf32>
    tpu.vector_store %arg4[%c0_5, %c0_6], %5 {strides = array<i32>} : memref<2x512xf32, #tpu.memory_space<vmem>>, vector<2x512xf32>,
    return
  }
  func.func @transform_0(%arg0: i32) -> (i32, i32) {
    %c0_i32 = arith.constant 0 : i32
    %c0_i32_0 = arith.constant 0 : i32
    %c0_i32_1 = arith.constant 0 : i32
    return %c0_i32, %c0_i32_0 : i32, i32
  }
  func.func @transform_1(%arg0: i32) -> (i32, i32) {
    %c0_i32 = arith.constant 0 : i32
    %c0_i32_0 = arith.constant 0 : i32
    return %c0_i32, %arg0 : i32, i32
  }
  func.func @transform_2(%arg0: i32) -> (i32, i32) {
    %c0_i32 = arith.constant 0 : i32
    %c0_i32_0 = arith.constant 0 : i32
    return %c0_i32, %arg0 : i32, i32
  }
  func.func @transform_3(%arg0: i32) -> (i32, i32) {
    %c0_i32 = arith.constant 0 : i32
    %c0_i32_0 = arith.constant 0 : i32
    return %c0_i32, %arg0 : i32, i32
  }
}

</mosaic_0001>

<bundles_post_ra>
// kernel: geoformer_forward.4
= control target key start
LH: loop header
LB: loop body
LE: loop exit
PB: predicated region body
PF: predicated region fallthrough
CT: control target
= control target key end

     0   :  { %13 = vsyncpa [#allocation3], 0  ;;  %s2598_s0 = inlined_call_operand.vmem [shape: f32[2,16,128], index: 0, kind: input, shape index: {}]   ;;  %s2599_s1 = inlined_call_operand.hbm [shape: f32[9,16], index: 1, kind: input, shape index: {}]   ;;  %s2600_s2 = inlined_call_operand.hbm [shape: f32[128,128], index: 2, kind: input, shape index: {}]   ;;  %s2601_s3 = inlined_call_operand.hbm [shape: f32[1,128], index: 3, kind: input, shape index: {}]   ;;  %s2602_s4 = inlined_call_operand.hbm [shape: f32[9,128,128], index: 4, kind: input, shape index: {}]   ;;  %s2603_s5 = inlined_call_operand.hbm [shape: f32[1,128], index: 5, kind: input, shape index: {}]   ;;  %s2604_s6 = inlined_call_operand.vmem [shape: f32[2,16,128], index: 6, kind: output, shape index: {0}]   ;;  %s2605_s7 = inlined_call_operand.vmem [shape: f32[2,1,128], index: 7, kind: output, shape index: {1}]  }
   0x1   :  { %14 = vsyncpa [#allocation5], 0 }
   0x2   :  { %15 = vsyncpa [#allocation8], 0  ;;  %s2300_s24 = smov 0  }
   0x3 LB: > { %s2306_s25 = sadd.s32 4294967295, %s2249_s24   ;;  %p1482_p0 = scmp.ge.s32.totalorder %s2249_s24, 1  ;;  %s2249_s24 = sphi %s2300_s24, %s21_s24  }
   0x4   : > { %p209_p1 = scmp.lt.s32.totalorder %s2249_s24, 3  ;;  %p2074_p2 = scmp.eq.s32.totalorder %s2306_s25, 0 }
   0x5   : > { %s2251_s27 = smov [#allocation4]   ;;  %s2252_s29 = smov [#allocation7]  }
   0x6   : > { %p2311_p3 = pnand %p1482_p0, %p209_p1  ;;  %s234_s28 = sshll.u32 %s2251_s27, 4  ;;  %s235_s28 = int_to_ptr.vmem [resolvable:$true] %s234_s28 }
   0x7   : > { %s258_s30 = sshll.u32 %s2252_s29, 4  ;;  %s2253_s9 = smov [#allocation2]   ;;  %s2317_s30 = int_to_ptr.vmem [resolvable:$true] %s258_s30 }
   0x8   : > { %p2058_p4 = pneg %p2311_p3  ;;  %s221_s10 = sshll.u32 %s2253_s9, 4  ;;  %s2325_s10 = int_to_ptr.vmem [resolvable:$true] %s221_s10 }
   0x9   : > { %s2254_s11 = smov [#allocation6]   ;;  %s2112_s14 = scalar_lea.vmem %s235_s28, 2048 }
   0xa   : > { %p2321_p5 = pnand %p2074_p2, %p2058_p4  ;;  %s2327_s12 = sshll.u32 %s2254_s11, 4  ;;  %s249_s12 = int_to_ptr.vmem [resolvable:$true] %s2327_s12 }
   0xb   : > { %p2113_p7 = scmp.ne.s32.totalorder %s235_s28, %s2112_s14  ;;  %p2120_p10 = scmp.lt.s32.totalorder %s235_s28, %s235_s28 }
   0xc   : > { %p2331_p6 = pneg %p2321_p5  ;;  %p2121_p11 = scmp.lt.s32.totalorder %s2112_s14, %s2112_s14 }
   0xe   : > { %p2115_p8 = pnand %p2113_p7, %p2331_p6  ;;  %p2122_p12 = por %p2121_p11, %p2120_p10 }
  0x10   : > { %p2116_p9 = pneg %p2115_p8 }
  0x12   : > { %p2123_p13 = pnand %p2122_p12, %p2116_p9 }
  0x14   : > { %2126 = shalt.err (!%p2123_p13)
}
  0x15   : > { %s2255_s15 = smov 128   ;;  %s2256_s16 = smov 8  }
  0x16   : > { %2064 = dma.hbm_to_vmem [thread:$0]  (!%p2321_p5), %s2600_s2, 2048, %s235_s28, [#allocation5], %s2255_s15, %s2255_s15, %s2256_s16  }
  0x17   : > { %s2138_s19 = scalar_lea.vmem %s2317_s30, 18432  ;;  %p2146_p7 = scmp.lt.s32.totalorder %s2317_s30, %s2317_s30 }
  0x18   : > { %p2139_p0 = scmp.ne.s32.totalorder %s2317_s30, %s2138_s19  ;;  %p2147_p8 = scmp.lt.s32.totalorder %s2138_s19, %s2138_s19 }
  0x1a   : > { %p2141_p1 = pnand %p2139_p0, %p2331_p6  ;;  %p2148_p9 = por %p2147_p8, %p2146_p7 }
  0x1c   : > { %p2142_p4 = pneg %p2141_p1 }
  0x1e   : > { %p2149_p10 = pnand %p2148_p9, %p2142_p4 }
  0x20   : > { %2152 = shalt.err (!%p2149_p10)
}
  0x21   : > { %2070 = dma.hbm_to_vmem [thread:$0]  (!%p2321_p5), %s2602_s4, 18432, %s2317_s30, [#allocation8], %s2255_s15, %s2255_s15, %s2256_s16  }
  0x22   : > { %s2164_s22 = scalar_lea.vmem %s2325_s10, 256  ;;  %p2172_p0 = scmp.lt.s32.totalorder %s2325_s10, %s2325_s10 }
  0x23   : > { %p2165_p11 = scmp.ne.s32.totalorder %s2325_s10, %s2164_s22  ;;  %p2173_p1 = scmp.lt.s32.totalorder %s2164_s22, %s2164_s22 }
  0x25   : > { %p2167_p12 = pnand %p2165_p11, %p2331_p6  ;;  %p2174_p4 = por %p2173_p1, %p2172_p0 }
  0x27   : > { %p2168_p13 = pneg %p2167_p12 }
  0x29   : > { %p2175_p7 = pnand %p2174_p4, %p2168_p13 }
  0x2b   : > { %2178 = shalt.err (!%p2175_p7)
}
  0x2c   : > { %2061 = dma.hbm_to_vmem [thread:$0]  (!%p2321_p5), %s2599_s1, 256, %s2325_s10, [#allocation3], %s2255_s15, %s2255_s15, %s2256_s16  }
  0x2d   : > { %s2190_s28 = scalar_lea.vmem %s249_s12, 16  ;;  %s2197_s29 = scalar_lea.vmem %s249_s12, 32 }
  0x2e   : > { %p2191_p8 = scmp.ne.s32.totalorder %s249_s12, %s2190_s28  ;;  %p2198_p11 = scmp.lt.s32.totalorder %s249_s12, %s249_s12 }
  0x2f   : > { %p2199_p12 = scmp.lt.s32.totalorder %s2197_s29, %s2190_s28 }
  0x30   : > { %p2193_p9 = pnand %p2191_p8, %p2331_p6 }
  0x31   : > { %p2200_p13 = por %p2199_p12, %p2198_p11 }
  0x32   : > { %p2194_p10 = pneg %p2193_p9 }
  0x34   : > { %p2201_p0 = pnand %p2200_p13, %p2194_p10 }
  0x36   : > { %2204 = shalt.err (!%p2201_p0)
}
  0x37   : > { %2067 = dma.hbm_to_vmem [thread:$0]  (!%p2321_p5), %s2601_s3, 16, %s249_s12, [#allocation5]  }
  0x38   : > { %s2257_s10 = smov [#allocation9]  }
  0x39   : > { %s272_s11 = sshll.u32 %s2257_s10, 4  ;;  %s273_s11 = int_to_ptr.vmem [resolvable:$true] %s272_s11 }
  0x3a   : > { %s2216_s14 = scalar_lea.vmem %s273_s11, 16  ;;  %s2223_s15 = scalar_lea.vmem %s273_s11, 32 }
  0x3b   : > { %p2217_p1 = scmp.ne.s32.totalorder %s273_s11, %s2216_s14  ;;  %p2224_p8 = scmp.lt.s32.totalorder %s273_s11, %s273_s11 }
  0x3c   : > { %p2225_p9 = scmp.lt.s32.totalorder %s2223_s15, %s2216_s14 }
  0x3d   : > { %p2219_p4 = pnand %p2217_p1, %p2331_p6 }
  0x3e   : > { %p2226_p10 = por %p2225_p9, %p2224_p8 }
  0x3f   : > { %p2220_p7 = pneg %p2219_p4 }
  0x41   : > { %p2227_p11 = pnand %p2226_p10, %p2220_p7 }
  0x43   : > { %2230 = shalt.err (!%p2227_p11)
}
  0x44   : > { %2073 = dma.hbm_to_vmem [thread:$0]  (!%p2321_p5), %s2603_s5, 16, %s273_s11, [#allocation8]  }
  0x45   : > { %293 = sbr.rel (%p2311_p3) target bundleno = 838 (0x346), region = 44 }
  0x4a   : > { %2236 = dma.done.wait (%p2074_p2), [#allocation3], 256  }
  0x4b   : > { %2238 = vsyncadd (%p2074_p2), [#allocation3], 4294967040 }
  0x4c   : > { %2240 = dma.done.wait (%p2074_p2), [#allocation5], 2064  }
  0x4d   : > { %2242 = vsyncadd (%p2074_p2), [#allocation5], 4294965232 }
  0x4e   : > { %2244 = dma.done.wait (%p2074_p2), [#allocation8], 18448  }
  0x4f   : > { %2246 = vsyncadd (%p2074_p2), [#allocation8], 4294948848  ;;  %p344_p3 = scmp.lt.s32.totalorder %s2306_s25, 1  ;;  %v374_v0 = vld [vmem:[#allocation4 + $0x78] sm:$0xff]  ;;  %v373_v1 = vld [vmem:[#allocation4 + $0x70] sm:$0xff]  ;;  %vm461_vm0 = vcmask 130048  }
  0x50   : > { %1681 = vmatprep.subr.mxu0 %v374_v0  ;;  %v372_v2 = vld [vmem:[#allocation4 + $0x68] sm:$0xff]  ;;  %v371_v3 = vld [vmem:[#allocation4 + $0x60] sm:$0xff]  ;;  %v370_v5 = vld [vmem:[#allocation4 + $0x58] sm:$0xff]  ;;  %v2258_v20 = vmov 0.0   ;;  %vm2259_vm1 = vmmov 0  }
  0x51   : > { %s2610_s25 = smov (!%p344_p3, %s2306_s25), 1  ;;  %1682 = vmatpush3.msra.mxu0 %v374_v0  ;;  %v369_v6 = vld [vmem:[#allocation4 + $0x50] sm:$0xff]  ;;  %v368_v7 = vld [vmem:[#allocation4 + $0x48] sm:$0xff]  ;;  %v367_v8 = vld [vmem:[#allocation4 + $0x40] sm:$0xff] }
  0x52   : > { %s1504_s26 = sshll.u32 %s2610_s25, 4  ;;  %1683 = vmatprep.subr.mxu0 %v373_v1  ;;  %v366_v9 = vld [vmem:[#allocation4 + $0x38] sm:$0xff]  ;;  %v365_v10 = vld [vmem:[#allocation4 + $0x30] sm:$0xff]  ;;  %v364_v11 = vld [vmem:[#allocation4 + $0x28] sm:$0xff]  ;;  %s356_s23 = scalar_lea.vmem %s2605_s7, %s2610_s25 }
  0x53   : > { %s2405_s13 = scalar_lea.vmem %s2598_s0, %s1504_s26  ;;  %1684 = vmatpush3.msra.mxu0 %v373_v1  ;;  %v363_v12 = vld [vmem:[#allocation4 + $0x20] sm:$0xff]  ;;  %v362_v13 = vld [vmem:[#allocation4 + $0x18] sm:$0xff]  ;;  %v361_v14 = vld [vmem:[#allocation4 + $0x10] sm:$0xff]  ;;  %s353_s20 = scalar_lea.vmem %s2604_s6, %s1504_s26 }
  0x54   : > { %1685 = vmatprep.subr.mxu0 %v372_v2  ;;  %v357_v4 = vld [vmem:[%s2405_s13] sm:$0xff]  ;;  %v360_v15 = vld [vmem:[#allocation4 + $0x8] sm:$0xff]  ;;  %v359_v16 = vld [vmem:[#allocation4] sm:$0xff] }
  0x55   : > { %1686 = vmatpush3.msra.mxu0 %v372_v2  ;;  %1713 = vmatprep.mubr.f32.mxu0 %v357_v4  ;;  %v358_v17 = vld [vmem:[%s2405_s13 + $0x8] sm:$0xff]  ;;  %v459_v18 = vld [vmem:[#allocation2] sm:$0xff]  ;;  %v555_v23 = vld [vmem:[#allocation7 + $0x60] sm:$0xff] }
  0x56   : > { %1687 = vmatprep.subr.mxu0 %v371_v3  ;;  %1720 = vmatprep.mubr.msk.f32.mxu1 %vm461_vm0, %v459_v18  ;;  %v558_v19 = vld [vmem:[#allocation7 + $0x78] sm:$0xff]  ;;  %v557_v21 = vld [vmem:[#allocation7 + $0x70] sm:$0xff]  ;;  %v556_v22 = vld [vmem:[#allocation7 + $0x68] sm:$0xff] }
  0x57   : > { %1688 = vmatpush3.msra.mxu0 %v371_v3  ;;  %v554_v24 = vld [vmem:[#allocation7 + $0x58] sm:$0xff]  ;;  %v553_v25 = vld [vmem:[#allocation7 + $0x50] sm:$0xff]  ;;  %v552_v26 = vld [vmem:[#allocation7 + $0x48] sm:$0xff] }
  0x58   : > { %1689 = vmatprep.subr.mxu0 %v370_v5  ;;  %v551_v27 = vld [vmem:[#allocation7 + $0x40] sm:$0xff]  ;;  %v550_v28 = vld [vmem:[#allocation7 + $0x38] sm:$0xff]  ;;  %v549_v29 = vld [vmem:[#allocation7 + $0x30] sm:$0xff] }
  0x59   : > { %1690 = vmatpush3.msra.mxu0 %v370_v5  ;;  %v548_v30 = vld [vmem:[#allocation7 + $0x28] sm:$0xff]  ;;  %v547_v31 = vld [vmem:[#allocation7 + $0x20] sm:$0xff]  ;;  %v546_v32 = vld [vmem:[#allocation7 + $0x18] sm:$0xff] }
  0x5a   : > { %1691 = vmatprep.subr.mxu0 %v369_v6  ;;  %v545_v33 = vld [vmem:[#allocation7 + $0x10] sm:$0xff]  ;;  %v544_v34 = vld [vmem:[#allocation7 + $0x8] sm:$0xff]  ;;  %v1499_v35 = vld [vmem:[#allocation6] ss:$0 sm:$0xff] }
  0x5b   : > { %1692 = vmatpush3.msra.mxu0 %v369_v6  ;;  %v460_v40 = vld [vmem:[#allocation2 + $0x8] sm:$0x1]  ;;  %v575_v41 = vld [vmem:[#allocation7 + $0xf8] sm:$0xff]  ;;  %v573_v43 = vld [vmem:[#allocation7 + $0xe8] sm:$0xff] }
  0x5c   : > { %1693 = vmatprep.subr.mxu0 %v368_v7  ;;  %v574_v42 = vld [vmem:[#allocation7 + $0xf0] sm:$0xff]  ;;  %v572_v44 = vld [vmem:[#allocation7 + $0xe0] sm:$0xff]  ;;  %v571_v45 = vld [vmem:[#allocation7 + $0xd8] sm:$0xff] }
  0x5d   : > { %1694 = vmatpush3.msra.mxu0 %v368_v7  ;;  %v570_v46 = vld [vmem:[#allocation7 + $0xd0] sm:$0xff]  ;;  %v569_v47 = vld [vmem:[#allocation7 + $0xc8] sm:$0xff]  ;;  %v568_v48 = vld [vmem:[#allocation7 + $0xc0] sm:$0xff] }
  0x5e   : > { %1695 = vmatprep.subr.mxu0 %v367_v8  ;;  %v567_v49 = vld [vmem:[#allocation7 + $0xb8] sm:$0xff]  ;;  %v566_v50 = vld [vmem:[#allocation7 + $0xb0] sm:$0xff]  ;;  %v565_v51 = vld [vmem:[#allocation7 + $0xa8] sm:$0xff] }
  0x5f   : > { %1696 = vmatpush3.msra.mxu0 %v367_v8  ;;  %v564_v52 = vld [vmem:[#allocation7 + $0xa0] sm:$0xff]  ;;  %v563_v53 = vld [vmem:[#allocation7 + $0x98] sm:$0xff]  ;;  %v562_v54 = vld [vmem:[#allocation7 + $0x90] sm:$0xff] }
  0x60   : > { %1697 = vmatprep.subr.mxu0 %v366_v9  ;;  %v561_v55 = vld [vmem:[#allocation7 + $0x88] sm:$0xff]  ;;  %v543_v56 = vld [vmem:[#allocation7] sm:$0xff]  ;;  %v825_v59 = vld [vmem:[#allocation7 + $0x1f8] sm:$0xff] }
  0x61   : > { %1698 = vmatpush3.msra.mxu0 %v366_v9  ;;  %v560_v57 = vld [vmem:[#allocation7 + $0x80] sm:$0xff]  ;;  %v735_v62 = vld [vmem:[#allocation7 + $0x178] sm:$0xff]  ;;  %v824_v63 = vld [vmem:[#allocation7 + $0x1f0] sm:$0xff] }
  0x62   : > { %1699 = vmatprep.subr.mxu0 %v365_v10  ;;  %v734_v0 = vld [vmem:[#allocation7 + $0x170] sm:$0xff]  ;;  %v823_v1 = vld [vmem:[#allocation7 + $0x1e8] sm:$0xff]  ;;  %v822_v3 = vld [vmem:[#allocation7 + $0x1e0] sm:$0xff] }
  0x63   : > { %1700 = vmatpush3.msra.mxu0 %v365_v10  ;;  %v733_v2 = vld [vmem:[#allocation7 + $0x168] sm:$0xff]  ;;  %v732_v4 = vld [vmem:[#allocation7 + $0x160] sm:$0xff]  ;;  %v821_v5 = vld [vmem:[#allocation7 + $0x1d8] sm:$0xff] }
  0x64   : > { %1701 = vmatprep.subr.mxu0 %v364_v11  ;;  %v731_v6 = vld [vmem:[#allocation7 + $0x158] sm:$0xff]  ;;  %v820_v7 = vld [vmem:[#allocation7 + $0x1d0] sm:$0xff]  ;;  %v819_v9 = vld [vmem:[#allocation7 + $0x1c8] sm:$0xff] }
  0x65   : > { %1702 = vmatpush3.msra.mxu0 %v364_v11  ;;  %v730_v8 = vld [vmem:[#allocation7 + $0x150] sm:$0xff]  ;;  %v729_v10 = vld [vmem:[#allocation7 + $0x148] sm:$0xff]  ;;  %v818_v11 = vld [vmem:[#allocation7 + $0x1c0] sm:$0xff] }
  0x66   : > { %1703 = vmatprep.subr.mxu0 %v363_v12  ;;  %v725_v18 = vld [vmem:[#allocation7 + $0x128] sm:$0xff] }
  0x67   : > { %1704 = vmatpush3.msra.mxu0 %v363_v12  ;;  %v728_v12 = vld [vmem:[#allocation7 + $0x140] sm:$0xff] }
  0x68   : > { %1705 = vmatprep.subr.mxu0 %v362_v13 }
  0x69   : > { %1706 = vmatpush3.msra.mxu0 %v362_v13  ;;  %v817_v13 = vld [vmem:[#allocation7 + $0x1b8] sm:$0xff] }
  0x6a   : > { %1707 = vmatprep.subr.mxu0 %v361_v14 }
  0x6b   : > { %1708 = vmatpush3.msra.mxu0 %v361_v14  ;;  %v727_v14 = vld [vmem:[#allocation7 + $0x138] sm:$0xff] }
  0x6c   : > { %1709 = vmatprep.subr.mxu0 %v360_v15 }
  0x6d   : > { %1710 = vmatpush3.msra.mxu0 %v360_v15  ;;  %v816_v15 = vld [vmem:[#allocation7 + $0x1b0] sm:$0xff] }
  0x6e   : > { %1711 = vmatprep.subr.mxu0 %v359_v16 }
  0x6f   : > { %1712 = vmatpush3.msra.mxu0 %v359_v16  ;;  %v726_v16 = vld [vmem:[#allocation7 + $0x130] sm:$0xff] }
  0x70   : > { %1714 = vmatmul.mubr.f32.vlgmr.msra.gmra.mxu0 %v358_v17  ;;  %1758 = vmatprep.subr.mxu0 %v2258_v20  ;;  %v815_v17 = vld [vmem:[#allocation7 + $0x1a8] sm:$0xff] }
  0x71   : > { %1759 = vmatpush3.msra.mxu0 %v558_v19  ;;  %1790 = vmatprep.mubr.msk.f32.mxu0 %vm2259_vm1, %v2258_v20  ;;  %v814_v19 = vld [vmem:[#allocation7 + $0x1a0] sm:$0xff] }
  0x72   : > { %1760 = vmatprep.subr.mxu0 %v2258_v20 }
  0x73   : > { %1761 = vmatpush3.msra.mxu0 %v557_v21  ;;  %v724_v21 = vld [vmem:[#allocation7 + $0x120] sm:$0xff] }
  0x74   : > { %1762 = vmatprep.subr.mxu0 %v2258_v20 }
  0x75   : > { %1763 = vmatpush3.msra.mxu0 %v556_v22  ;;  %v813_v22 = vld [vmem:[#allocation7 + $0x198] sm:$0xff] }
  0x76   : > { %1764 = vmatprep.subr.mxu0 %v2258_v20 }
  0x77   : > { %1765 = vmatpush3.msra.mxu0 %v555_v23  ;;  %v723_v23 = vld [vmem:[#allocation7 + $0x118] sm:$0xff] }
  0x78   : > { %1766 = vmatprep.subr.mxu0 %v2258_v20 }
  0x79   : > { %1767 = vmatpush3.msra.mxu0 %v554_v24  ;;  %v812_v24 = vld [vmem:[#allocation7 + $0x190] sm:$0xff] }
  0x7a   : > { %1768 = vmatprep.subr.mxu0 %v2258_v20 }
  0x7b   : > { %1769 = vmatpush3.msra.mxu0 %v553_v25  ;;  %v722_v25 = vld [vmem:[#allocation7 + $0x110] sm:$0xff] }
  0x7c   : > { %1770 = vmatprep.subr.mxu0 %v2258_v20 }
  0x7d   : > { %1771 = vmatpush3.msra.mxu0 %v552_v26  ;;  %v811_v26 = vld [vmem:[#allocation7 + $0x188] sm:$0xff] }
  0x7e   : > { %1772 = vmatprep.subr.mxu0 %v2258_v20 }
  0x7f   : > { %1773 = vmatpush3.msra.mxu0 %v551_v27  ;;  %v721_v27 = vld [vmem:[#allocation7 + $0x108] sm:$0xff] }
  0x80   : > { %1774 = vmatprep.subr.mxu0 %v2258_v20 }
  0x81   : > { %1775 = vmatpush3.msra.mxu0 %v550_v28  ;;  %v810_v28 = vld [vmem:[#allocation7 + $0x180] sm:$0xff] }
  0x82   : > { %1776 = vmatprep.subr.mxu0 %v2258_v20 }
  0x83   : > { %1777 = vmatpush3.msra.mxu0 %v549_v29 }
  0x84   : > { %1778 = vmatprep.subr.mxu0 %v2258_v20 }
  0x85   : > { %1779 = vmatpush3.msra.mxu0 %v548_v30  ;;  %v720_v30 = vld [vmem:[#allocation7 + $0x100] sm:$0xff] }
  0x86   : > { %1780 = vmatprep.subr.mxu0 %v2258_v20 }
  0x87   : > { %1781 = vmatpush3.msra.mxu0 %v547_v31  ;;  %v1005_v31 = vld [vmem:[#allocation7 + $0x2f8] sm:$0xff] }
  0x88   : > { %1782 = vmatprep.subr.mxu0 %v2258_v20 }
  0x89   : > { %1783 = vmatpush3.msra.mxu0 %v546_v32 }
  0x8a   : > { %1784 = vmatprep.subr.mxu0 %v2258_v20 }
  0x8b   : > { %1785 = vmatpush3.msra.mxu0 %v545_v33  ;;  %v915_v33 = vld [vmem:[#allocation7 + $0x278] sm:$0xff] }
  0x8c   : > { %1786 = vmatprep.subr.mxu0 %v2258_v20 }
  0x8d   : > { %1787 = vmatpush3.msra.mxu0 %v544_v34  ;;  %v1004_v34 = vld [vmem:[#allocation7 + $0x2f0] sm:$0xff] }
  0x8e   : > { %1788 = vmatprep.subr.mxu0 %v2258_v20 }
  0x8f   : > { %1789 = vmatpush3.msra.mxu0 %v543_v56  ;;  %v993_v56 = vld [vmem:[#allocation7 + $0x298] sm:$0xff] }
  0x90   : > { %1828 = vmatprep.subr.mxu0 %v2258_v20 }
 0x130   : > { %v1715_v36 = vpop.f32.mrf.mxu0 }
 0x131   : > { %v454_v37 = vadd.f32 %v1715_v36, %v1499_v35  ;;  %v1003_v36 = vld [vmem:[#allocation7 + $0x2e8] sm:$0xff] }
 0x132   : > { %v448_v38 = vpop.f32.mrf.mxu0 }
 0x133   : > { %458 = vst [vmem:[%s353_s20 + $0x8] sm:$0xff] %v454_v37  ;;  %v449_v39 = vadd.f32 %v1499_v35, %v448_v38  ;;  %1716 = vmatprep.subr.mxu1 %v454_v37  ;;  %v914_v35 = vld [vmem:[#allocation7 + $0x270] sm:$0xff]  ;;  %v1002_v38 = vld [vmem:[#allocation7 + $0x2e0] sm:$0xff] }
 0x134   : > { %1717 = vmatpush3.msra.mxu1 %v454_v37  ;;  %v913_v37 = vld [vmem:[#allocation7 + $0x268] sm:$0xff] }
 0x135   : > { %457 = vst [vmem:[%s353_s20] sm:$0xff] %v449_v39  ;;  %1718 = vmatprep.subr.mxu1 %v449_v39 }
 0x136   : > { %1719 = vmatpush3.msra.mxu1 %v449_v39  ;;  %v912_v39 = vld [vmem:[#allocation7 + $0x260] sm:$0xff] }
 0x137   : > { %1721 = vmatmul.mubr.msk.f32.vlgmr.msra.gmra.mxu1 %vm461_vm0, %v460_v40  ;;  %1723 = vmatprep.subr.mxu1 %v2258_v20  ;;  %v1001_v40 = vld [vmem:[#allocation7 + $0x2d8] sm:$0xff] }
 0x138   : > { %1724 = vmatpush3.msra.mxu1 %v575_v41  ;;  %1755 = vmatprep.mubr.msk.f32.mxu1 %vm2259_vm1, %v2258_v20  ;;  %v911_v41 = vld [vmem:[#allocation7 + $0x258] sm:$0xff] }
 0x139   : > { %1725 = vmatprep.subr.mxu1 %v2258_v20 }
 0x13a   : > { %1726 = vmatpush3.msra.mxu1 %v574_v42  ;;  %v1000_v42 = vld [vmem:[#allocation7 + $0x2d0] sm:$0xff] }
 0x13b   : > { %1727 = vmatprep.subr.mxu1 %v2258_v20 }
 0x13c   : > { %1728 = vmatpush3.msra.mxu1 %v573_v43  ;;  %v910_v43 = vld [vmem:[#allocation7 + $0x250] sm:$0xff] }
 0x13d   : > { %1729 = vmatprep.subr.mxu1 %v2258_v20 }
 0x13e   : > { %1730 = vmatpush3.msra.mxu1 %v572_v44  ;;  %v999_v44 = vld [vmem:[#allocation7 + $0x2c8] sm:$0xff] }
 0x13f   : > { %1731 = vmatprep.subr.mxu1 %v2258_v20 }
 0x140   : > { %1732 = vmatpush3.msra.mxu1 %v571_v45  ;;  %v909_v45 = vld [vmem:[#allocation7 + $0x248] sm:$0xff] }
 0x141   : > { %1733 = vmatprep.subr.mxu1 %v2258_v20 }
 0x142   : > { %1734 = vmatpush3.msra.mxu1 %v570_v46  ;;  %v998_v46 = vld [vmem:[#allocation7 + $0x2c0] sm:$0xff] }
 0x143   : > { %1735 = vmatprep.subr.mxu1 %v2258_v20 }
 0x144   : > { %1736 = vmatpush3.msra.mxu1 %v569_v47  ;;  %v908_v47 = vld [vmem:[#allocation7 + $0x240] sm:$0xff] }
 0x145   : > { %1737 = vmatprep.subr.mxu1 %v2258_v20 }
 0x146   : > { %1738 = vmatpush3.msra.mxu1 %v568_v48  ;;  %v997_v48 = vld [vmem:[#allocation7 + $0x2b8] sm:$0xff] }
 0x147   : > { %1739 = vmatprep.subr.mxu1 %v2258_v20 }
 0x148   : > { %1740 = vmatpush3.msra.mxu1 %v567_v49  ;;  %v907_v49 = vld [vmem:[#allocation7 + $0x238] sm:$0xff] }
 0x149   : > { %1741 = vmatprep.subr.mxu1 %v2258_v20 }
 0x14a   : > { %1742 = vmatpush3.msra.mxu1 %v566_v50  ;;  %v996_v50 = vld [vmem:[#allocation7 + $0x2b0] sm:$0xff] }
 0x14b   : > { %1743 = vmatprep.subr.mxu1 %v2258_v20 }
 0x14c   : > { %1744 = vmatpush3.msra.mxu1 %v565_v51  ;;  %v906_v51 = vld [vmem:[#allocation7 + $0x230] sm:$0xff] }
 0x14d   : > { %1745 = vmatprep.subr.mxu1 %v2258_v20 }
 0x14e   : > { %1746 = vmatpush3.msra.mxu1 %v564_v52  ;;  %v995_v52 = vld [vmem:[#allocation7 + $0x2a8] sm:$0xff] }
 0x14f   : > { %1747 = vmatprep.subr.mxu1 %v2258_v20 }
 0x150   : > { %1748 = vmatpush3.msra.mxu1 %v563_v53  ;;  %v905_v53 = vld [vmem:[#allocation7 + $0x228] sm:$0xff] }
 0x151   : > { %1749 = vmatprep.subr.mxu1 %v2258_v20 }
 0x152   : > { %1750 = vmatpush3.msra.mxu1 %v562_v54  ;;  %v994_v54 = vld [vmem:[#allocation7 + $0x2a0] sm:$0xff] }
 0x153   : > { %1751 = vmatprep.subr.mxu1 %v2258_v20 }
 0x154   : > { %1752 = vmatpush3.msra.mxu1 %v561_v55  ;;  %v904_v55 = vld [vmem:[#allocation7 + $0x220] sm:$0xff] }
 0x155   : > { %1753 = vmatprep.subr.mxu1 %v2258_v20 }
 0x156   : > { %1754 = vmatpush3.msra.mxu1 %v560_v57  ;;  %v903_v57 = vld [vmem:[#allocation7 + $0x218] sm:$0xff] }
 0x157   : > { %1793 = vmatprep.subr.mxu1 %v2258_v20 }
 0x1f7   : > { %v2454_v58 = vpop.f32.mrf.mxu1 }
 0x1f9   : > { %v2456_v60 = vpop.f32.mrf.mxu1 }
 0x1fa   : > { %1791 = vmatmul.mubr.f32.vlgmr.msra.gmra.mxu0 %v2456_v60  ;;  %v577_v61 = vrot.slane %v2456_v60, 1  ;;  %v826_v29 = vrot.slane %v2456_v60, 3  ;;  %v736_v32 = vrot.slane %v2456_v60, 2 }
 0x1fb   : > { %1829 = vmatpush3.msra.mxu0 %v825_v59  ;;  %1860 = vmatprep.mubr.msk.f32.mxu0 %vm2259_vm1, %v2258_v20  ;;  %v992_v59 = vld [vmem:[#allocation7 + $0x290] sm:$0xff] }
 0x1fc   : > { %1830 = vmatprep.subr.mxu0 %v2258_v20  ;;  %1756 = vmatmul.mubr.f32.vlgmr.msra.gmra.mxu1 %v577_v61  ;;  %v902_v61 = vld [vmem:[#allocation7 + $0x210] sm:$0xff] }
 0x1fd   : > { %1794 = vmatpush3.msra.mxu1 %v735_v62  ;;  %1831 = vmatpush3.msra.mxu0 %v824_v63  ;;  %v991_v62 = vld [vmem:[#allocation7 + $0x288] sm:$0xff] }
 0x1fe   : > { %1795 = vmatprep.subr.mxu1 %v2258_v20  ;;  %1832 = vmatprep.subr.mxu0 %v2258_v20  ;;  %v901_v63 = vld [vmem:[#allocation7 + $0x208] sm:$0xff] }
 0x1ff   : > { %1796 = vmatpush3.msra.mxu1 %v734_v0  ;;  %1833 = vmatpush3.msra.mxu0 %v823_v1  ;;  %v990_v0 = vld [vmem:[#allocation7 + $0x280] sm:$0xff]  ;;  %v1006_v1 = vrot.slane %v2456_v60, 5 }
 0x200   : > { %1797 = vmatprep.subr.mxu1 %v2258_v20  ;;  %1834 = vmatprep.subr.mxu0 %v2258_v20 }
 0x201   : > { %1798 = vmatpush3.msra.mxu1 %v733_v2  ;;  %1835 = vmatpush3.msra.mxu0 %v822_v3  ;;  %v900_v2 = vld [vmem:[#allocation7 + $0x200] sm:$0xff]  ;;  %v1185_v3 = vld [vmem:[#allocation7 + $0x3f8] sm:$0xff] }
 0x202   : > { %1799 = vmatprep.subr.mxu1 %v2258_v20  ;;  %1836 = vmatprep.subr.mxu0 %v2258_v20 }
 0x203   : > { %1800 = vmatpush3.msra.mxu1 %v732_v4  ;;  %1837 = vmatpush3.msra.mxu0 %v821_v5  ;;  %v916_v4 = vrot.slane %v2456_v60, 4  ;;  %v1095_v5 = vld [vmem:[#allocation7 + $0x378] sm:$0xff] }
 0x204   : > { %1801 = vmatprep.subr.mxu1 %v2258_v20  ;;  %1838 = vmatprep.subr.mxu0 %v2258_v20 }
 0x205   : > { %1802 = vmatpush3.msra.mxu1 %v731_v6  ;;  %1839 = vmatpush3.msra.mxu0 %v820_v7  ;;  %v1184_v6 = vld [vmem:[#allocation7 + $0x3f0] sm:$0xff] }
 0x206   : > { %1803 = vmatprep.subr.mxu1 %v2258_v20  ;;  %1840 = vmatprep.subr.mxu0 %v2258_v20  ;;  %v1094_v7 = vld [vmem:[#allocation7 + $0x370] sm:$0xff] }
 0x207   : > { %1804 = vmatpush3.msra.mxu1 %v730_v8  ;;  %1841 = vmatpush3.msra.mxu0 %v819_v9  ;;  %v1183_v8 = vld [vmem:[#allocation7 + $0x3e8] sm:$0xff] }
 0x208   : > { %1805 = vmatprep.subr.mxu1 %v2258_v20  ;;  %1842 = vmatprep.subr.mxu0 %v2258_v20  ;;  %v1093_v9 = vld [vmem:[#allocation7 + $0x368] sm:$0xff] }
 0x209   : > { %1806 = vmatpush3.msra.mxu1 %v729_v10  ;;  %1843 = vmatpush3.msra.mxu0 %v818_v11  ;;  %v1182_v10 = vld [vmem:[#allocation7 + $0x3e0] sm:$0xff] }
 0x20a   : > { %1807 = vmatprep.subr.mxu1 %v2258_v20  ;;  %1844 = vmatprep.subr.mxu0 %v2258_v20  ;;  %v1092_v11 = vld [vmem:[#allocation7 + $0x360] sm:$0xff] }
 0x20b   : > { %1808 = vmatpush3.msra.mxu1 %v728_v12  ;;  %1845 = vmatpush3.msra.mxu0 %v817_v13  ;;  %v1181_v12 = vld [vmem:[#allocation7 + $0x3d8] sm:$0xff] }
 0x20c   : > { %1809 = vmatprep.subr.mxu1 %v2258_v20  ;;  %1846 = vmatprep.subr.mxu0 %v2258_v20  ;;  %v1091_v13 = vld [vmem:[#allocation7 + $0x358] sm:$0xff] }
 0x20d   : > { %1810 = vmatpush3.msra.mxu1 %v727_v14  ;;  %1847 = vmatpush3.msra.mxu0 %v816_v15  ;;  %v1180_v14 = vld [vmem:[#allocation7 + $0x3d0] sm:$0xff] }
 0x20e   : > { %1811 = vmatprep.subr.mxu1 %v2258_v20  ;;  %1848 = vmatprep.subr.mxu0 %v2258_v20  ;;  %v1090_v15 = vld [vmem:[#allocation7 + $0x350] sm:$0xff] }
 0x20f   : > { %1812 = vmatpush3.msra.mxu1 %v726_v16  ;;  %1849 = vmatpush3.msra.mxu0 %v815_v17  ;;  %v1179_v16 = vld [vmem:[#allocation7 + $0x3c8] sm:$0xff] }
 0x210   : > { %1813 = vmatprep.subr.mxu1 %v2258_v20  ;;  %1850 = vmatprep.subr.mxu0 %v2258_v20  ;;  %v1089_v17 = vld [vmem:[#allocation7 + $0x348] sm:$0xff] }
 0x211   : > { %1814 = vmatpush3.msra.mxu1 %v725_v18  ;;  %1851 = vmatpush3.msra.mxu0 %v814_v19  ;;  %v1178_v18 = vld [vmem:[#allocation7 + $0x3c0] sm:$0xff] }
 0x212   : > { %1815 = vmatprep.subr.mxu1 %v2258_v20  ;;  %1852 = vmatprep.subr.mxu0 %v2258_v20  ;;  %v1088_v19 = vld [vmem:[#allocation7 + $0x340] sm:$0xff] }
 0x213   : > { %1816 = vmatpush3.msra.mxu1 %v724_v21  ;;  %1853 = vmatpush3.msra.mxu0 %v813_v22  ;;  %v1177_v21 = vld [vmem:[#allocation7 + $0x3b8] sm:$0xff] }
 0x214   : > { %1817 = vmatprep.subr.mxu1 %v2258_v20  ;;  %1854 = vmatprep.subr.mxu0 %v2258_v20  ;;  %v1087_v22 = vld [vmem:[#allocation7 + $0x338] sm:$0xff] }
 0x215   : > { %1818 = vmatpush3.msra.mxu1 %v723_v23  ;;  %1855 = vmatpush3.msra.mxu0 %v812_v24  ;;  %v1176_v23 = vld [vmem:[#allocation7 + $0x3b0] sm:$0xff] }
 0x216   : > { %1819 = vmatprep.subr.mxu1 %v2258_v20  ;;  %1856 = vmatprep.subr.mxu0 %v2258_v20  ;;  %v1086_v24 = vld [vmem:[#allocation7 + $0x330] sm:$0xff] }
 0x217   : > { %1820 = vmatpush3.msra.mxu1 %v722_v25  ;;  %1857 = vmatpush3.msra.mxu0 %v811_v26  ;;  %v1175_v25 = vld [vmem:[#allocation7 + $0x3a8] sm:$0xff] }
 0x218   : > { %1821 = vmatprep.subr.mxu1 %v2258_v20  ;;  %1858 = vmatprep.subr.mxu0 %v2258_v20  ;;  %v1085_v26 = vld [vmem:[#allocation7 + $0x328] sm:$0xff] }
 0x219   : > { %1822 = vmatpush3.msra.mxu1 %v721_v27  ;;  %1859 = vmatpush3.msra.mxu0 %v810_v28  ;;  %v1174_v27 = vld [vmem:[#allocation7 + $0x3a0] sm:$0xff] }
 0x21a   : > { %1823 = vmatprep.subr.mxu1 %v2258_v20  ;;  %1861 = vmatmul.mubr.f32.vlgmr.msra.gmra.mxu0 %v826_v29  ;;  %v1084_v28 = vld [vmem:[#allocation7 + $0x320] sm:$0xff]  ;;  %v1173_v29 = vld [vmem:[#allocation7 + $0x398] sm:$0xff] }
 0x21b   : > { %1898 = vmatprep.subr.mxu0 %v2258_v20  ;;  %1824 = vmatpush3.msra.mxu1 %v720_v30  ;;  %v1083_v30 = vld [vmem:[#allocation7 + $0x318] sm:$0xff] }
 0x21c   : > { %1825 = vmatprep.mubr.msk.f32.mxu1 %vm2259_vm1, %v2258_v20  ;;  %1899 = vmatpush3.msra.mxu0 %v1005_v31  ;;  %v1172_v31 = vld [vmem:[#allocation7 + $0x390] sm:$0xff] }
 0x21d   : > { %1826 = vmatmul.mubr.f32.vlgmr.msra.gmra.mxu1 %v736_v32  ;;  %1863 = vmatprep.subr.mxu1 %v2258_v20  ;;  %v1082_v32 = vld [vmem:[#allocation7 + $0x310] sm:$0xff] }
 0x21e   : > { %1900 = vmatprep.subr.mxu0 %v2258_v20  ;;  %1864 = vmatpush3.msra.mxu1 %v915_v33  ;;  %v1171_v33 = vld [vmem:[#allocation7 + $0x388] sm:$0xff] }
 0x21f   : > { %1901 = vmatpush3.msra.mxu0 %v1004_v34  ;;  %1865 = vmatprep.subr.mxu1 %v2258_v20  ;;  %v1081_v34 = vld [vmem:[#allocation7 + $0x308] sm:$0xff] }
 0x220   : > { %1902 = vmatprep.subr.mxu0 %v2258_v20  ;;  %1866 = vmatpush3.msra.mxu1 %v914_v35  ;;  %v1170_v35 = vld [vmem:[#allocation7 + $0x380] sm:$0xff] }
 0x221   : > { %1903 = vmatpush3.msra.mxu0 %v1003_v36  ;;  %1867 = vmatprep.subr.mxu1 %v2258_v20  ;;  %v1186_v36 = vrot.slane %v2456_v60, 7 }
 0x222   : > { %1904 = vmatprep.subr.mxu0 %v2258_v20  ;;  %1868 = vmatpush3.msra.mxu1 %v913_v37  ;;  %v1080_v37 = vld [vmem:[#allocation7 + $0x300] sm:$0xff] }
 0x223   : > { %1905 = vmatpush3.msra.mxu0 %v1002_v38  ;;  %1869 = vmatprep.subr.mxu1 %v2258_v20  ;;  %v1096_v38 = vrot.slane %v2456_v60, 6  ;;  %v1272_v60 = vld [vmem:[#allocation7 + $0x460] sm:$0xff] }
 0x224   : > { %1906 = vmatprep.subr.mxu0 %v2258_v20  ;;  %1870 = vmatpush3.msra.mxu1 %v912_v39  ;;  %v1275_v39 = vld [vmem:[#allocation7 + $0x478] sm:$0xff] }
 0x225   : > { %1907 = vmatpush3.msra.mxu0 %v1001_v40  ;;  %1871 = vmatprep.subr.mxu1 %v2258_v20  ;;  %v1274_v40 = vld [vmem:[#allocation7 + $0x470] sm:$0xff] }
 0x226   : > { %1908 = vmatprep.subr.mxu0 %v2258_v20  ;;  %1872 = vmatpush3.msra.mxu1 %v911_v41  ;;  %v1273_v41 = vld [vmem:[#allocation7 + $0x468] sm:$0xff] }
 0x227   : > { %1909 = vmatpush3.msra.mxu0 %v1000_v42  ;;  %1873 = vmatprep.subr.mxu1 %v2258_v20  ;;  %v1271_v42 = vld [vmem:[#allocation7 + $0x458] sm:$0xff] }
 0x228   : > { %1910 = vmatprep.subr.mxu0 %v2258_v20  ;;  %1874 = vmatpush3.msra.mxu1 %v910_v43  ;;  %v1270_v43 = vld [vmem:[#allocation7 + $0x450] sm:$0xff] }
 0x229   : > { %1911 = vmatpush3.msra.mxu0 %v999_v44  ;;  %1875 = vmatprep.subr.mxu1 %v2258_v20  ;;  %v1269_v44 = vld [vmem:[#allocation7 + $0x448] sm:$0xff] }
 0x22a   : > { %1912 = vmatprep.subr.mxu0 %v2258_v20  ;;  %1876 = vmatpush3.msra.mxu1 %v909_v45  ;;  %v1268_v45 = vld [vmem:[#allocation7 + $0x440] sm:$0xff] }
 0x22b   : > { %1913 = vmatpush3.msra.mxu0 %v998_v46  ;;  %1877 = vmatprep.subr.mxu1 %v2258_v20  ;;  %v1267_v46 = vld [vmem:[#allocation7 + $0x438] sm:$0xff] }
 0x22c   : > { %1914 = vmatprep.subr.mxu0 %v2258_v20  ;;  %1878 = vmatpush3.msra.mxu1 %v908_v47  ;;  %v1266_v47 = vld [vmem:[#allocation7 + $0x430] sm:$0xff] }
 0x22d   : > { %1915 = vmatpush3.msra.mxu0 %v997_v48  ;;  %1879 = vmatprep.subr.mxu1 %v2258_v20  ;;  %v1265_v48 = vld [vmem:[#allocation7 + $0x428] sm:$0xff] }
 0x22e   : > { %1916 = vmatprep.subr.mxu0 %v2258_v20  ;;  %1880 = vmatpush3.msra.mxu1 %v907_v49  ;;  %v1264_v49 = vld [vmem:[#allocation7 + $0x420] sm:$0xff] }
 0x22f   : > { %1917 = vmatpush3.msra.mxu0 %v996_v50  ;;  %1881 = vmatprep.subr.mxu1 %v2258_v20  ;;  %v1263_v50 = vld [vmem:[#allocation7 + $0x418] sm:$0xff] }
 0x230   : > { %1918 = vmatprep.subr.mxu0 %v2258_v20  ;;  %1882 = vmatpush3.msra.mxu1 %v906_v51  ;;  %v1262_v51 = vld [vmem:[#allocation7 + $0x410] sm:$0xff] }
 0x231   : > { %1919 = vmatpush3.msra.mxu0 %v995_v52  ;;  %1883 = vmatprep.subr.mxu1 %v2258_v20  ;;  %v1261_v52 = vld [vmem:[#allocation7 + $0x408] sm:$0xff] }
 0x232   : > { %1920 = vmatprep.subr.mxu0 %v2258_v20  ;;  %1884 = vmatpush3.msra.mxu1 %v905_v53  ;;  %v1260_v53 = vld [vmem:[#allocation7 + $0x400] sm:$0xff] }
 0x233   : > { %1921 = vmatpush3.msra.mxu0 %v994_v54  ;;  %1885 = vmatprep.subr.mxu1 %v2258_v20 }
 0x234   : > { %1922 = vmatprep.subr.mxu0 %v2258_v20  ;;  %1886 = vmatpush3.msra.mxu1 %v904_v55 }
 0x235   : > { %1923 = vmatpush3.msra.mxu0 %v993_v56  ;;  %1887 = vmatprep.subr.mxu1 %v2258_v20 }
 0x236   : > { %1924 = vmatprep.subr.mxu0 %v2258_v20  ;;  %1888 = vmatpush3.msra.mxu1 %v903_v57 }
 0x237   : > { %1925 = vmatpush3.msra.mxu0 %v992_v59  ;;  %1889 = vmatprep.subr.mxu1 %v2258_v20 }
 0x238   : > { %1926 = vmatprep.subr.mxu0 %v2258_v20  ;;  %1890 = vmatpush3.msra.mxu1 %v902_v61 }
 0x239   : > { %1927 = vmatpush3.msra.mxu0 %v991_v62  ;;  %1891 = vmatprep.subr.mxu1 %v2258_v20 }
 0x23a   : > { %1928 = vmatprep.subr.mxu0 %v2258_v20  ;;  %1892 = vmatpush3.msra.mxu1 %v901_v63 }
 0x23b   : > { %1929 = vmatpush3.msra.mxu0 %v990_v0  ;;  %1930 = vmatprep.mubr.msk.f32.mxu0 %vm2259_vm1, %v2258_v20 }
 0x23c   : > { %1893 = vmatprep.subr.mxu1 %v2258_v20  ;;  %1931 = vmatmul.mubr.f32.vlgmr.msra.gmra.mxu0 %v1006_v1 }
 0x23d   : > { %1968 = vmatprep.subr.mxu0 %v2258_v20  ;;  %1894 = vmatpush3.msra.mxu1 %v900_v2 }
 0x23e   : > { %1895 = vmatprep.mubr.msk.f32.mxu1 %vm2259_vm1, %v2258_v20  ;;  %1969 = vmatpush3.msra.mxu0 %v1185_v3 }
 0x23f   : > { %1896 = vmatmul.mubr.f32.vlgmr.msra.gmra.mxu1 %v916_v4  ;;  %1933 = vmatprep.subr.mxu1 %v2258_v20 }
 0x240   : > { %1970 = vmatprep.subr.mxu0 %v2258_v20  ;;  %1934 = vmatpush3.msra.mxu1 %v1095_v5 }
 0x241   : > { %1971 = vmatpush3.msra.mxu0 %v1184_v6  ;;  %1935 = vmatprep.subr.mxu1 %v2258_v20 }
 0x242   : > { %1972 = vmatprep.subr.mxu0 %v2258_v20  ;;  %1936 = vmatpush3.msra.mxu1 %v1094_v7 }
 0x243   : > { %1973 = vmatpush3.msra.mxu0 %v1183_v8  ;;  %1937 = vmatprep.subr.mxu1 %v2258_v20 }
 0x244   : > { %1974 = vmatprep.subr.mxu0 %v2258_v20  ;;  %1938 = vmatpush3.msra.mxu1 %v1093_v9 }
 0x245   : > { %1975 = vmatpush3.msra.mxu0 %v1182_v10  ;;  %1939 = vmatprep.subr.mxu1 %v2258_v20 }
 0x246   : > { %1976 = vmatprep.subr.mxu0 %v2258_v20  ;;  %1940 = vmatpush3.msra.mxu1 %v1092_v11 }
 0x247   : > { %1977 = vmatpush3.msra.mxu0 %v1181_v12  ;;  %1941 = vmatprep.subr.mxu1 %v2258_v20 }
 0x248   : > { %1978 = vmatprep.subr.mxu0 %v2258_v20  ;;  %1942 = vmatpush3.msra.mxu1 %v1091_v13 }
 0x249   : > { %1979 = vmatpush3.msra.mxu0 %v1180_v14  ;;  %1943 = vmatprep.subr.mxu1 %v2258_v20  ;;  %v1347_v14 = vld [vmem:[#allocation9] sm:$0x1] }
 0x24a   : > { %1980 = vmatprep.subr.mxu0 %v2258_v20  ;;  %1944 = vmatpush3.msra.mxu1 %v1090_v15 }
 0x24b   : > { %1981 = vmatpush3.msra.mxu0 %v1179_v16  ;;  %1945 = vmatprep.subr.mxu1 %v2258_v20 }
 0x24c   : > { %1982 = vmatprep.subr.mxu0 %v2258_v20  ;;  %1946 = vmatpush3.msra.mxu1 %v1089_v17 }
 0x24d   : > { %1983 = vmatpush3.msra.mxu0 %v1178_v18  ;;  %1947 = vmatprep.subr.mxu1 %v2258_v20 }
 0x24e   : > { %1984 = vmatprep.subr.mxu0 %v2258_v20  ;;  %1948 = vmatpush3.msra.mxu1 %v1088_v19 }
 0x24f   : > { %1985 = vmatpush3.msra.mxu0 %v1177_v21  ;;  %1949 = vmatprep.subr.mxu1 %v2258_v20 }
 0x250   : > { %1986 = vmatprep.subr.mxu0 %v2258_v20  ;;  %1950 = vmatpush3.msra.mxu1 %v1087_v22 }
 0x251   : > { %1987 = vmatpush3.msra.mxu0 %v1176_v23  ;;  %1951 = vmatprep.subr.mxu1 %v2258_v20 }
 0x252   : > { %1988 = vmatprep.subr.mxu0 %v2258_v20  ;;  %1952 = vmatpush3.msra.mxu1 %v1086_v24 }
 0x253   : > { %1989 = vmatpush3.msra.mxu0 %v1175_v25  ;;  %1953 = vmatprep.subr.mxu1 %v2258_v20 }
 0x254   : > { %1990 = vmatprep.subr.mxu0 %v2258_v20  ;;  %1954 = vmatpush3.msra.mxu1 %v1085_v26 }
 0x255   : > { %1991 = vmatpush3.msra.mxu0 %v1174_v27  ;;  %1955 = vmatprep.subr.mxu1 %v2258_v20 }
 0x256   : > { %1992 = vmatprep.subr.mxu0 %v2258_v20  ;;  %1956 = vmatpush3.msra.mxu1 %v1084_v28 }
 0x257   : > { %1993 = vmatpush3.msra.mxu0 %v1173_v29  ;;  %1957 = vmatprep.subr.mxu1 %v2258_v20 }
 0x258   : > { %1994 = vmatprep.subr.mxu0 %v2258_v20  ;;  %1958 = vmatpush3.msra.mxu1 %v1083_v30 }
 0x259   : > { %1995 = vmatpush3.msra.mxu0 %v1172_v31  ;;  %1959 = vmatprep.subr.mxu1 %v2258_v20 }
 0x25a   : > { %1996 = vmatprep.subr.mxu0 %v2258_v20  ;;  %1960 = vmatpush3.msra.mxu1 %v1082_v32 }
 0x25b   : > { %1997 = vmatpush3.msra.mxu0 %v1171_v33  ;;  %1961 = vmatprep.subr.mxu1 %v2258_v20 }
 0x25c   : > { %1998 = vmatprep.subr.mxu0 %v2258_v20  ;;  %1962 = vmatpush3.msra.mxu1 %v1081_v34 }
 0x25d   : > { %1999 = vmatpush3.msra.mxu0 %v1170_v35  ;;  %2000 = vmatprep.mubr.msk.f32.mxu0 %vm2259_vm1, %v2258_v20 }
 0x25e   : > { %1963 = vmatprep.subr.mxu1 %v2258_v20  ;;  %2001 = vmatmul.mubr.f32.vlgmr.msra.gmra.mxu0 %v1186_v36 }
 0x25f   : > { %1964 = vmatpush3.msra.mxu1 %v1080_v37  ;;  %1965 = vmatprep.mubr.msk.f32.mxu1 %vm2259_vm1, %v2258_v20 }
 0x260   : > { %1966 = vmatmul.mubr.f32.vlgmr.msra.gmra.mxu1 %v1096_v38  ;;  %2003 = vmatprep.subr.mxu1 %v2258_v20 }
 0x261   : > { %2004 = vmatpush3.msra.mxu1 %v1275_v39  ;;  %2035 = vmatprep.mubr.msk.f32.mxu1 %vm2259_vm1, %v2258_v20 }
 0x262   : > { %2005 = vmatprep.subr.mxu1 %v2258_v20 }
 0x263   : > { %2006 = vmatpush3.msra.mxu1 %v1274_v40 }
 0x264   : > { %2007 = vmatprep.subr.mxu1 %v2258_v20 }
 0x265   : > { %2008 = vmatpush3.msra.mxu1 %v1273_v41 }
 0x266   : > { %2009 = vmatprep.subr.mxu1 %v2258_v20 }
 0x267   : > { %2010 = vmatpush3.msra.mxu1 %v1272_v60 }
 0x268   : > { %2011 = vmatprep.subr.mxu1 %v2258_v20 }
 0x269   : > { %2012 = vmatpush3.msra.mxu1 %v1271_v42 }
 0x26a   : > { %2013 = vmatprep.subr.mxu1 %v2258_v20 }
 0x26b   : > { %2014 = vmatpush3.msra.mxu1 %v1270_v43 }
 0x26c   : > { %2015 = vmatprep.subr.mxu1 %v2258_v20 }
 0x26d   : > { %2016 = vmatpush3.msra.mxu1 %v1269_v44 }
 0x26e   : > { %2017 = vmatprep.subr.mxu1 %v2258_v20 }
 0x26f   : > { %2018 = vmatpush3.msra.mxu1 %v1268_v45 }
 0x270   : > { %2019 = vmatprep.subr.mxu1 %v2258_v20 }
 0x271   : > { %2020 = vmatpush3.msra.mxu1 %v1267_v46 }
 0x272   : > { %2021 = vmatprep.subr.mxu1 %v2258_v20 }
 0x273   : > { %2022 = vmatpush3.msra.mxu1 %v1266_v47 }
 0x274   : > { %2023 = vmatprep.subr.mxu1 %v2258_v20 }
 0x275   : > { %2024 = vmatpush3.msra.mxu1 %v1265_v48 }
 0x276   : > { %2025 = vmatprep.subr.mxu1 %v2258_v20 }
 0x277   : > { %2026 = vmatpush3.msra.mxu1 %v1264_v49 }
 0x278   : > { %2027 = vmatprep.subr.mxu1 %v2258_v20 }
 0x279   : > { %2028 = vmatpush3.msra.mxu1 %v1263_v50 }
 0x27a   : > { %2029 = vmatprep.subr.mxu1 %v2258_v20 }
 0x27b   : > { %2030 = vmatpush3.msra.mxu1 %v1262_v51 }
 0x27c   : > { %2031 = vmatprep.subr.mxu1 %v2258_v20 }
 0x27d   : > { %2032 = vmatpush3.msra.mxu1 %v1261_v52 }
 0x27e   : > { %2033 = vmatprep.subr.mxu1 %v2258_v20 }
 0x27f   : > { %2034 = vmatpush3.msra.mxu1 %v1260_v53 }
 0x280   : > { %2036 = vmatmul.mubr.f32.vlgmr.msra.gmra.mxu1 %v2454_v58 }
 0x2ba   : > { %v715_v54 = vpop.f32.mrf.mxu0 }
 0x2bc   : > { %v645_v55 = vpop.f32.mrf.mxu1  ;;  %v1792_v56 = vpop.f32.mrf.mxu0 }
 0x2bd   : > { %v716_v57 = vadd.f32 %v715_v54, %v645_v55 }
 0x2be   : > { %v1757_v59 = vpop.f32.mrf.mxu1 }
 0x2da   : > { %v894_v61 = vpop.f32.mrf.mxu0 }
 0x2dc   : > { %v1862_v62 = vpop.f32.mrf.mxu0 }
 0x2dd   : > { %v804_v63 = vpop.f32.mrf.mxu1 }
 0x2de   : > { %v808_v0 = vadd.f32 %v804_v63, %v716_v57 }
 0x2df   : > { %v1827_v1 = vpop.f32.mrf.mxu1 }
 0x2e0   : > { %v898_v2 = vadd.f32 %v894_v61, %v808_v0 }
 0x2fc   : > { %v1074_v3 = vpop.f32.mrf.mxu0 }
 0x2fe   : > { %v1932_v4 = vpop.f32.mrf.mxu0 }
 0x2ff   : > { %v984_v5 = vpop.f32.mrf.mxu1 }
 0x300   : > { %v988_v9 = vadd.f32 %v984_v5, %v898_v2 }
 0x301   : > { %v1897_v6 = vpop.f32.mrf.mxu1 }
 0x302   : > { %v1078_v10 = vadd.f32 %v1074_v3, %v988_v9 }
 0x31e   : > { %v1254_v20 = vpop.f32.mrf.mxu0 }
 0x320   : > { %v1164_v7 = vpop.f32.mrf.mxu1  ;;  %v2002_v8 = vpop.f32.mrf.mxu0 }
 0x321   : > { %v1168_v11 = vadd.f32 %v1164_v7, %v1078_v10 }
 0x322   : > { %v1967_v58 = vpop.f32.mrf.mxu1 }
 0x323   : > { %v1258_v12 = vadd.f32 %v1254_v20, %v1168_v11 }
 0x340   : > { %v1342_v13 = vpop.f32.mrf.mxu1 }
 0x341   : > { %v1346_v15 = vadd.f32 %v1342_v13, %v1258_v12 }
 0x342   : > { %v2037_v16 = vpop.f32.mrf.mxu1 }
 0x343   : > { %v1348_v17 = vadd.f32 %v1347_v14, %v1346_v15 }
 0x345   : > { %1349 = vst [vmem:[%s356_s23] sm:$0x1] %v1348_v17 }
 0x346 PF: > { %s21_s24 = sadd.s32 1, %s2249_s24  }
 0x347   : > { %p18_p2 = scmp.ge.s32.totalorder %s21_s24, 4  }
 0x349   :  { %20 = sbr.rel (!%p18_p2) target bundleno = 3 (0x3), region = 115 }
 0x34e   :  { %1383 = vsyncpa [#allocation3], 1 }
 0x34f   :  { %1385 = vsyncpa [#allocation3 + $0x1], 1 }
 0x350   :  { %1386 = vsyncpa [#allocation5], 1 }
 0x351   :  { %1387 = vsyncpa [#allocation8], 1 }

// kernel: geoformer_forward.5
= control target key start
LH: loop header
LB: loop body
LE: loop exit
PB: predicated region body
PF: predicated region fallthrough
CT: control target
= control target key end

     0   :  { %14 = vsyncpa [#allocation3], 0  ;;  %s2786_s0 = inlined_call_operand.vmem [shape: f32[2,64,128], index: 0, kind: input, shape index: {}]   ;;  %s2787_s1 = inlined_call_operand.vmem [shape: f32[2,64,128], index: 1, kind: input, shape index: {}]   ;;  %s2788_s2 = inlined_call_operand.hbm [shape: f32[9,64], index: 2, kind: input, shape index: {}]   ;;  %s2789_s3 = inlined_call_operand.hbm [shape: f32[128,128], index: 3, kind: input, shape index: {}]   ;;  %s2790_s4 = inlined_call_operand.hbm [shape: f32[1,128], index: 4, kind: input, shape index: {}]   ;;  %s2791_s5 = inlined_call_operand.hbm [shape: f32[9,128,128], index: 5, kind: input, shape index: {}]   ;;  %s2792_s6 = inlined_call_operand.hbm [shape: f32[1,128], index: 6, kind: input, shape index: {}]   ;;  %s2793_s7 = inlined_call_operand.vmem [shape: f32[2,64,128], index: 7, kind: output, shape index: {0}]   ;;  %s2794_s8 = inlined_call_operand.vmem [shape: f32[2,1,128], index: 8, kind: output, shape index: {1}]  }
   0x1   :  { %15 = vsyncpa [#allocation5], 0 }
   0x2   :  { %16 = vsyncpa [#allocation8], 0  ;;  %s2458_s27 = smov 0  }
   0x3 LB: > { %s2464_s28 = sadd.s32 4294967295, %s2402_s27   ;;  %p1599_p0 = scmp.ge.s32.totalorder %s2402_s27, 1  ;;  %s2402_s27 = sphi %s2458_s27, %s22_s27  }
   0x4   : > { %p236_p1 = scmp.lt.s32.totalorder %s2402_s27, 3  ;;  %p2227_p2 = scmp.eq.s32.totalorder %s2464_s28, 0 }
   0x5   : > { %s2404_s30 = smov [#allocation4]   ;;  %s2405_s10 = smov [#allocation7]  }
   0x6   : > { %p2469_p3 = pnand %p1599_p0, %p236_p1  ;;  %s261_s9 = sshll.u32 %s2404_s30, 4  ;;  %s262_s9 = int_to_ptr.vmem [resolvable:$true] %s261_s9 }
   0x7   : > { %s285_s11 = sshll.u32 %s2405_s10, 4  ;;  %s2406_s13 = smov [#allocation2]   ;;  %s2475_s11 = int_to_ptr.vmem [resolvable:$true] %s285_s11 }
   0x8   : > { %p2211_p4 = pneg %p2469_p3  ;;  %s248_s14 = sshll.u32 %s2406_s13, 4  ;;  %s2483_s14 = int_to_ptr.vmem [resolvable:$true] %s248_s14 }
   0x9   : > { %s2407_s15 = smov [#allocation6]   ;;  %s2265_s18 = scalar_lea.vmem %s262_s9, 2048 }
   0xa   : > { %p2479_p5 = pnand %p2227_p2, %p2211_p4  ;;  %s2485_s16 = sshll.u32 %s2407_s15, 4  ;;  %s276_s16 = int_to_ptr.vmem [resolvable:$true] %s2485_s16 }
   0xb   : > { %p2266_p7 = scmp.ne.s32.totalorder %s262_s9, %s2265_s18  ;;  %p2273_p10 = scmp.lt.s32.totalorder %s262_s9, %s262_s9 }
   0xc   : > { %p2489_p6 = pneg %p2479_p5  ;;  %p2274_p11 = scmp.lt.s32.totalorder %s2265_s18, %s2265_s18 }
   0xe   : > { %p2268_p8 = pnand %p2266_p7, %p2489_p6  ;;  %p2275_p12 = por %p2274_p11, %p2273_p10 }
  0x10   : > { %p2269_p9 = pneg %p2268_p8 }
  0x12   : > { %p2276_p13 = pnand %p2275_p12, %p2269_p9 }
  0x14   : > { %2279 = shalt.err (!%p2276_p13)
}
  0x15   : > { %s2408_s19 = smov 128   ;;  %s2409_s20 = smov 8  }
  0x16   : > { %2217 = dma.hbm_to_vmem [thread:$0]  (!%p2479_p5), %s2789_s3, 2048, %s262_s9, [#allocation5], %s2408_s19, %s2408_s19, %s2409_s20  }
  0x17   : > { %s2291_s23 = scalar_lea.vmem %s2475_s11, 18432  ;;  %p2299_p7 = scmp.lt.s32.totalorder %s2475_s11, %s2475_s11 }
  0x18   : > { %p2292_p0 = scmp.ne.s32.totalorder %s2475_s11, %s2291_s23  ;;  %p2300_p8 = scmp.lt.s32.totalorder %s2291_s23, %s2291_s23 }
  0x1a   : > { %p2294_p1 = pnand %p2292_p0, %p2489_p6  ;;  %p2301_p9 = por %p2300_p8, %p2299_p7 }
  0x1c   : > { %p2295_p4 = pneg %p2294_p1 }
  0x1e   : > { %p2302_p10 = pnand %p2301_p9, %p2295_p4 }
  0x20   : > { %2305 = shalt.err (!%p2302_p10)
}
  0x21   : > { %2223 = dma.hbm_to_vmem [thread:$0]  (!%p2479_p5), %s2791_s5, 18432, %s2475_s11, [#allocation8], %s2408_s19, %s2408_s19, %s2409_s20  }
  0x22   : > { %s2317_s26 = scalar_lea.vmem %s2483_s14, 256  ;;  %p2325_p0 = scmp.lt.s32.totalorder %s2483_s14, %s2483_s14 }
  0x23   : > { %p2318_p11 = scmp.ne.s32.totalorder %s2483_s14, %s2317_s26  ;;  %p2326_p1 = scmp.lt.s32.totalorder %s2317_s26, %s2317_s26 }
  0x25   : > { %p2320_p12 = pnand %p2318_p11, %p2489_p6  ;;  %p2327_p4 = por %p2326_p1, %p2325_p0 }
  0x27   : > { %p2321_p13 = pneg %p2320_p12 }
  0x29   : > { %p2328_p7 = pnand %p2327_p4, %p2321_p13 }
  0x2b   : > { %2331 = shalt.err (!%p2328_p7)
}
  0x2c   : > { %2214 = dma.hbm_to_vmem [thread:$0]  (!%p2479_p5), %s2788_s2, 256, %s2483_s14, [#allocation3], %s2408_s19, %s2408_s19, %s2409_s20  }
  0x2d   : > { %s2343_s10 = scalar_lea.vmem %s276_s16, 16  ;;  %s2350_s11 = scalar_lea.vmem %s276_s16, 32 }
  0x2e   : > { %p2344_p8 = scmp.ne.s32.totalorder %s276_s16, %s2343_s10  ;;  %p2351_p11 = scmp.lt.s32.totalorder %s276_s16, %s276_s16 }
  0x2f   : > { %p2352_p12 = scmp.lt.s32.totalorder %s2350_s11, %s2343_s10 }
  0x30   : > { %p2346_p9 = pnand %p2344_p8, %p2489_p6 }
  0x31   : > { %p2353_p13 = por %p2352_p12, %p2351_p11 }
  0x32   : > { %p2347_p10 = pneg %p2346_p9 }
  0x34   : > { %p2354_p0 = pnand %p2353_p13, %p2347_p10 }
  0x36   : > { %2357 = shalt.err (!%p2354_p0)
}
  0x37   : > { %2220 = dma.hbm_to_vmem [thread:$0]  (!%p2479_p5), %s2790_s4, 16, %s276_s16, [#allocation5]  }
  0x38   : > { %s2410_s14 = smov [#allocation9]  }
  0x39   : > { %s299_s18 = sshll.u32 %s2410_s14, 4  ;;  %s300_s18 = int_to_ptr.vmem [resolvable:$true] %s299_s18 }
  0x3a   : > { %s2369_s19 = scalar_lea.vmem %s300_s18, 16  ;;  %s2376_s20 = scalar_lea.vmem %s300_s18, 32 }
  0x3b   : > { %p2370_p1 = scmp.ne.s32.totalorder %s300_s18, %s2369_s19  ;;  %p2377_p8 = scmp.lt.s32.totalorder %s300_s18, %s300_s18 }
  0x3c   : > { %p2378_p9 = scmp.lt.s32.totalorder %s2376_s20, %s2369_s19 }
  0x3d   : > { %p2372_p4 = pnand %p2370_p1, %p2489_p6 }
  0x3e   : > { %p2379_p10 = por %p2378_p9, %p2377_p8 }
  0x3f   : > { %p2373_p7 = pneg %p2372_p4 }
  0x41   : > { %p2380_p11 = pnand %p2379_p10, %p2373_p7 }
  0x43   : > { %2383 = shalt.err (!%p2380_p11)
}
  0x44   : > { %2226 = dma.hbm_to_vmem [thread:$0]  (!%p2479_p5), %s2792_s6, 16, %s300_s18, [#allocation8]  }
  0x45   : > { %328 = sbr.rel (%p2469_p3) target bundleno = 864 (0x360), region = 48 }
  0x4a   : > { %2389 = dma.done.wait (%p2227_p2), [#allocation3], 256  }
  0x4b   : > { %2391 = vsyncadd (%p2227_p2), [#allocation3], 4294967040 }
  0x4c   : > { %2393 = dma.done.wait (%p2227_p2), [#allocation5], 2064  }
  0x4d   : > { %2395 = vsyncadd (%p2227_p2), [#allocation5], 4294965232 }
  0x4e   : > { %2397 = dma.done.wait (%p2227_p2), [#allocation8], 18448  }
  0x4f   : > { %2399 = vsyncadd (%p2227_p2), [#allocation8], 4294948848  ;;  %p386_p3 = scmp.lt.s32.totalorder %s2464_s28, 1  ;;  %v427_v0 = vld [vmem:[#allocation4 + $0x78] sm:$0xff]  ;;  %v426_v1 = vld [vmem:[#allocation4 + $0x70] sm:$0xff]  ;;  %vm566_vm0 = vcmask 523264  }
  0x50   : > { %1813 = vmatprep.subr.mxu0 %v427_v0  ;;  %v425_v2 = vld [vmem:[#allocation4 + $0x68] sm:$0xff]  ;;  %v424_v3 = vld [vmem:[#allocation4 + $0x60] sm:$0xff]  ;;  %v423_v5 = vld [vmem:[#allocation4 + $0x58] sm:$0xff]  ;;  %v2411_v26 = vmov 0.0   ;;  %vm2412_vm1 = vmmov 0  }
  0x51   : > { %s2799_s28 = smov (!%p386_p3, %s2464_s28), 1  ;;  %1814 = vmatpush3.msra.mxu0 %v427_v0  ;;  %v422_v6 = vld [vmem:[#allocation4 + $0x50] sm:$0xff]  ;;  %v421_v7 = vld [vmem:[#allocation4 + $0x48] sm:$0xff]  ;;  %v420_v8 = vld [vmem:[#allocation4 + $0x40] sm:$0xff] }
  0x52   : > { %s2558_s29 = sshll.u32 %s2799_s28, 6  ;;  %1815 = vmatprep.subr.mxu0 %v426_v1  ;;  %v419_v9 = vld [vmem:[#allocation4 + $0x38] sm:$0xff]  ;;  %v418_v10 = vld [vmem:[#allocation4 + $0x30] sm:$0xff]  ;;  %v417_v11 = vld [vmem:[#allocation4 + $0x28] sm:$0xff]  ;;  %s403_s13 = scalar_lea.vmem %s2794_s8, %s2799_s28 }
  0x53   : > { %s2564_s17 = scalar_lea.vmem %s2786_s0, %s2558_s29  ;;  %1816 = vmatpush3.msra.mxu0 %v426_v1  ;;  %v416_v12 = vld [vmem:[#allocation4 + $0x20] sm:$0xff]  ;;  %v415_v13 = vld [vmem:[#allocation4 + $0x18] sm:$0xff]  ;;  %v414_v14 = vld [vmem:[#allocation4 + $0x10] sm:$0xff]  ;;  %s2595_s25 = scalar_lea.vmem %s2787_s1, %s2558_s29 }
  0x54   : > { %1817 = vmatprep.subr.mxu0 %v425_v2  ;;  %v404_v4 = vld [vmem:[%s2564_s17] sm:$0xff]  ;;  %v413_v15 = vld [vmem:[#allocation4 + $0x8] sm:$0xff]  ;;  %v412_v16 = vld [vmem:[#allocation4] sm:$0xff]  ;;  %s2602_s9 = scalar_lea.vmem %s2793_s7, %s2558_s29 }
  0x55   : > { %1818 = vmatpush3.msra.mxu0 %v425_v2  ;;  %1845 = vmatprep.mubr.f32.mxu0 %v404_v4  ;;  %v405_v17 = vld [vmem:[%s2564_s17 + $0x8] sm:$0xff]  ;;  %v406_v18 = vld [vmem:[%s2564_s17 + $0x10] sm:$0xff]  ;;  %v407_v19 = vld [vmem:[%s2564_s17 + $0x18] sm:$0xff] }
  0x56   : > { %1819 = vmatprep.subr.mxu0 %v424_v3  ;;  %v408_v20 = vld [vmem:[%s2564_s17 + $0x20] sm:$0xff]  ;;  %v409_v21 = vld [vmem:[%s2564_s17 + $0x28] sm:$0xff]  ;;  %v410_v22 = vld [vmem:[%s2564_s17 + $0x30] sm:$0xff] }
  0x57   : > { %1820 = vmatpush3.msra.mxu0 %v424_v3  ;;  %v411_v23 = vld [vmem:[%s2564_s17 + $0x38] sm:$0xff]  ;;  %v564_v24 = vld [vmem:[#allocation2] sm:$0xff]  ;;  %v663_v25 = vld [vmem:[#allocation7 + $0x78] sm:$0xff] }
  0x58   : > { %1821 = vmatprep.subr.mxu0 %v423_v5  ;;  %1873 = vmatprep.mubr.msk.f32.mxu1 %vm566_vm0, %v564_v24  ;;  %v662_v27 = vld [vmem:[#allocation7 + $0x70] sm:$0xff]  ;;  %v661_v28 = vld [vmem:[#allocation7 + $0x68] sm:$0xff]  ;;  %v660_v29 = vld [vmem:[#allocation7 + $0x60] sm:$0xff] }
  0x59   : > { %1822 = vmatpush3.msra.mxu0 %v423_v5  ;;  %v659_v30 = vld [vmem:[#allocation7 + $0x58] sm:$0xff]  ;;  %v658_v31 = vld [vmem:[#allocation7 + $0x50] sm:$0xff]  ;;  %v657_v32 = vld [vmem:[#allocation7 + $0x48] sm:$0xff] }
  0x5a   : > { %1823 = vmatprep.subr.mxu0 %v422_v6  ;;  %v656_v33 = vld [vmem:[#allocation7 + $0x40] sm:$0xff]  ;;  %v655_v34 = vld [vmem:[#allocation7 + $0x38] sm:$0xff]  ;;  %v654_v35 = vld [vmem:[#allocation7 + $0x30] sm:$0xff] }
  0x5b   : > { %1824 = vmatpush3.msra.mxu0 %v422_v6  ;;  %v653_v36 = vld [vmem:[#allocation7 + $0x28] sm:$0xff]  ;;  %v652_v37 = vld [vmem:[#allocation7 + $0x20] sm:$0xff]  ;;  %v651_v38 = vld [vmem:[#allocation7 + $0x18] sm:$0xff] }
  0x5c   : > { %1825 = vmatprep.subr.mxu0 %v421_v7  ;;  %v650_v39 = vld [vmem:[#allocation7 + $0x10] sm:$0xff]  ;;  %v649_v40 = vld [vmem:[#allocation7 + $0x8] sm:$0xff]  ;;  %v1618_v41 = vld [vmem:[#allocation6] ss:$0 sm:$0xff] }
  0x5d   : > { %1826 = vmatpush3.msra.mxu0 %v421_v7  ;;  %v541_v43 = vld [vmem:[%s2595_s25 + $0x8] sm:$0xff]  ;;  %v540_v46 = vld [vmem:[%s2595_s25] sm:$0xff]  ;;  %v543_v50 = vld [vmem:[%s2595_s25 + $0x18] sm:$0xff] }
  0x5e   : > { %1827 = vmatprep.subr.mxu0 %v420_v8  ;;  %v542_v54 = vld [vmem:[%s2595_s25 + $0x10] sm:$0xff]  ;;  %v545_v58 = vld [vmem:[%s2595_s25 + $0x28] sm:$0xff]  ;;  %v544_v62 = vld [vmem:[%s2595_s25 + $0x20] sm:$0xff] }
  0x5f   : > { %1828 = vmatpush3.msra.mxu0 %v420_v8  ;;  %v547_v2 = vld [vmem:[%s2595_s25 + $0x38] sm:$0xff]  ;;  %v546_v6 = vld [vmem:[%s2595_s25 + $0x30] sm:$0xff]  ;;  %v667_v24 = vld [vmem:[#allocation7 + $0x90] sm:$0xff] }
  0x60   : > { %1829 = vmatprep.subr.mxu0 %v419_v9 }
  0x61   : > { %1830 = vmatpush3.msra.mxu0 %v419_v9 }
  0x62   : > { %1831 = vmatprep.subr.mxu0 %v418_v10 }
  0x63   : > { %1832 = vmatpush3.msra.mxu0 %v418_v10  ;;  %v565_v10 = vld [vmem:[#allocation2 + $0x8] sm:$0x1] }
  0x64   : > { %1833 = vmatprep.subr.mxu0 %v417_v11 }
  0x65   : > { %1834 = vmatpush3.msra.mxu0 %v417_v11  ;;  %v680_v11 = vld [vmem:[#allocation7 + $0xf8] sm:$0xff] }
  0x66   : > { %1835 = vmatprep.subr.mxu0 %v416_v12 }
  0x67   : > { %1836 = vmatpush3.msra.mxu0 %v416_v12  ;;  %v679_v12 = vld [vmem:[#allocation7 + $0xf0] sm:$0xff] }
  0x68   : > { %1837 = vmatprep.subr.mxu0 %v415_v13 }
  0x69   : > { %1838 = vmatpush3.msra.mxu0 %v415_v13  ;;  %v678_v13 = vld [vmem:[#allocation7 + $0xe8] sm:$0xff] }
  0x6a   : > { %1839 = vmatprep.subr.mxu0 %v414_v14 }
  0x6b   : > { %1840 = vmatpush3.msra.mxu0 %v414_v14  ;;  %v677_v14 = vld [vmem:[#allocation7 + $0xe0] sm:$0xff] }
  0x6c   : > { %1841 = vmatprep.subr.mxu0 %v413_v15 }
  0x6d   : > { %1842 = vmatpush3.msra.mxu0 %v413_v15  ;;  %v676_v15 = vld [vmem:[#allocation7 + $0xd8] sm:$0xff] }
  0x6e   : > { %1843 = vmatprep.subr.mxu0 %v412_v16 }
  0x6f   : > { %1844 = vmatpush3.msra.mxu0 %v412_v16  ;;  %v675_v16 = vld [vmem:[#allocation7 + $0xd0] sm:$0xff] }
  0x70   : > { %1846 = vmatmul.mubr.f32.vlgmr.msra.gmra.mxu0 %v405_v17  ;;  %1911 = vmatprep.subr.mxu0 %v2411_v26  ;;  %v674_v17 = vld [vmem:[#allocation7 + $0xc8] sm:$0xff] }
  0x71   : > { %1848 = vmatprep.mubr.f32.mxu0 %v406_v18  ;;  %1912 = vmatpush3.msra.mxu0 %v663_v25  ;;  %v673_v18 = vld [vmem:[#allocation7 + $0xc0] sm:$0xff]  ;;  %v666_v25 = vld [vmem:[#allocation7 + $0x88] sm:$0xff] }
  0x72   : > { %1913 = vmatprep.subr.mxu0 %v2411_v26 }
  0x73   : > { %1914 = vmatpush3.msra.mxu0 %v662_v27  ;;  %v648_v27 = vld [vmem:[#allocation7] sm:$0xff] }
  0x74   : > { %1849 = vmatmul.mubr.f32.gmra.mxu0 %v407_v19  ;;  %1915 = vmatprep.subr.mxu0 %v2411_v26  ;;  %v672_v19 = vld [vmem:[#allocation7 + $0xb8] sm:$0xff] }
  0x75   : > { %1851 = vmatprep.mubr.f32.mxu0 %v408_v20  ;;  %1916 = vmatpush3.msra.mxu0 %v661_v28  ;;  %v671_v20 = vld [vmem:[#allocation7 + $0xb0] sm:$0xff]  ;;  %v665_v28 = vld [vmem:[#allocation7 + $0x80] sm:$0xff] }
  0x76   : > { %1917 = vmatprep.subr.mxu0 %v2411_v26 }
  0x77   : > { %1918 = vmatpush3.msra.mxu0 %v660_v29 }
  0x78   : > { %1852 = vmatmul.mubr.f32.gmra.mxu0 %v409_v21  ;;  %1919 = vmatprep.subr.mxu0 %v2411_v26  ;;  %v670_v21 = vld [vmem:[#allocation7 + $0xa8] sm:$0xff] }
  0x79   : > { %1854 = vmatprep.mubr.f32.mxu0 %v410_v22  ;;  %1920 = vmatpush3.msra.mxu0 %v659_v30  ;;  %v669_v22 = vld [vmem:[#allocation7 + $0xa0] sm:$0xff]  ;;  %v930_v30 = vld [vmem:[#allocation7 + $0x1f8] sm:$0xff] }
  0x7a   : > { %1921 = vmatprep.subr.mxu0 %v2411_v26 }
  0x7b   : > { %1922 = vmatpush3.msra.mxu0 %v658_v31 }
  0x7c   : > { %1855 = vmatmul.mubr.f32.gmra.mxu0 %v411_v23  ;;  %1923 = vmatprep.subr.mxu0 %v2411_v26  ;;  %v668_v23 = vld [vmem:[#allocation7 + $0x98] sm:$0xff] }
  0x7d   : > { %1924 = vmatpush3.msra.mxu0 %v657_v32  ;;  %1943 = vmatprep.mubr.msk.f32.mxu0 %vm2412_vm1, %v2411_v26 }
  0x7e   : > { %1925 = vmatprep.subr.mxu0 %v2411_v26 }
  0x7f   : > { %1926 = vmatpush3.msra.mxu0 %v656_v33  ;;  %v840_v33 = vld [vmem:[#allocation7 + $0x178] sm:$0xff] }
  0x80   : > { %1927 = vmatprep.subr.mxu0 %v2411_v26 }
  0x81   : > { %1928 = vmatpush3.msra.mxu0 %v655_v34  ;;  %v929_v34 = vld [vmem:[#allocation7 + $0x1f0] sm:$0xff] }
  0x82   : > { %1929 = vmatprep.subr.mxu0 %v2411_v26 }
  0x83   : > { %1930 = vmatpush3.msra.mxu0 %v654_v35  ;;  %v839_v35 = vld [vmem:[#allocation7 + $0x170] sm:$0xff] }
  0x84   : > { %1931 = vmatprep.subr.mxu0 %v2411_v26 }
  0x85   : > { %1932 = vmatpush3.msra.mxu0 %v653_v36  ;;  %v928_v36 = vld [vmem:[#allocation7 + $0x1e8] sm:$0xff] }
  0x86   : > { %1933 = vmatprep.subr.mxu0 %v2411_v26 }
  0x87   : > { %1934 = vmatpush3.msra.mxu0 %v652_v37  ;;  %v838_v37 = vld [vmem:[#allocation7 + $0x168] sm:$0xff] }
  0x88   : > { %1935 = vmatprep.subr.mxu0 %v2411_v26 }
  0x89   : > { %1936 = vmatpush3.msra.mxu0 %v651_v38  ;;  %v927_v38 = vld [vmem:[#allocation7 + $0x1e0] sm:$0xff] }
  0x8a   : > { %1937 = vmatprep.subr.mxu0 %v2411_v26 }
  0x8b   : > { %1938 = vmatpush3.msra.mxu0 %v650_v39  ;;  %v837_v39 = vld [vmem:[#allocation7 + $0x160] sm:$0xff] }
  0x8c   : > { %1939 = vmatprep.subr.mxu0 %v2411_v26 }
  0x8d   : > { %1940 = vmatpush3.msra.mxu0 %v649_v40  ;;  %v926_v40 = vld [vmem:[#allocation7 + $0x1d8] sm:$0xff] }
  0x8e   : > { %1941 = vmatprep.subr.mxu0 %v2411_v26 }
  0x8f   : > { %1942 = vmatpush3.msra.mxu0 %v648_v27  ;;  %v1098_v27 = vld [vmem:[#allocation7 + $0x298] sm:$0xff] }
  0x90   : > { %1981 = vmatprep.subr.mxu0 %v2411_v26 }
 0x130   : > { %v1847_v42 = vpop.f32.mrf.mxu0 }
 0x131   : > { %v507_v44 = vadd.f32 %v1847_v42, %v1618_v41  ;;  %v925_v42 = vld [vmem:[#allocation7 + $0x1d0] sm:$0xff] }
 0x132   : > { %v501_v45 = vpop.f32.mrf.mxu0 }
 0x133   : > { %v549_v47 = vadd.f32 %v541_v43, %v507_v44  ;;  %v502_v48 = vadd.f32 %v1618_v41, %v501_v45  ;;  %v835_v43 = vld [vmem:[#allocation7 + $0x150] sm:$0xff]  ;;  %v924_v44 = vld [vmem:[#allocation7 + $0x1c8] sm:$0xff] }
 0x134   : > { %v1850_v49 = vpop.f32.mrf.mxu0  ;;  %v834_v45 = vld [vmem:[#allocation7 + $0x148] sm:$0xff] }
 0x135   : > { %557 = vst [vmem:[%s2602_s9 + $0x8] sm:$0xff] %v549_v47  ;;  %v548_v51 = vadd.f32 %v540_v46, %v502_v48  ;;  %v517_v52 = vadd.f32 %v1850_v49, %v1618_v41  ;;  %v923_v46 = vld [vmem:[#allocation7 + $0x1c0] sm:$0xff]  ;;  %v922_v48 = vld [vmem:[#allocation7 + $0x1b8] sm:$0xff] }
 0x136   : > { %v511_v53 = vpop.f32.mrf.mxu0  ;;  %v832_v49 = vld [vmem:[#allocation7 + $0x138] sm:$0xff] }
 0x137   : > { %556 = vst [vmem:[%s2602_s9] sm:$0xff] %v548_v51  ;;  %v551_v55 = vadd.f32 %v543_v50, %v517_v52  ;;  %v512_v56 = vadd.f32 %v1618_v41, %v511_v53  ;;  %v921_v50 = vld [vmem:[#allocation7 + $0x1b0] sm:$0xff]  ;;  %v920_v52 = vld [vmem:[#allocation7 + $0x1a8] sm:$0xff] }
 0x138   : > { %v1853_v57 = vpop.f32.mrf.mxu0  ;;  %v830_v53 = vld [vmem:[#allocation7 + $0x128] sm:$0xff] }
 0x139   : > { %559 = vst [vmem:[%s2602_s9 + $0x18] sm:$0xff] %v551_v55  ;;  %v550_v59 = vadd.f32 %v542_v54, %v512_v56  ;;  %v527_v60 = vadd.f32 %v1853_v57, %v1618_v41  ;;  %v919_v54 = vld [vmem:[#allocation7 + $0x1a0] sm:$0xff]  ;;  %v918_v56 = vld [vmem:[#allocation7 + $0x198] sm:$0xff] }
 0x13a   : > { %v521_v61 = vpop.f32.mrf.mxu0  ;;  %v828_v57 = vld [vmem:[#allocation7 + $0x118] sm:$0xff] }
 0x13b   : > { %558 = vst [vmem:[%s2602_s9 + $0x10] sm:$0xff] %v550_v59  ;;  %v553_v63 = vadd.f32 %v545_v58, %v527_v60  ;;  %v522_v0 = vadd.f32 %v1618_v41, %v521_v61  ;;  %v917_v58 = vld [vmem:[#allocation7 + $0x190] sm:$0xff]  ;;  %v916_v60 = vld [vmem:[#allocation7 + $0x188] sm:$0xff] }
 0x13c   : > { %v1856_v1 = vpop.f32.mrf.mxu0  ;;  %v826_v61 = vld [vmem:[#allocation7 + $0x108] sm:$0xff] }
 0x13d   : > { %561 = vst [vmem:[%s2602_s9 + $0x28] sm:$0xff] %v553_v63  ;;  %v552_v3 = vadd.f32 %v544_v62, %v522_v0  ;;  %v537_v4 = vadd.f32 %v1856_v1, %v1618_v41  ;;  %v915_v62 = vld [vmem:[#allocation7 + $0x180] sm:$0xff]  ;;  %v1110_v1 = vld [vmem:[#allocation7 + $0x2f8] sm:$0xff] }
 0x13e   : > { %v531_v5 = vpop.f32.mrf.mxu0  ;;  %v825_v0 = vld [vmem:[#allocation7 + $0x100] sm:$0xff] }
 0x13f   : > { %560 = vst [vmem:[%s2602_s9 + $0x20] sm:$0xff] %v552_v3  ;;  %v555_v7 = vadd.f32 %v547_v2, %v537_v4  ;;  %v532_v8 = vadd.f32 %v1618_v41, %v531_v5  ;;  %v836_v41 = vld [vmem:[#allocation7 + $0x158] sm:$0xff]  ;;  %v1109_v4 = vld [vmem:[#allocation7 + $0x2f0] sm:$0xff] }
 0x140   : > { %v1019_v5 = vld [vmem:[#allocation7 + $0x270] sm:$0xff] }
 0x141   : > { %563 = vst [vmem:[%s2602_s9 + $0x38] sm:$0xff] %v555_v7  ;;  %v554_v9 = vadd.f32 %v546_v6, %v532_v8  ;;  %1857 = vmatprep.subr.mxu1 %v555_v7  ;;  %v1108_v6 = vld [vmem:[#allocation7 + $0x2e8] sm:$0xff]  ;;  %v1107_v8 = vld [vmem:[#allocation7 + $0x2e0] sm:$0xff] }
 0x142   : > { %1858 = vmatpush3.msra.mxu1 %v555_v7  ;;  %v1018_v7 = vld [vmem:[#allocation7 + $0x268] sm:$0xff] }
 0x143   : > { %562 = vst [vmem:[%s2602_s9 + $0x30] sm:$0xff] %v554_v9  ;;  %1859 = vmatprep.subr.mxu1 %v554_v9 }
 0x144   : > { %1860 = vmatpush3.msra.mxu1 %v554_v9  ;;  %v1017_v9 = vld [vmem:[#allocation7 + $0x260] sm:$0xff] }
 0x145   : > { %1861 = vmatprep.subr.mxu1 %v553_v63 }
 0x146   : > { %1862 = vmatpush3.msra.mxu1 %v553_v63 }
 0x147   : > { %1863 = vmatprep.subr.mxu1 %v552_v3 }
 0x148   : > { %1864 = vmatpush3.msra.mxu1 %v552_v3  ;;  %v1020_v3 = vld [vmem:[#allocation7 + $0x278] sm:$0xff] }
 0x149   : > { %1865 = vmatprep.subr.mxu1 %v551_v55 }
 0x14a   : > { %1866 = vmatpush3.msra.mxu1 %v551_v55  ;;  %v829_v55 = vld [vmem:[#allocation7 + $0x120] sm:$0xff] }
 0x14b   : > { %1867 = vmatprep.subr.mxu1 %v550_v59 }
 0x14c   : > { %1868 = vmatpush3.msra.mxu1 %v550_v59  ;;  %v827_v59 = vld [vmem:[#allocation7 + $0x110] sm:$0xff] }
 0x14d   : > { %1869 = vmatprep.subr.mxu1 %v549_v47 }
 0x14e   : > { %1870 = vmatpush3.msra.mxu1 %v549_v47  ;;  %v833_v47 = vld [vmem:[#allocation7 + $0x140] sm:$0xff] }
 0x14f   : > { %1871 = vmatprep.subr.mxu1 %v548_v51 }
 0x150   : > { %1872 = vmatpush3.msra.mxu1 %v548_v51  ;;  %v831_v51 = vld [vmem:[#allocation7 + $0x130] sm:$0xff] }
 0x151   : > { %1874 = vmatmul.mubr.msk.f32.vlgmr.msra.gmra.mxu1 %vm566_vm0, %v565_v10  ;;  %1876 = vmatprep.subr.mxu1 %v2411_v26  ;;  %v1106_v10 = vld [vmem:[#allocation7 + $0x2d8] sm:$0xff] }
 0x152   : > { %1877 = vmatpush3.msra.mxu1 %v680_v11  ;;  %1908 = vmatprep.mubr.msk.f32.mxu1 %vm2412_vm1, %v2411_v26  ;;  %v1016_v11 = vld [vmem:[#allocation7 + $0x258] sm:$0xff] }
 0x153   : > { %1878 = vmatprep.subr.mxu1 %v2411_v26 }
 0x154   : > { %1879 = vmatpush3.msra.mxu1 %v679_v12  ;;  %v1105_v12 = vld [vmem:[#allocation7 + $0x2d0] sm:$0xff] }
 0x155   : > { %1880 = vmatprep.subr.mxu1 %v2411_v26 }
 0x156   : > { %1881 = vmatpush3.msra.mxu1 %v678_v13  ;;  %v1015_v13 = vld [vmem:[#allocation7 + $0x250] sm:$0xff] }
 0x157   : > { %1882 = vmatprep.subr.mxu1 %v2411_v26 }
 0x158   : > { %1883 = vmatpush3.msra.mxu1 %v677_v14  ;;  %v1104_v14 = vld [vmem:[#allocation7 + $0x2c8] sm:$0xff] }
 0x159   : > { %1884 = vmatprep.subr.mxu1 %v2411_v26 }
 0x15a   : > { %1885 = vmatpush3.msra.mxu1 %v676_v15  ;;  %v1014_v15 = vld [vmem:[#allocation7 + $0x248] sm:$0xff] }
 0x15b   : > { %1886 = vmatprep.subr.mxu1 %v2411_v26 }
 0x15c   : > { %1887 = vmatpush3.msra.mxu1 %v675_v16  ;;  %v1103_v16 = vld [vmem:[#allocation7 + $0x2c0] sm:$0xff] }
 0x15d   : > { %1888 = vmatprep.subr.mxu1 %v2411_v26 }
 0x15e   : > { %1889 = vmatpush3.msra.mxu1 %v674_v17  ;;  %v1013_v17 = vld [vmem:[#allocation7 + $0x240] sm:$0xff] }
 0x15f   : > { %1890 = vmatprep.subr.mxu1 %v2411_v26 }
 0x160   : > { %1891 = vmatpush3.msra.mxu1 %v673_v18  ;;  %v1102_v18 = vld [vmem:[#allocation7 + $0x2b8] sm:$0xff] }
 0x161   : > { %1892 = vmatprep.subr.mxu1 %v2411_v26 }
 0x162   : > { %1893 = vmatpush3.msra.mxu1 %v672_v19  ;;  %v1012_v19 = vld [vmem:[#allocation7 + $0x238] sm:$0xff] }
 0x163   : > { %1894 = vmatprep.subr.mxu1 %v2411_v26 }
 0x164   : > { %1895 = vmatpush3.msra.mxu1 %v671_v20  ;;  %v1101_v20 = vld [vmem:[#allocation7 + $0x2b0] sm:$0xff] }
 0x165   : > { %1896 = vmatprep.subr.mxu1 %v2411_v26 }
 0x166   : > { %1897 = vmatpush3.msra.mxu1 %v670_v21  ;;  %v1011_v21 = vld [vmem:[#allocation7 + $0x230] sm:$0xff] }
 0x167   : > { %1898 = vmatprep.subr.mxu1 %v2411_v26 }
 0x168   : > { %1899 = vmatpush3.msra.mxu1 %v669_v22  ;;  %v1100_v22 = vld [vmem:[#allocation7 + $0x2a8] sm:$0xff] }
 0x169   : > { %1900 = vmatprep.subr.mxu1 %v2411_v26 }
 0x16a   : > { %1901 = vmatpush3.msra.mxu1 %v668_v23  ;;  %v1010_v23 = vld [vmem:[#allocation7 + $0x228] sm:$0xff] }
 0x16b   : > { %1902 = vmatprep.subr.mxu1 %v2411_v26 }
 0x16c   : > { %1903 = vmatpush3.msra.mxu1 %v667_v24  ;;  %v1099_v24 = vld [vmem:[#allocation7 + $0x2a0] sm:$0xff] }
 0x16d   : > { %1904 = vmatprep.subr.mxu1 %v2411_v26 }
 0x16e   : > { %1905 = vmatpush3.msra.mxu1 %v666_v25  ;;  %v1009_v25 = vld [vmem:[#allocation7 + $0x220] sm:$0xff] }
 0x16f   : > { %1906 = vmatprep.subr.mxu1 %v2411_v26 }
 0x170   : > { %1907 = vmatpush3.msra.mxu1 %v665_v28  ;;  %v1008_v28 = vld [vmem:[#allocation7 + $0x218] sm:$0xff] }
 0x171   : > { %1946 = vmatprep.subr.mxu1 %v2411_v26 }
 0x211   : > { %v2642_v29 = vpop.f32.mrf.mxu1 }
 0x213   : > { %v2644_v31 = vpop.f32.mrf.mxu1 }
 0x214   : > { %1944 = vmatmul.mubr.f32.vlgmr.msra.gmra.mxu0 %v2644_v31  ;;  %v682_v32 = vrot.slane %v2644_v31, 1  ;;  %v931_v63 = vrot.slane %v2644_v31, 3  ;;  %v841_v2 = vrot.slane %v2644_v31, 2 }
 0x215   : > { %1982 = vmatpush3.msra.mxu0 %v930_v30  ;;  %2013 = vmatprep.mubr.msk.f32.mxu0 %vm2412_vm1, %v2411_v26  ;;  %v1097_v30 = vld [vmem:[#allocation7 + $0x290] sm:$0xff] }
 0x216   : > { %1983 = vmatprep.subr.mxu0 %v2411_v26  ;;  %1909 = vmatmul.mubr.f32.vlgmr.msra.gmra.mxu1 %v682_v32  ;;  %v1007_v32 = vld [vmem:[#allocation7 + $0x210] sm:$0xff] }
 0x217   : > { %1947 = vmatpush3.msra.mxu1 %v840_v33  ;;  %1984 = vmatpush3.msra.mxu0 %v929_v34  ;;  %v1096_v33 = vld [vmem:[#allocation7 + $0x288] sm:$0xff] }
 0x218   : > { %1948 = vmatprep.subr.mxu1 %v2411_v26  ;;  %1985 = vmatprep.subr.mxu0 %v2411_v26  ;;  %v1006_v34 = vld [vmem:[#allocation7 + $0x208] sm:$0xff] }
 0x219   : > { %1949 = vmatpush3.msra.mxu1 %v839_v35  ;;  %1986 = vmatpush3.msra.mxu0 %v928_v36  ;;  %v1095_v35 = vld [vmem:[#allocation7 + $0x280] sm:$0xff]  ;;  %v1111_v36 = vrot.slane %v2644_v31, 5 }
 0x21a   : > { %1950 = vmatprep.subr.mxu1 %v2411_v26  ;;  %1987 = vmatprep.subr.mxu0 %v2411_v26 }
 0x21b   : > { %1951 = vmatpush3.msra.mxu1 %v838_v37  ;;  %1988 = vmatpush3.msra.mxu0 %v927_v38  ;;  %v1005_v37 = vld [vmem:[#allocation7 + $0x200] sm:$0xff]  ;;  %v1290_v38 = vld [vmem:[#allocation7 + $0x3f8] sm:$0xff] }
 0x21c   : > { %1952 = vmatprep.subr.mxu1 %v2411_v26  ;;  %1989 = vmatprep.subr.mxu0 %v2411_v26 }
 0x21d   : > { %1953 = vmatpush3.msra.mxu1 %v837_v39  ;;  %1990 = vmatpush3.msra.mxu0 %v926_v40  ;;  %v1021_v39 = vrot.slane %v2644_v31, 4  ;;  %v1200_v40 = vld [vmem:[#allocation7 + $0x378] sm:$0xff] }
 0x21e   : > { %1954 = vmatprep.subr.mxu1 %v2411_v26  ;;  %1991 = vmatprep.subr.mxu0 %v2411_v26 }
 0x21f   : > { %1955 = vmatpush3.msra.mxu1 %v836_v41  ;;  %1992 = vmatpush3.msra.mxu0 %v925_v42  ;;  %v1289_v41 = vld [vmem:[#allocation7 + $0x3f0] sm:$0xff] }
 0x220   : > { %1956 = vmatprep.subr.mxu1 %v2411_v26  ;;  %1993 = vmatprep.subr.mxu0 %v2411_v26  ;;  %v1199_v42 = vld [vmem:[#allocation7 + $0x370] sm:$0xff] }
 0x221   : > { %1957 = vmatpush3.msra.mxu1 %v835_v43  ;;  %1994 = vmatpush3.msra.mxu0 %v924_v44  ;;  %v1288_v43 = vld [vmem:[#allocation7 + $0x3e8] sm:$0xff] }
 0x222   : > { %1958 = vmatprep.subr.mxu1 %v2411_v26  ;;  %1995 = vmatprep.subr.mxu0 %v2411_v26  ;;  %v1198_v44 = vld [vmem:[#allocation7 + $0x368] sm:$0xff] }
 0x223   : > { %1959 = vmatpush3.msra.mxu1 %v834_v45  ;;  %1996 = vmatpush3.msra.mxu0 %v923_v46  ;;  %v1287_v45 = vld [vmem:[#allocation7 + $0x3e0] sm:$0xff] }
 0x224   : > { %1960 = vmatprep.subr.mxu1 %v2411_v26  ;;  %1997 = vmatprep.subr.mxu0 %v2411_v26  ;;  %v1197_v46 = vld [vmem:[#allocation7 + $0x360] sm:$0xff] }
 0x225   : > { %1961 = vmatpush3.msra.mxu1 %v833_v47  ;;  %1998 = vmatpush3.msra.mxu0 %v922_v48  ;;  %v1286_v47 = vld [vmem:[#allocation7 + $0x3d8] sm:$0xff] }
 0x226   : > { %1962 = vmatprep.subr.mxu1 %v2411_v26  ;;  %1999 = vmatprep.subr.mxu0 %v2411_v26  ;;  %v1196_v48 = vld [vmem:[#allocation7 + $0x358] sm:$0xff] }
 0x227   : > { %1963 = vmatpush3.msra.mxu1 %v832_v49  ;;  %2000 = vmatpush3.msra.mxu0 %v921_v50  ;;  %v1285_v49 = vld [vmem:[#allocation7 + $0x3d0] sm:$0xff] }
 0x228   : > { %1964 = vmatprep.subr.mxu1 %v2411_v26  ;;  %2001 = vmatprep.subr.mxu0 %v2411_v26  ;;  %v1195_v50 = vld [vmem:[#allocation7 + $0x350] sm:$0xff] }
 0x229   : > { %1965 = vmatpush3.msra.mxu1 %v831_v51  ;;  %2002 = vmatpush3.msra.mxu0 %v920_v52  ;;  %v1284_v51 = vld [vmem:[#allocation7 + $0x3c8] sm:$0xff] }
 0x22a   : > { %1966 = vmatprep.subr.mxu1 %v2411_v26  ;;  %2003 = vmatprep.subr.mxu0 %v2411_v26  ;;  %v1194_v52 = vld [vmem:[#allocation7 + $0x348] sm:$0xff] }
 0x22b   : > { %1967 = vmatpush3.msra.mxu1 %v830_v53  ;;  %2004 = vmatpush3.msra.mxu0 %v919_v54  ;;  %v1283_v53 = vld [vmem:[#allocation7 + $0x3c0] sm:$0xff] }
 0x22c   : > { %1968 = vmatprep.subr.mxu1 %v2411_v26  ;;  %2005 = vmatprep.subr.mxu0 %v2411_v26  ;;  %v1193_v54 = vld [vmem:[#allocation7 + $0x340] sm:$0xff] }
 0x22d   : > { %1969 = vmatpush3.msra.mxu1 %v829_v55  ;;  %2006 = vmatpush3.msra.mxu0 %v918_v56  ;;  %v1282_v55 = vld [vmem:[#allocation7 + $0x3b8] sm:$0xff] }
 0x22e   : > { %1970 = vmatprep.subr.mxu1 %v2411_v26  ;;  %2007 = vmatprep.subr.mxu0 %v2411_v26  ;;  %v1192_v56 = vld [vmem:[#allocation7 + $0x338] sm:$0xff] }
 0x22f   : > { %1971 = vmatpush3.msra.mxu1 %v828_v57  ;;  %2008 = vmatpush3.msra.mxu0 %v917_v58  ;;  %v1281_v57 = vld [vmem:[#allocation7 + $0x3b0] sm:$0xff] }
 0x230   : > { %1972 = vmatprep.subr.mxu1 %v2411_v26  ;;  %2009 = vmatprep.subr.mxu0 %v2411_v26  ;;  %v1191_v58 = vld [vmem:[#allocation7 + $0x330] sm:$0xff] }
 0x231   : > { %1973 = vmatpush3.msra.mxu1 %v827_v59  ;;  %2010 = vmatpush3.msra.mxu0 %v916_v60  ;;  %v1280_v59 = vld [vmem:[#allocation7 + $0x3a8] sm:$0xff] }
 0x232   : > { %1974 = vmatprep.subr.mxu1 %v2411_v26  ;;  %2011 = vmatprep.subr.mxu0 %v2411_v26  ;;  %v1190_v60 = vld [vmem:[#allocation7 + $0x328] sm:$0xff] }
 0x233   : > { %1975 = vmatpush3.msra.mxu1 %v826_v61  ;;  %2012 = vmatpush3.msra.mxu0 %v915_v62  ;;  %v1279_v61 = vld [vmem:[#allocation7 + $0x3a0] sm:$0xff] }
 0x234   : > { %1976 = vmatprep.subr.mxu1 %v2411_v26  ;;  %2014 = vmatmul.mubr.f32.vlgmr.msra.gmra.mxu0 %v931_v63  ;;  %v1189_v62 = vld [vmem:[#allocation7 + $0x320] sm:$0xff]  ;;  %v1278_v63 = vld [vmem:[#allocation7 + $0x398] sm:$0xff] }
 0x235   : > { %2051 = vmatprep.subr.mxu0 %v2411_v26  ;;  %1977 = vmatpush3.msra.mxu1 %v825_v0  ;;  %v1188_v0 = vld [vmem:[#allocation7 + $0x318] sm:$0xff] }
 0x236   : > { %1978 = vmatprep.mubr.msk.f32.mxu1 %vm2412_vm1, %v2411_v26  ;;  %2052 = vmatpush3.msra.mxu0 %v1110_v1  ;;  %v1277_v1 = vld [vmem:[#allocation7 + $0x390] sm:$0xff] }
 0x237   : > { %1979 = vmatmul.mubr.f32.vlgmr.msra.gmra.mxu1 %v841_v2  ;;  %2016 = vmatprep.subr.mxu1 %v2411_v26  ;;  %v1187_v2 = vld [vmem:[#allocation7 + $0x310] sm:$0xff] }
 0x238   : > { %2053 = vmatprep.subr.mxu0 %v2411_v26  ;;  %2017 = vmatpush3.msra.mxu1 %v1020_v3  ;;  %v1276_v3 = vld [vmem:[#allocation7 + $0x388] sm:$0xff] }
 0x239   : > { %2054 = vmatpush3.msra.mxu0 %v1109_v4  ;;  %2018 = vmatprep.subr.mxu1 %v2411_v26  ;;  %v1186_v4 = vld [vmem:[#allocation7 + $0x308] sm:$0xff] }
 0x23a   : > { %2055 = vmatprep.subr.mxu0 %v2411_v26  ;;  %2019 = vmatpush3.msra.mxu1 %v1019_v5  ;;  %v1275_v5 = vld [vmem:[#allocation7 + $0x380] sm:$0xff] }
 0x23b   : > { %2056 = vmatpush3.msra.mxu0 %v1108_v6  ;;  %2020 = vmatprep.subr.mxu1 %v2411_v26  ;;  %v1291_v6 = vrot.slane %v2644_v31, 7 }
 0x23c   : > { %2057 = vmatprep.subr.mxu0 %v2411_v26  ;;  %2021 = vmatpush3.msra.mxu1 %v1018_v7  ;;  %v1185_v7 = vld [vmem:[#allocation7 + $0x300] sm:$0xff] }
 0x23d   : > { %2058 = vmatpush3.msra.mxu0 %v1107_v8  ;;  %2022 = vmatprep.subr.mxu1 %v2411_v26  ;;  %v1201_v8 = vrot.slane %v2644_v31, 6  ;;  %v1377_v31 = vld [vmem:[#allocation7 + $0x460] sm:$0xff] }
 0x23e   : > { %2059 = vmatprep.subr.mxu0 %v2411_v26  ;;  %2023 = vmatpush3.msra.mxu1 %v1017_v9  ;;  %v1380_v9 = vld [vmem:[#allocation7 + $0x478] sm:$0xff] }
 0x23f   : > { %2060 = vmatpush3.msra.mxu0 %v1106_v10  ;;  %2024 = vmatprep.subr.mxu1 %v2411_v26  ;;  %v1379_v10 = vld [vmem:[#allocation7 + $0x470] sm:$0xff] }
 0x240   : > { %2061 = vmatprep.subr.mxu0 %v2411_v26  ;;  %2025 = vmatpush3.msra.mxu1 %v1016_v11  ;;  %v1378_v11 = vld [vmem:[#allocation7 + $0x468] sm:$0xff] }
 0x241   : > { %2062 = vmatpush3.msra.mxu0 %v1105_v12  ;;  %2026 = vmatprep.subr.mxu1 %v2411_v26  ;;  %v1376_v12 = vld [vmem:[#allocation7 + $0x458] sm:$0xff] }
 0x242   : > { %2063 = vmatprep.subr.mxu0 %v2411_v26  ;;  %2027 = vmatpush3.msra.mxu1 %v1015_v13  ;;  %v1375_v13 = vld [vmem:[#allocation7 + $0x450] sm:$0xff] }
 0x243   : > { %2064 = vmatpush3.msra.mxu0 %v1104_v14  ;;  %2028 = vmatprep.subr.mxu1 %v2411_v26  ;;  %v1374_v14 = vld [vmem:[#allocation7 + $0x448] sm:$0xff] }
 0x244   : > { %2065 = vmatprep.subr.mxu0 %v2411_v26  ;;  %2029 = vmatpush3.msra.mxu1 %v1014_v15  ;;  %v1373_v15 = vld [vmem:[#allocation7 + $0x440] sm:$0xff] }
 0x245   : > { %2066 = vmatpush3.msra.mxu0 %v1103_v16  ;;  %2030 = vmatprep.subr.mxu1 %v2411_v26  ;;  %v1372_v16 = vld [vmem:[#allocation7 + $0x438] sm:$0xff] }
 0x246   : > { %2067 = vmatprep.subr.mxu0 %v2411_v26  ;;  %2031 = vmatpush3.msra.mxu1 %v1013_v17  ;;  %v1371_v17 = vld [vmem:[#allocation7 + $0x430] sm:$0xff] }
 0x247   : > { %2068 = vmatpush3.msra.mxu0 %v1102_v18  ;;  %2032 = vmatprep.subr.mxu1 %v2411_v26  ;;  %v1370_v18 = vld [vmem:[#allocation7 + $0x428] sm:$0xff] }
 0x248   : > { %2069 = vmatprep.subr.mxu0 %v2411_v26  ;;  %2033 = vmatpush3.msra.mxu1 %v1012_v19  ;;  %v1369_v19 = vld [vmem:[#allocation7 + $0x420] sm:$0xff] }
 0x249   : > { %2070 = vmatpush3.msra.mxu0 %v1101_v20  ;;  %2034 = vmatprep.subr.mxu1 %v2411_v26  ;;  %v1368_v20 = vld [vmem:[#allocation7 + $0x418] sm:$0xff] }
 0x24a   : > { %2071 = vmatprep.subr.mxu0 %v2411_v26  ;;  %2035 = vmatpush3.msra.mxu1 %v1011_v21  ;;  %v1367_v21 = vld [vmem:[#allocation7 + $0x410] sm:$0xff] }
 0x24b   : > { %2072 = vmatpush3.msra.mxu0 %v1100_v22  ;;  %2036 = vmatprep.subr.mxu1 %v2411_v26  ;;  %v1366_v22 = vld [vmem:[#allocation7 + $0x408] sm:$0xff] }
 0x24c   : > { %2073 = vmatprep.subr.mxu0 %v2411_v26  ;;  %2037 = vmatpush3.msra.mxu1 %v1010_v23  ;;  %v1365_v23 = vld [vmem:[#allocation7 + $0x400] sm:$0xff] }
 0x24d   : > { %2074 = vmatpush3.msra.mxu0 %v1099_v24  ;;  %2038 = vmatprep.subr.mxu1 %v2411_v26 }
 0x24e   : > { %2075 = vmatprep.subr.mxu0 %v2411_v26  ;;  %2039 = vmatpush3.msra.mxu1 %v1009_v25 }
 0x24f   : > { %2076 = vmatpush3.msra.mxu0 %v1098_v27  ;;  %2040 = vmatprep.subr.mxu1 %v2411_v26 }
 0x250   : > { %2077 = vmatprep.subr.mxu0 %v2411_v26  ;;  %2041 = vmatpush3.msra.mxu1 %v1008_v28 }
 0x251   : > { %2078 = vmatpush3.msra.mxu0 %v1097_v30  ;;  %2042 = vmatprep.subr.mxu1 %v2411_v26 }
 0x252   : > { %2079 = vmatprep.subr.mxu0 %v2411_v26  ;;  %2043 = vmatpush3.msra.mxu1 %v1007_v32 }
 0x253   : > { %2080 = vmatpush3.msra.mxu0 %v1096_v33  ;;  %2044 = vmatprep.subr.mxu1 %v2411_v26 }
 0x254   : > { %2081 = vmatprep.subr.mxu0 %v2411_v26  ;;  %2045 = vmatpush3.msra.mxu1 %v1006_v34 }
 0x255   : > { %2082 = vmatpush3.msra.mxu0 %v1095_v35  ;;  %2083 = vmatprep.mubr.msk.f32.mxu0 %vm2412_vm1, %v2411_v26 }
 0x256   : > { %2046 = vmatprep.subr.mxu1 %v2411_v26  ;;  %2084 = vmatmul.mubr.f32.vlgmr.msra.gmra.mxu0 %v1111_v36 }
 0x257   : > { %2121 = vmatprep.subr.mxu0 %v2411_v26  ;;  %2047 = vmatpush3.msra.mxu1 %v1005_v37 }
 0x258   : > { %2048 = vmatprep.mubr.msk.f32.mxu1 %vm2412_vm1, %v2411_v26  ;;  %2122 = vmatpush3.msra.mxu0 %v1290_v38 }
 0x259   : > { %2049 = vmatmul.mubr.f32.vlgmr.msra.gmra.mxu1 %v1021_v39  ;;  %2086 = vmatprep.subr.mxu1 %v2411_v26 }
 0x25a   : > { %2123 = vmatprep.subr.mxu0 %v2411_v26  ;;  %2087 = vmatpush3.msra.mxu1 %v1200_v40 }
 0x25b   : > { %2124 = vmatpush3.msra.mxu0 %v1289_v41  ;;  %2088 = vmatprep.subr.mxu1 %v2411_v26 }
 0x25c   : > { %2125 = vmatprep.subr.mxu0 %v2411_v26  ;;  %2089 = vmatpush3.msra.mxu1 %v1199_v42 }
 0x25d   : > { %2126 = vmatpush3.msra.mxu0 %v1288_v43  ;;  %2090 = vmatprep.subr.mxu1 %v2411_v26 }
 0x25e   : > { %2127 = vmatprep.subr.mxu0 %v2411_v26  ;;  %2091 = vmatpush3.msra.mxu1 %v1198_v44 }
 0x25f   : > { %2128 = vmatpush3.msra.mxu0 %v1287_v45  ;;  %2092 = vmatprep.subr.mxu1 %v2411_v26 }
 0x260   : > { %2129 = vmatprep.subr.mxu0 %v2411_v26  ;;  %2093 = vmatpush3.msra.mxu1 %v1197_v46 }
 0x261   : > { %2130 = vmatpush3.msra.mxu0 %v1286_v47  ;;  %2094 = vmatprep.subr.mxu1 %v2411_v26 }
 0x262   : > { %2131 = vmatprep.subr.mxu0 %v2411_v26  ;;  %2095 = vmatpush3.msra.mxu1 %v1196_v48 }
 0x263   : > { %2132 = vmatpush3.msra.mxu0 %v1285_v49  ;;  %2096 = vmatprep.subr.mxu1 %v2411_v26  ;;  %v1452_v49 = vld [vmem:[#allocation9] sm:$0x1] }
 0x264   : > { %2133 = vmatprep.subr.mxu0 %v2411_v26  ;;  %2097 = vmatpush3.msra.mxu1 %v1195_v50 }
 0x265   : > { %2134 = vmatpush3.msra.mxu0 %v1284_v51  ;;  %2098 = vmatprep.subr.mxu1 %v2411_v26 }
 0x266   : > { %2135 = vmatprep.subr.mxu0 %v2411_v26  ;;  %2099 = vmatpush3.msra.mxu1 %v1194_v52 }
 0x267   : > { %2136 = vmatpush3.msra.mxu0 %v1283_v53  ;;  %2100 = vmatprep.subr.mxu1 %v2411_v26 }
 0x268   : > { %2137 = vmatprep.subr.mxu0 %v2411_v26  ;;  %2101 = vmatpush3.msra.mxu1 %v1193_v54 }
 0x269   : > { %2138 = vmatpush3.msra.mxu0 %v1282_v55  ;;  %2102 = vmatprep.subr.mxu1 %v2411_v26 }
 0x26a   : > { %2139 = vmatprep.subr.mxu0 %v2411_v26  ;;  %2103 = vmatpush3.msra.mxu1 %v1192_v56 }
 0x26b   : > { %2140 = vmatpush3.msra.mxu0 %v1281_v57  ;;  %2104 = vmatprep.subr.mxu1 %v2411_v26 }
 0x26c   : > { %2141 = vmatprep.subr.mxu0 %v2411_v26  ;;  %2105 = vmatpush3.msra.mxu1 %v1191_v58 }
 0x26d   : > { %2142 = vmatpush3.msra.mxu0 %v1280_v59  ;;  %2106 = vmatprep.subr.mxu1 %v2411_v26 }
 0x26e   : > { %2143 = vmatprep.subr.mxu0 %v2411_v26  ;;  %2107 = vmatpush3.msra.mxu1 %v1190_v60 }
 0x26f   : > { %2144 = vmatpush3.msra.mxu0 %v1279_v61  ;;  %2108 = vmatprep.subr.mxu1 %v2411_v26 }
 0x270   : > { %2145 = vmatprep.subr.mxu0 %v2411_v26  ;;  %2109 = vmatpush3.msra.mxu1 %v1189_v62 }
 0x271   : > { %2146 = vmatpush3.msra.mxu0 %v1278_v63  ;;  %2110 = vmatprep.subr.mxu1 %v2411_v26 }
 0x272   : > { %2147 = vmatprep.subr.mxu0 %v2411_v26  ;;  %2111 = vmatpush3.msra.mxu1 %v1188_v0 }
 0x273   : > { %2148 = vmatpush3.msra.mxu0 %v1277_v1  ;;  %2112 = vmatprep.subr.mxu1 %v2411_v26 }
 0x274   : > { %2149 = vmatprep.subr.mxu0 %v2411_v26  ;;  %2113 = vmatpush3.msra.mxu1 %v1187_v2 }
 0x275   : > { %2150 = vmatpush3.msra.mxu0 %v1276_v3  ;;  %2114 = vmatprep.subr.mxu1 %v2411_v26 }
 0x276   : > { %2151 = vmatprep.subr.mxu0 %v2411_v26  ;;  %2115 = vmatpush3.msra.mxu1 %v1186_v4 }
 0x277   : > { %2152 = vmatpush3.msra.mxu0 %v1275_v5  ;;  %2153 = vmatprep.mubr.msk.f32.mxu0 %vm2412_vm1, %v2411_v26 }
 0x278   : > { %2116 = vmatprep.subr.mxu1 %v2411_v26  ;;  %2154 = vmatmul.mubr.f32.vlgmr.msra.gmra.mxu0 %v1291_v6 }
 0x279   : > { %2117 = vmatpush3.msra.mxu1 %v1185_v7  ;;  %2118 = vmatprep.mubr.msk.f32.mxu1 %vm2412_vm1, %v2411_v26 }
 0x27a   : > { %2119 = vmatmul.mubr.f32.vlgmr.msra.gmra.mxu1 %v1201_v8  ;;  %2156 = vmatprep.subr.mxu1 %v2411_v26 }
 0x27b   : > { %2157 = vmatpush3.msra.mxu1 %v1380_v9  ;;  %2188 = vmatprep.mubr.msk.f32.mxu1 %vm2412_vm1, %v2411_v26 }
 0x27c   : > { %2158 = vmatprep.subr.mxu1 %v2411_v26 }
 0x27d   : > { %2159 = vmatpush3.msra.mxu1 %v1379_v10 }
 0x27e   : > { %2160 = vmatprep.subr.mxu1 %v2411_v26 }
 0x27f   : > { %2161 = vmatpush3.msra.mxu1 %v1378_v11 }
 0x280   : > { %2162 = vmatprep.subr.mxu1 %v2411_v26 }
 0x281   : > { %2163 = vmatpush3.msra.mxu1 %v1377_v31 }
 0x282   : > { %2164 = vmatprep.subr.mxu1 %v2411_v26 }
 0x283   : > { %2165 = vmatpush3.msra.mxu1 %v1376_v12 }
 0x284   : > { %2166 = vmatprep.subr.mxu1 %v2411_v26 }
 0x285   : > { %2167 = vmatpush3.msra.mxu1 %v1375_v13 }
 0x286   : > { %2168 = vmatprep.subr.mxu1 %v2411_v26 }
 0x287   : > { %2169 = vmatpush3.msra.mxu1 %v1374_v14 }
 0x288   : > { %2170 = vmatprep.subr.mxu1 %v2411_v26 }
 0x289   : > { %2171 = vmatpush3.msra.mxu1 %v1373_v15 }
 0x28a   : > { %2172 = vmatprep.subr.mxu1 %v2411_v26 }
 0x28b   : > { %2173 = vmatpush3.msra.mxu1 %v1372_v16 }
 0x28c   : > { %2174 = vmatprep.subr.mxu1 %v2411_v26 }
 0x28d   : > { %2175 = vmatpush3.msra.mxu1 %v1371_v17 }
 0x28e   : > { %2176 = vmatprep.subr.mxu1 %v2411_v26 }
 0x28f   : > { %2177 = vmatpush3.msra.mxu1 %v1370_v18 }
 0x290   : > { %2178 = vmatprep.subr.mxu1 %v2411_v26 }
 0x291   : > { %2179 = vmatpush3.msra.mxu1 %v1369_v19 }
 0x292   : > { %2180 = vmatprep.subr.mxu1 %v2411_v26 }
 0x293   : > { %2181 = vmatpush3.msra.mxu1 %v1368_v20 }
 0x294   : > { %2182 = vmatprep.subr.mxu1 %v2411_v26 }
 0x295   : > { %2183 = vmatpush3.msra.mxu1 %v1367_v21 }
 0x296   : > { %2184 = vmatprep.subr.mxu1 %v2411_v26 }
 0x297   : > { %2185 = vmatpush3.msra.mxu1 %v1366_v22 }
 0x298   : > { %2186 = vmatprep.subr.mxu1 %v2411_v26 }
 0x299   : > { %2187 = vmatpush3.msra.mxu1 %v1365_v23 }
 0x29a   : > { %2189 = vmatmul.mubr.f32.vlgmr.msra.gmra.mxu1 %v2642_v29 }
 0x2d4   : > { %v820_v24 = vpop.f32.mrf.mxu0 }
 0x2d6   : > { %v750_v25 = vpop.f32.mrf.mxu1  ;;  %v1945_v27 = vpop.f32.mrf.mxu0 }
 0x2d7   : > { %v821_v28 = vadd.f32 %v820_v24, %v750_v25 }
 0x2d8   : > { %v1910_v30 = vpop.f32.mrf.mxu1 }
 0x2f4   : > { %v999_v32 = vpop.f32.mrf.mxu0 }
 0x2f6   : > { %v2015_v33 = vpop.f32.mrf.mxu0 }
 0x2f7   : > { %v909_v34 = vpop.f32.mrf.mxu1 }
 0x2f8   : > { %v913_v35 = vadd.f32 %v909_v34, %v821_v28 }
 0x2f9   : > { %v1980_v36 = vpop.f32.mrf.mxu1 }
 0x2fa   : > { %v1003_v37 = vadd.f32 %v999_v32, %v913_v35 }
 0x316   : > { %v1179_v38 = vpop.f32.mrf.mxu0 }
 0x318   : > { %v2085_v39 = vpop.f32.mrf.mxu0 }
 0x319   : > { %v1089_v40 = vpop.f32.mrf.mxu1 }
 0x31a   : > { %v1093_v44 = vadd.f32 %v1089_v40, %v1003_v37 }
 0x31b   : > { %v2050_v41 = vpop.f32.mrf.mxu1 }
 0x31c   : > { %v1183_v45 = vadd.f32 %v1179_v38, %v1093_v44 }
 0x338   : > { %v1359_v26 = vpop.f32.mrf.mxu0 }
 0x33a   : > { %v1269_v42 = vpop.f32.mrf.mxu1  ;;  %v2155_v43 = vpop.f32.mrf.mxu0 }
 0x33b   : > { %v1273_v46 = vadd.f32 %v1269_v42, %v1183_v45 }
 0x33c   : > { %v2120_v29 = vpop.f32.mrf.mxu1 }
 0x33d   : > { %v1363_v47 = vadd.f32 %v1359_v26, %v1273_v46 }
 0x35a   : > { %v1447_v48 = vpop.f32.mrf.mxu1 }
 0x35b   : > { %v1451_v50 = vadd.f32 %v1447_v48, %v1363_v47 }
 0x35c   : > { %v2190_v51 = vpop.f32.mrf.mxu1 }
 0x35d   : > { %v1453_v52 = vadd.f32 %v1452_v49, %v1451_v50 }
 0x35f   : > { %1454 = vst [vmem:[%s403_s13] sm:$0x1] %v1453_v52 }
 0x360 PF: > { %s22_s27 = sadd.s32 1, %s2402_s27  }
 0x361   : > { %p19_p2 = scmp.ge.s32.totalorder %s22_s27, 4  }
 0x363   :  { %21 = sbr.rel (!%p19_p2) target bundleno = 3 (0x3), region = 122 }
 0x368   :  { %1488 = vsyncpa [#allocation3], 1 }
 0x369   :  { %1490 = vsyncpa [#allocation3 + $0x1], 1 }
 0x36a   :  { %1491 = vsyncpa [#allocation5], 1 }
 0x36b   :  { %1492 = vsyncpa [#allocation8], 1 }

// kernel: geoformer_forward.7
= control target key start
LH: loop header
LB: loop body
LE: loop exit
PB: predicated region body
PF: predicated region fallthrough
CT: control target
= control target key end

     0   :  { %s1617_s12 = smov 0   ;;  %s1619_s13 = smov 0   ;;  %s2002_s0 = inlined_call_operand.vmem [shape: bf16[2,384], index: 0, kind: input, shape index: {}]   ;;  %s2003_s1 = inlined_call_operand.vmem [shape: bf16[384,11776], index: 1, kind: input, shape index: {}]   ;;  %s2004_s2 = inlined_call_operand.vmem [shape: f32[1,11776], index: 2, kind: input, shape index: {}]   ;;  %s2005_s3 = inlined_call_operand.vmem [shape: f32[2,11776], index: 3, kind: output, shape index: {}]  }
   0x1   :  { %s1621_s14 = smov 0  }
   0x2 LB: > { %s1287_s15 = sadd.s32 4294967295, %s1592_s14   ;;  %s1634_s16 = sadd.s32 1, %s1592_s14   ;;  %s1592_s14 = sphi %s1621_s14, %s2008_s14   ;;  %s1588_s13 = sphi %s1619_s13, %s2007_s13   ;;  %s1584_s12 = sphi %s1617_s12, %s2006_s12  }
   0x3   : > { %s38_s17 = ssub.s32 %s1592_s14, %s1634_s16  ;;  %s41_s18 = sadd.s32 1, %s1588_s13 }
   0x4   : > { %p39_p0 = scmp.eq.s32.totalorder %s38_s17, 0  ;;  %p48_p1 = scmp.ne.s32.totalorder %s1588_s13, %s1584_s12 }
   0x5   : > { %p49_p2 = scmp.eq.s32.totalorder %s1592_s14, 0  ;;  %p1290_p4 = scmp.ge.s32.totalorder %s1592_s14, 23 }
   0x6   : > { %s1643_s19 = scalar_select %p39_p0, %s1588_s13, %s41_s18  }
   0x7   : > { %p50_p3 = por %p49_p2, %p48_p1  ;;  %129 = sbr.rel (%p1290_p4) target bundleno = 65 (0x41), region = 20 }
   0xc   : > { %132 = sbr.rel (!%p50_p3) target bundleno = 65 (0x41), region = 24  ;;  %s134_s20 = sand.u32 (%p50_p3), 1, %s1588_s13  }
   0xd   : > { %s1396_s21 = sshll.u32 (%p50_p3), %s1592_s14, 4  ;;  %s1397_s22 = smul.u32 (%p50_p3), 768, %s134_s20 }
   0xe   : > { %s1651_s25 = scalar_lea.vmem (%p50_p3), %s2003_s1, %s1396_s21 }
   0xf   : > { %v152_v0 = vld [vmem:[%s1651_s25] sm:$0xff] (%p50_p3)  ;;  %v154_v1 = vld [vmem:[%s1651_s25 + $0x8] sm:$0xff] (%p50_p3)  ;;  %v156_v2 = vld [vmem:[%s1651_s25 + $0x170] sm:$0xff] (%p50_p3)  ;;  %s1659_s26 = scalar_lea.vmem (%p50_p3), [#allocation2], %s1397_s22 }
  0x10   : > { %v158_v3 = vld [vmem:[%s1651_s25 + $0x178] sm:$0xff] (%p50_p3)  ;;  %v160_v4 = vld [vmem:[%s1651_s25 + $0x2e0] sm:$0xff] (%p50_p3)  ;;  %v162_v5 = vld [vmem:[%s1651_s25 + $0x2e8] sm:$0xff] (%p50_p3)  ;;  %153 = vst [vmem:[%s1659_s26] sm:$0xff] (%p50_p3), %v152_v0 }
  0x11   : > { %155 = vst [vmem:[%s1659_s26 + $0x8] sm:$0xff] %v154_v1  ;;  %157 = vst [vmem:[%s1659_s26 + $0x10] sm:$0xff] %v156_v2  ;;  %v164_v6 = vld [vmem:[%s1651_s25 + $0x450] sm:$0xff]  ;;  %v166_v7 = vld [vmem:[%s1651_s25 + $0x458] sm:$0xff] }
  0x12   : > { %159 = vst [vmem:[%s1659_s26 + $0x18] sm:$0xff] %v158_v3  ;;  %161 = vst [vmem:[%s1659_s26 + $0x20] sm:$0xff] %v160_v4  ;;  %v168_v8 = vld [vmem:[%s1651_s25 + $0x5c0] sm:$0xff]  ;;  %v170_v9 = vld [vmem:[%s1651_s25 + $0x5c8] sm:$0xff] }
  0x13   : > { %163 = vst [vmem:[%s1659_s26 + $0x28] sm:$0xff] %v162_v5  ;;  %165 = vst [vmem:[%s1659_s26 + $0x30] sm:$0xff] %v164_v6  ;;  %v172_v10 = vld [vmem:[%s1651_s25 + $0x730] sm:$0xff]  ;;  %v174_v11 = vld [vmem:[%s1651_s25 + $0x738] sm:$0xff] }
  0x14   : > { %167 = vst [vmem:[%s1659_s26 + $0x38] sm:$0xff] %v166_v7  ;;  %169 = vst [vmem:[%s1659_s26 + $0x40] sm:$0xff] %v168_v8  ;;  %v176_v12 = vld [vmem:[%s1651_s25 + $0x8a0] sm:$0xff]  ;;  %v178_v13 = vld [vmem:[%s1651_s25 + $0x8a8] sm:$0xff] }
  0x15   : > { %171 = vst [vmem:[%s1659_s26 + $0x48] sm:$0xff] %v170_v9  ;;  %173 = vst [vmem:[%s1659_s26 + $0x50] sm:$0xff] %v172_v10  ;;  %v180_v14 = vld [vmem:[%s1651_s25 + $0xa10] sm:$0xff]  ;;  %v182_v15 = vld [vmem:[%s1651_s25 + $0xa18] sm:$0xff] }
  0x16   : > { %175 = vst [vmem:[%s1659_s26 + $0x58] sm:$0xff] %v174_v11  ;;  %177 = vst [vmem:[%s1659_s26 + $0x60] sm:$0xff] %v176_v12  ;;  %v184_v16 = vld [vmem:[%s1651_s25 + $0xb80] sm:$0xff]  ;;  %v186_v17 = vld [vmem:[%s1651_s25 + $0xb88] sm:$0xff] }
  0x17   : > { %179 = vst [vmem:[%s1659_s26 + $0x68] sm:$0xff] %v178_v13  ;;  %181 = vst [vmem:[%s1659_s26 + $0x70] sm:$0xff] %v180_v14  ;;  %v188_v18 = vld [vmem:[%s1651_s25 + $0xcf0] sm:$0xff]  ;;  %v190_v19 = vld [vmem:[%s1651_s25 + $0xcf8] sm:$0xff] }
  0x18   : > { %183 = vst [vmem:[%s1659_s26 + $0x78] sm:$0xff] %v182_v15  ;;  %185 = vst [vmem:[%s1659_s26 + $0x80] sm:$0xff] %v184_v16  ;;  %v192_v20 = vld [vmem:[%s1651_s25 + $0xe60] sm:$0xff]  ;;  %v194_v21 = vld [vmem:[%s1651_s25 + $0xe68] sm:$0xff] }
  0x19   : > { %187 = vst [vmem:[%s1659_s26 + $0x88] sm:$0xff] %v186_v17  ;;  %189 = vst [vmem:[%s1659_s26 + $0x90] sm:$0xff] %v188_v18  ;;  %v196_v22 = vld [vmem:[%s1651_s25 + $0xfd0] sm:$0xff]  ;;  %v198_v23 = vld [vmem:[%s1651_s25 + $0xfd8] sm:$0xff] }
  0x1a   : > { %191 = vst [vmem:[%s1659_s26 + $0x98] sm:$0xff] %v190_v19  ;;  %193 = vst [vmem:[%s1659_s26 + $0xa0] sm:$0xff] %v192_v20  ;;  %v200_v24 = vld [vmem:[%s1651_s25 + $0x1140] sm:$0xff]  ;;  %v202_v25 = vld [vmem:[%s1651_s25 + $0x1148] sm:$0xff] }
  0x1b   : > { %195 = vst [vmem:[%s1659_s26 + $0xa8] sm:$0xff] %v194_v21  ;;  %197 = vst [vmem:[%s1659_s26 + $0xb0] sm:$0xff] %v196_v22  ;;  %v204_v26 = vld [vmem:[%s1651_s25 + $0x12b0] sm:$0xff]  ;;  %v206_v27 = vld [vmem:[%s1651_s25 + $0x12b8] sm:$0xff] }
  0x1c   : > { %199 = vst [vmem:[%s1659_s26 + $0xb8] sm:$0xff] %v198_v23  ;;  %201 = vst [vmem:[%s1659_s26 + $0xc0] sm:$0xff] %v200_v24  ;;  %v208_v28 = vld [vmem:[%s1651_s25 + $0x1420] sm:$0xff]  ;;  %v210_v29 = vld [vmem:[%s1651_s25 + $0x1428] sm:$0xff] }
  0x1d   : > { %203 = vst [vmem:[%s1659_s26 + $0xc8] sm:$0xff] %v202_v25  ;;  %205 = vst [vmem:[%s1659_s26 + $0xd0] sm:$0xff] %v204_v26  ;;  %v212_v30 = vld [vmem:[%s1651_s25 + $0x1590] sm:$0xff]  ;;  %v214_v31 = vld [vmem:[%s1651_s25 + $0x1598] sm:$0xff] }
  0x1e   : > { %207 = vst [vmem:[%s1659_s26 + $0xd8] sm:$0xff] %v206_v27  ;;  %209 = vst [vmem:[%s1659_s26 + $0xe0] sm:$0xff] %v208_v28  ;;  %v216_v32 = vld [vmem:[%s1651_s25 + $0x1700] sm:$0xff]  ;;  %v218_v33 = vld [vmem:[%s1651_s25 + $0x1708] sm:$0xff] }
  0x1f   : > { %211 = vst [vmem:[%s1659_s26 + $0xe8] sm:$0xff] %v210_v29  ;;  %213 = vst [vmem:[%s1659_s26 + $0xf0] sm:$0xff] %v212_v30  ;;  %v220_v34 = vld [vmem:[%s1651_s25 + $0x1870] sm:$0xff]  ;;  %v222_v35 = vld [vmem:[%s1651_s25 + $0x1878] sm:$0xff] }
  0x20   : > { %215 = vst [vmem:[%s1659_s26 + $0xf8] sm:$0xff] %v214_v31  ;;  %217 = vst [vmem:[%s1659_s26 + $0x100] sm:$0xff] %v216_v32  ;;  %v224_v36 = vld [vmem:[%s1651_s25 + $0x19e0] sm:$0xff]  ;;  %v226_v37 = vld [vmem:[%s1651_s25 + $0x19e8] sm:$0xff] }
  0x21   : > { %219 = vst [vmem:[%s1659_s26 + $0x108] sm:$0xff] %v218_v33  ;;  %221 = vst [vmem:[%s1659_s26 + $0x110] sm:$0xff] %v220_v34  ;;  %v228_v38 = vld [vmem:[%s1651_s25 + $0x1b50] sm:$0xff]  ;;  %v230_v39 = vld [vmem:[%s1651_s25 + $0x1b58] sm:$0xff] }
  0x22   : > { %223 = vst [vmem:[%s1659_s26 + $0x118] sm:$0xff] %v222_v35  ;;  %225 = vst [vmem:[%s1659_s26 + $0x120] sm:$0xff] %v224_v36  ;;  %v232_v40 = vld [vmem:[%s1651_s25 + $0x1cc0] sm:$0xff]  ;;  %v234_v41 = vld [vmem:[%s1651_s25 + $0x1cc8] sm:$0xff] }
  0x23   : > { %227 = vst [vmem:[%s1659_s26 + $0x128] sm:$0xff] %v226_v37  ;;  %229 = vst [vmem:[%s1659_s26 + $0x130] sm:$0xff] %v228_v38  ;;  %v236_v42 = vld [vmem:[%s1651_s25 + $0x1e30] sm:$0xff]  ;;  %v238_v43 = vld [vmem:[%s1651_s25 + $0x1e38] sm:$0xff] }
  0x24   : > { %231 = vst [vmem:[%s1659_s26 + $0x138] sm:$0xff] %v230_v39  ;;  %233 = vst [vmem:[%s1659_s26 + $0x140] sm:$0xff] %v232_v40  ;;  %v240_v44 = vld [vmem:[%s1651_s25 + $0x1fa0] sm:$0xff]  ;;  %v242_v45 = vld [vmem:[%s1651_s25 + $0x1fa8] sm:$0xff] }
  0x25   : > { %235 = vst [vmem:[%s1659_s26 + $0x148] sm:$0xff] %v234_v41  ;;  %237 = vst [vmem:[%s1659_s26 + $0x150] sm:$0xff] %v236_v42  ;;  %v244_v46 = vld [vmem:[%s1651_s25 + $0x2110] sm:$0xff]  ;;  %v246_v47 = vld [vmem:[%s1651_s25 + $0x2118] sm:$0xff] }
  0x26   : > { %239 = vst [vmem:[%s1659_s26 + $0x158] sm:$0xff] %v238_v43  ;;  %241 = vst [vmem:[%s1659_s26 + $0x160] sm:$0xff] %v240_v44  ;;  %v248_v48 = vld [vmem:[%s1651_s25 + $0x2280] sm:$0xff]  ;;  %v250_v49 = vld [vmem:[%s1651_s25 + $0x2288] sm:$0xff] }
  0x27   : > { %243 = vst [vmem:[%s1659_s26 + $0x168] sm:$0xff] %v242_v45  ;;  %245 = vst [vmem:[%s1659_s26 + $0x170] sm:$0xff] %v244_v46  ;;  %v252_v50 = vld [vmem:[%s1651_s25 + $0x23f0] sm:$0xff]  ;;  %v254_v51 = vld [vmem:[%s1651_s25 + $0x23f8] sm:$0xff] }
  0x28   : > { %247 = vst [vmem:[%s1659_s26 + $0x178] sm:$0xff] %v246_v47  ;;  %249 = vst [vmem:[%s1659_s26 + $0x180] sm:$0xff] %v248_v48  ;;  %v256_v52 = vld [vmem:[%s1651_s25 + $0x2560] sm:$0xff]  ;;  %v258_v53 = vld [vmem:[%s1651_s25 + $0x2568] sm:$0xff] }
  0x29   : > { %251 = vst [vmem:[%s1659_s26 + $0x188] sm:$0xff] %v250_v49  ;;  %253 = vst [vmem:[%s1659_s26 + $0x190] sm:$0xff] %v252_v50  ;;  %v260_v54 = vld [vmem:[%s1651_s25 + $0x26d0] sm:$0xff]  ;;  %v262_v55 = vld [vmem:[%s1651_s25 + $0x26d8] sm:$0xff] }
  0x2a   : > { %255 = vst [vmem:[%s1659_s26 + $0x198] sm:$0xff] %v254_v51  ;;  %257 = vst [vmem:[%s1659_s26 + $0x1a0] sm:$0xff] %v256_v52  ;;  %v264_v56 = vld [vmem:[%s1651_s25 + $0x2840] sm:$0xff]  ;;  %v266_v57 = vld [vmem:[%s1651_s25 + $0x2848] sm:$0xff] }
  0x2b   : > { %259 = vst [vmem:[%s1659_s26 + $0x1a8] sm:$0xff] %v258_v53  ;;  %261 = vst [vmem:[%s1659_s26 + $0x1b0] sm:$0xff] %v260_v54  ;;  %v268_v58 = vld [vmem:[%s1651_s25 + $0x29b0] sm:$0xff]  ;;  %v270_v59 = vld [vmem:[%s1651_s25 + $0x29b8] sm:$0xff] }
  0x2c   : > { %263 = vst [vmem:[%s1659_s26 + $0x1b8] sm:$0xff] %v262_v55  ;;  %265 = vst [vmem:[%s1659_s26 + $0x1c0] sm:$0xff] %v264_v56  ;;  %v272_v60 = vld [vmem:[%s1651_s25 + $0x2b20] sm:$0xff]  ;;  %v274_v61 = vld [vmem:[%s1651_s25 + $0x2b28] sm:$0xff] }
  0x2d   : > { %267 = vst [vmem:[%s1659_s26 + $0x1c8] sm:$0xff] %v266_v57  ;;  %269 = vst [vmem:[%s1659_s26 + $0x1d0] sm:$0xff] %v268_v58  ;;  %v276_v62 = vld [vmem:[%s1651_s25 + $0x2c90] sm:$0xff]  ;;  %v278_v63 = vld [vmem:[%s1651_s25 + $0x2c98] sm:$0xff] }
  0x2e   : > { %271 = vst [vmem:[%s1659_s26 + $0x1d8] sm:$0xff] %v270_v59  ;;  %273 = vst [vmem:[%s1659_s26 + $0x1e0] sm:$0xff] %v272_v60  ;;  %v280_v0 = vld [vmem:[%s1651_s25 + $0x2e00] sm:$0xff]  ;;  %v282_v1 = vld [vmem:[%s1651_s25 + $0x2e08] sm:$0xff] }
  0x2f   : > { %275 = vst [vmem:[%s1659_s26 + $0x1e8] sm:$0xff] %v274_v61  ;;  %277 = vst [vmem:[%s1659_s26 + $0x1f0] sm:$0xff] %v276_v62  ;;  %v284_v2 = vld [vmem:[%s1651_s25 + $0x2f70] sm:$0xff]  ;;  %v286_v3 = vld [vmem:[%s1651_s25 + $0x2f78] sm:$0xff] }
  0x30   : > { %279 = vst [vmem:[%s1659_s26 + $0x1f8] sm:$0xff] %v278_v63  ;;  %281 = vst [vmem:[%s1659_s26 + $0x200] sm:$0xff] %v280_v0  ;;  %v288_v4 = vld [vmem:[%s1651_s25 + $0x30e0] sm:$0xff]  ;;  %v290_v5 = vld [vmem:[%s1651_s25 + $0x30e8] sm:$0xff] }
  0x31   : > { %283 = vst [vmem:[%s1659_s26 + $0x208] sm:$0xff] %v282_v1  ;;  %285 = vst [vmem:[%s1659_s26 + $0x210] sm:$0xff] %v284_v2  ;;  %v292_v6 = vld [vmem:[%s1651_s25 + $0x3250] sm:$0xff]  ;;  %v294_v7 = vld [vmem:[%s1651_s25 + $0x3258] sm:$0xff] }
  0x32   : > { %287 = vst [vmem:[%s1659_s26 + $0x218] sm:$0xff] %v286_v3  ;;  %289 = vst [vmem:[%s1659_s26 + $0x220] sm:$0xff] %v288_v4  ;;  %v296_v8 = vld [vmem:[%s1651_s25 + $0x33c0] sm:$0xff]  ;;  %v298_v9 = vld [vmem:[%s1651_s25 + $0x33c8] sm:$0xff] }
  0x33   : > { %291 = vst [vmem:[%s1659_s26 + $0x228] sm:$0xff] %v290_v5  ;;  %293 = vst [vmem:[%s1659_s26 + $0x230] sm:$0xff] %v292_v6  ;;  %v300_v10 = vld [vmem:[%s1651_s25 + $0x3530] sm:$0xff]  ;;  %v302_v11 = vld [vmem:[%s1651_s25 + $0x3538] sm:$0xff] }
  0x34   : > { %295 = vst [vmem:[%s1659_s26 + $0x238] sm:$0xff] %v294_v7  ;;  %297 = vst [vmem:[%s1659_s26 + $0x240] sm:$0xff] %v296_v8  ;;  %v304_v12 = vld [vmem:[%s1651_s25 + $0x36a0] sm:$0xff]  ;;  %v306_v13 = vld [vmem:[%s1651_s25 + $0x36a8] sm:$0xff] }
  0x35   : > { %299 = vst [vmem:[%s1659_s26 + $0x248] sm:$0xff] %v298_v9  ;;  %301 = vst [vmem:[%s1659_s26 + $0x250] sm:$0xff] %v300_v10  ;;  %v308_v14 = vld [vmem:[%s1651_s25 + $0x3810] sm:$0xff]  ;;  %v310_v15 = vld [vmem:[%s1651_s25 + $0x3818] sm:$0xff] }
  0x36   : > { %303 = vst [vmem:[%s1659_s26 + $0x258] sm:$0xff] %v302_v11  ;;  %305 = vst [vmem:[%s1659_s26 + $0x260] sm:$0xff] %v304_v12  ;;  %v312_v16 = vld [vmem:[%s1651_s25 + $0x3980] sm:$0xff]  ;;  %v314_v17 = vld [vmem:[%s1651_s25 + $0x3988] sm:$0xff] }
  0x37   : > { %307 = vst [vmem:[%s1659_s26 + $0x268] sm:$0xff] %v306_v13  ;;  %309 = vst [vmem:[%s1659_s26 + $0x270] sm:$0xff] %v308_v14  ;;  %v316_v18 = vld [vmem:[%s1651_s25 + $0x3af0] sm:$0xff]  ;;  %v318_v19 = vld [vmem:[%s1651_s25 + $0x3af8] sm:$0xff] }
  0x38   : > { %311 = vst [vmem:[%s1659_s26 + $0x278] sm:$0xff] %v310_v15  ;;  %313 = vst [vmem:[%s1659_s26 + $0x280] sm:$0xff] %v312_v16  ;;  %v320_v20 = vld [vmem:[%s1651_s25 + $0x3c60] sm:$0xff]  ;;  %v322_v21 = vld [vmem:[%s1651_s25 + $0x3c68] sm:$0xff] }
  0x39   : > { %315 = vst [vmem:[%s1659_s26 + $0x288] sm:$0xff] %v314_v17  ;;  %317 = vst [vmem:[%s1659_s26 + $0x290] sm:$0xff] %v316_v18  ;;  %v324_v22 = vld [vmem:[%s1651_s25 + $0x3dd0] sm:$0xff]  ;;  %v326_v23 = vld [vmem:[%s1651_s25 + $0x3dd8] sm:$0xff] }
  0x3a   : > { %319 = vst [vmem:[%s1659_s26 + $0x298] sm:$0xff] %v318_v19  ;;  %321 = vst [vmem:[%s1659_s26 + $0x2a0] sm:$0xff] %v320_v20  ;;  %v328_v24 = vld [vmem:[%s1651_s25 + $0x3f40] sm:$0xff]  ;;  %v330_v25 = vld [vmem:[%s1651_s25 + $0x3f48] sm:$0xff] }
  0x3b   : > { %323 = vst [vmem:[%s1659_s26 + $0x2a8] sm:$0xff] %v322_v21  ;;  %325 = vst [vmem:[%s1659_s26 + $0x2b0] sm:$0xff] %v324_v22  ;;  %v332_v26 = vld [vmem:[%s1651_s25 + $0x40b0] sm:$0xff]  ;;  %v334_v27 = vld [vmem:[%s1651_s25 + $0x40b8] sm:$0xff] }
  0x3c   : > { %327 = vst [vmem:[%s1659_s26 + $0x2b8] sm:$0xff] %v326_v23  ;;  %329 = vst [vmem:[%s1659_s26 + $0x2c0] sm:$0xff] %v328_v24  ;;  %v336_v28 = vld [vmem:[%s1651_s25 + $0x4220] sm:$0xff]  ;;  %v338_v29 = vld [vmem:[%s1651_s25 + $0x4228] sm:$0xff] }
  0x3d   : > { %331 = vst [vmem:[%s1659_s26 + $0x2c8] sm:$0xff] %v330_v25  ;;  %333 = vst [vmem:[%s1659_s26 + $0x2d0] sm:$0xff] %v332_v26  ;;  %v340_v30 = vld [vmem:[%s1651_s25 + $0x4390] sm:$0xff]  ;;  %v342_v31 = vld [vmem:[%s1651_s25 + $0x4398] sm:$0xff] }
  0x3e   : > { %335 = vst [vmem:[%s1659_s26 + $0x2d8] sm:$0xff] %v334_v27  ;;  %337 = vst [vmem:[%s1659_s26 + $0x2e0] sm:$0xff] %v336_v28 }
  0x3f   : > { %339 = vst [vmem:[%s1659_s26 + $0x2e8] sm:$0xff] %v338_v29  ;;  %341 = vst [vmem:[%s1659_s26 + $0x2f0] sm:$0xff] %v340_v30 }
  0x40   : > { %343 = vst [vmem:[%s1659_s26 + $0x2f8] sm:$0xff] %v342_v31 }
  0x41 PF: > { %p1293_p5 = scmp.ge.s32.totalorder %s1592_s14, 1  ;;  %p356_p6 = scmp.lt.s32.totalorder %s1592_s14, 24 }
  0x43   : > { %p357_p7 = pnand %p1293_p5, %p356_p6 }
  0x44   : > { %s363_s27 = sand.u32 (!%p357_p7), 1, %s1584_s12   ;;  %s1294_s5 = sshll.u32 (!%p357_p7), %s1287_s15, 2 }
  0x45   : > { %360 = sbr.rel (%p357_p7) target bundleno = 379 (0x17b), region = 51  ;;  %p392_p8 = scmp.lt.s32.totalorder (!%p357_p7), %s1294_s5, 91 }
  0x46   : > { %s1398_s28 = smul.u32 (!%p357_p7), 768, %s363_s27 }
  0x48   : > { %s1858_s4 = scalar_lea.vmem (!%p357_p7), [#allocation2], %s1398_s28 }
  0x4a   : > { %v502_v32 = vlaneseq  ;;  %v1594_v33 = vmov 0   ;;  %v1595_v35 = vmov 1966171168   ;;  %v1426_v38 = vld [vmem:[%s1858_s4 + $0xe4] ss:$16 sps:$4 sm:$0xff]   ;;  %s2010_s5 = smov (!%p392_p8, %s1294_s5), 91 }
  0x4b   : > { %1102 = vmatprep.mubr.bf16.mxu1 %v1594_v33  ;;  %v532_v36 = vunpack.c.l.s4 %v1595_v35  ;;  %v1856_v37 = vld.sshfl [vmem:[%s2002_s0] sm:$0x13 pattern:$0x75316420]  ;;  %v1428_v41 = vld [vmem:[%s1858_s4 + $0x2e4] ss:$16 sps:$4 sm:$0xff]   ;;  %1029 = vmatprep.subr.bf16.mxu0 %v1426_v38  ;;  %s394_s8 = scalar_lea.vmem %s2004_s2, %s2010_s5 }
  0x4c   : > { %v1851_v34 = vshrl.u32 %v502_v32, 7  ;;  %v530_v40 = vcombine.high %v1856_v37, %v1856_v37  ;;  %v1430_v42 = vld [vmem:[%s1858_s4 + $0xe0] ss:$16 sps:$4 sm:$0xff]   ;;  %1070 = vmatprep.subr.bf16.mxu1 %v1428_v41  ;;  %v1432_v45 = vld [vmem:[%s1858_s4 + $0xc4] ss:$16 sps:$4 sm:$0xff]   ;;  %s1296_s9 = sshll.u32 %s2010_s5, 1 }
  0x4d   : > { %v533_v39 = vunpack.c.0.s8 %v532_v36  ;;  %v1431_v43 = vld [vmem:[%s1858_s4 + $0x2e0] ss:$16 sps:$4 sm:$0xff]   ;;  %1030 = vmatpush1.bf16.msra.mxu0 %v1430_v42  ;;  %v1434_v46 = vld [vmem:[%s1858_s4 + $0x2c4] ss:$16 sps:$4 sm:$0xff]   ;;  %v1478_v12 = vld [vmem:[%s1858_s4 + $0xec] ss:$16 sps:$4 sm:$0xff]   ;;  %s400_s12 = scalar_lea.vmem %s2005_s3, %s1296_s9 }
  0x4e   : > { %1071 = vmatpush1.bf16.msra.mxu1 %v1431_v43  ;;  %v1436_v47 = vld [vmem:[%s1858_s4 + $0xc0] ss:$16 sps:$4 sm:$0xff]   ;;  %1031 = vmatprep.subr.bf16.mxu0 %v1432_v45  ;;  %v1438_v50 = vld [vmem:[%s1858_s4 + $0xa4] ss:$16 sps:$4 sm:$0xff]   ;;  %v1476_v14 = vld [vmem:[%s1858_s4 + $0xe8] ss:$16 sps:$4 sm:$0xff]  }
  0x4f   : > { %v536_v44 = vsub.s32 %v533_v39, %v1851_v34  ;;  %v1437_v49 = vld [vmem:[%s1858_s4 + $0x2c0] ss:$16 sps:$4 sm:$0xff]   ;;  %1072 = vmatprep.subr.bf16.mxu1 %v1434_v46  ;;  %v1440_v51 = vld [vmem:[%s1858_s4 + $0x2a4] ss:$16 sps:$4 sm:$0xff]   ;;  %v1484_v17 = vld [vmem:[%s1858_s4 + $0xcc] ss:$16 sps:$4 sm:$0xff]  }
  0x50   : > { %v1442_v52 = vld [vmem:[%s1858_s4 + $0xa0] ss:$16 sps:$4 sm:$0xff]   ;;  %v1444_v54 = vld [vmem:[%s1858_s4 + $0x84] ss:$16 sps:$4 sm:$0xff]   ;;  %v1482_v18 = vld [vmem:[%s1858_s4 + $0xc8] ss:$16 sps:$4 sm:$0xff]  }
  0x51   : > { %v1870_v48 = vrot.slane %v530_v40, %v536_v44  ;;  %v1443_v53 = vld [vmem:[%s1858_s4 + $0x2a0] ss:$16 sps:$4 sm:$0xff]   ;;  %1032 = vmatpush1.bf16.msra.mxu0 %v1436_v47  ;;  %v1446_v55 = vld [vmem:[%s1858_s4 + $0x284] ss:$16 sps:$4 sm:$0xff]   ;;  %v1898_v9 = vrot.slane %v1856_v37, %v536_v44  ;;  %v1490_v21 = vld [vmem:[%s1858_s4 + $0xac] ss:$16 sps:$4 sm:$0xff]  }
  0x52   : > { %1073 = vmatpush1.bf16.msra.mxu1 %v1437_v49  ;;  %1033 = vmatprep.subr.bf16.mxu0 %v1438_v50  ;;  %v1448_v56 = vld [vmem:[%s1858_s4 + $0x80] ss:$16 sps:$4 sm:$0xff]   ;;  %v1450_v58 = vld [vmem:[%s1858_s4 + $0x64] ss:$16 sps:$4 sm:$0xff]   ;;  %v1488_v22 = vld [vmem:[%s1858_s4 + $0xa8] ss:$16 sps:$4 sm:$0xff]  }
  0x53   : > { %1061 = vmatprep.mubr.bf16.mxu0 %v1870_v48  ;;  %1074 = vmatprep.subr.bf16.mxu1 %v1440_v51  ;;  %v1449_v57 = vld [vmem:[%s1858_s4 + $0x280] ss:$16 sps:$4 sm:$0xff]   ;;  %v1452_v59 = vld [vmem:[%s1858_s4 + $0x264] ss:$16 sps:$4 sm:$0xff]   ;;  %v1905_v13 = vcombine.high %v1898_v9, %v1898_v9  ;;  %v1496_v25 = vld [vmem:[%s1858_s4 + $0x8c] ss:$16 sps:$4 sm:$0xff]  }
  0x54   : > { %v1454_v60 = vld [vmem:[%s1858_s4 + $0x60] ss:$16 sps:$4 sm:$0xff]   ;;  %v1456_v62 = vld [vmem:[%s1858_s4 + $0x44] ss:$16 sps:$4 sm:$0xff]   ;;  %v1494_v26 = vld [vmem:[%s1858_s4 + $0x88] ss:$16 sps:$4 sm:$0xff]  }
  0x55   : > { %1034 = vmatpush1.bf16.msra.mxu0 %v1442_v52  ;;  %v1455_v61 = vld [vmem:[%s1858_s4 + $0x260] ss:$16 sps:$4 sm:$0xff]   ;;  %v1458_v63 = vld [vmem:[%s1858_s4 + $0x244] ss:$16 sps:$4 sm:$0xff]   ;;  %v1502_v29 = vld [vmem:[%s1858_s4 + $0x6c] ss:$16 sps:$4 sm:$0xff]  }
  0x56   : > { %1075 = vmatpush1.bf16.msra.mxu1 %v1443_v53  ;;  %1035 = vmatprep.subr.bf16.mxu0 %v1444_v54  ;;  %v1460_v0 = vld [vmem:[%s1858_s4 + $0x40] ss:$16 sps:$4 sm:$0xff]   ;;  %v1462_v2 = vld [vmem:[%s1858_s4 + $0x24] ss:$16 sps:$4 sm:$0xff]   ;;  %v1500_v30 = vld [vmem:[%s1858_s4 + $0x68] ss:$16 sps:$4 sm:$0xff]  }
  0x57   : > { %1076 = vmatprep.subr.bf16.mxu1 %v1446_v55  ;;  %v1461_v1 = vld [vmem:[%s1858_s4 + $0x240] ss:$16 sps:$4 sm:$0xff]   ;;  %v1464_v3 = vld [vmem:[%s1858_s4 + $0x224] ss:$16 sps:$4 sm:$0xff]   ;;  %v1508_v35 = vld [vmem:[%s1858_s4 + $0x4c] ss:$16 sps:$4 sm:$0xff]  }
  0x58   : > { %v1466_v4 = vld [vmem:[%s1858_s4 + $0x20] ss:$16 sps:$4 sm:$0xff]   ;;  %v1468_v6 = vld [vmem:[%s1858_s4 + $0x4] ss:$16 sps:$4 sm:$0xff]   ;;  %v1506_v36 = vld [vmem:[%s1858_s4 + $0x48] ss:$16 sps:$4 sm:$0xff]  }
  0x59   : > { %1036 = vmatpush1.bf16.msra.mxu0 %v1448_v56  ;;  %v1467_v5 = vld [vmem:[%s1858_s4 + $0x220] ss:$16 sps:$4 sm:$0xff]   ;;  %v1470_v7 = vld [vmem:[%s1858_s4 + $0x204] ss:$16 sps:$4 sm:$0xff]   ;;  %v1514_v39 = vld [vmem:[%s1858_s4 + $0x2c] ss:$16 sps:$4 sm:$0xff]  }
  0x5a   : > { %1077 = vmatpush1.bf16.msra.mxu1 %v1449_v57  ;;  %1037 = vmatprep.subr.bf16.mxu0 %v1450_v58  ;;  %v1472_v8 = vld [vmem:[%s1858_s4] ss:$16 sps:$4 sm:$0xff]   ;;  %v1474_v11 = vld [vmem:[%s1858_s4 + $0x1e4] ss:$16 sps:$4 sm:$0xff]   ;;  %v1512_v40 = vld [vmem:[%s1858_s4 + $0x28] ss:$16 sps:$4 sm:$0xff]  }
  0x5b   : > { %1078 = vmatprep.subr.bf16.mxu1 %v1452_v59  ;;  %v1473_v10 = vld [vmem:[%s1858_s4 + $0x200] ss:$16 sps:$4 sm:$0xff]   ;;  %v1480_v16 = vld [vmem:[%s1858_s4 + $0x1c4] ss:$16 sps:$4 sm:$0xff]   ;;  %v1520_v43 = vld [vmem:[%s1858_s4 + $0xc] ss:$16 sps:$4 sm:$0xff]  }
  0x5c   : > { %v1479_v15 = vld [vmem:[%s1858_s4 + $0x1e0] ss:$16 sps:$4 sm:$0xff]   ;;  %v1486_v20 = vld [vmem:[%s1858_s4 + $0x1a4] ss:$16 sps:$4 sm:$0xff]   ;;  %v1518_v44 = vld [vmem:[%s1858_s4 + $0x8] ss:$16 sps:$4 sm:$0xff]  }
  0x5d   : > { %1038 = vmatpush1.bf16.msra.mxu0 %v1454_v60  ;;  %v1485_v19 = vld [vmem:[%s1858_s4 + $0x1c0] ss:$16 sps:$4 sm:$0xff]   ;;  %v1492_v24 = vld [vmem:[%s1858_s4 + $0x184] ss:$16 sps:$4 sm:$0xff]   ;;  %v1524_v46 = vld [vmem:[%s1858_s4 + $0x1ec] ss:$16 sps:$4 sm:$0xff]  }
  0x5e   : > { %1079 = vmatpush1.bf16.msra.mxu1 %v1455_v61  ;;  %1039 = vmatprep.subr.bf16.mxu0 %v1456_v62  ;;  %v1491_v23 = vld [vmem:[%s1858_s4 + $0x1a0] ss:$16 sps:$4 sm:$0xff]   ;;  %v1498_v28 = vld [vmem:[%s1858_s4 + $0x164] ss:$16 sps:$4 sm:$0xff]   ;;  %v1527_v47 = vld [vmem:[%s1858_s4 + $0x2ec] ss:$16 sps:$4 sm:$0xff]  }
  0x5f   : > { %1080 = vmatprep.subr.bf16.mxu1 %v1458_v63  ;;  %v1497_v27 = vld [vmem:[%s1858_s4 + $0x180] ss:$16 sps:$4 sm:$0xff]   ;;  %v1504_v32 = vld [vmem:[%s1858_s4 + $0x144] ss:$16 sps:$4 sm:$0xff]   ;;  %v1525_v49 = vld [vmem:[%s1858_s4 + $0x2e8] ss:$16 sps:$4 sm:$0xff]  }
  0x60   : > { %v1503_v31 = vld [vmem:[%s1858_s4 + $0x160] ss:$16 sps:$4 sm:$0xff]   ;;  %v1510_v38 = vld [vmem:[%s1858_s4 + $0x124] ss:$16 sps:$4 sm:$0xff]   ;;  %v1530_v50 = vld [vmem:[%s1858_s4 + $0x1cc] ss:$16 sps:$4 sm:$0xff]  }
  0x61   : > { %1040 = vmatpush1.bf16.msra.mxu0 %v1460_v0  ;;  %v1509_v37 = vld [vmem:[%s1858_s4 + $0x140] ss:$16 sps:$4 sm:$0xff]   ;;  %v1516_v42 = vld [vmem:[%s1858_s4 + $0x104] ss:$16 sps:$4 sm:$0xff]   ;;  %v1533_v51 = vld [vmem:[%s1858_s4 + $0x2cc] ss:$16 sps:$4 sm:$0xff]  }
  0x62   : > { %1081 = vmatpush1.bf16.msra.mxu1 %v1461_v1  ;;  %1041 = vmatprep.subr.bf16.mxu0 %v1462_v2  ;;  %v1515_v41 = vld [vmem:[%s1858_s4 + $0x120] ss:$16 sps:$4 sm:$0xff]   ;;  %v1528_v52 = vld [vmem:[%s1858_s4 + $0x1c8] ss:$16 sps:$4 sm:$0xff]   ;;  %v1536_v54 = vld [vmem:[%s1858_s4 + $0x1ac] ss:$16 sps:$4 sm:$0xff]  }
  0x63   : > { %1082 = vmatprep.subr.bf16.mxu1 %v1464_v3  ;;  %v1521_v45 = vld [vmem:[%s1858_s4 + $0x100] ss:$16 sps:$4 sm:$0xff]   ;;  %v1531_v53 = vld [vmem:[%s1858_s4 + $0x2c8] ss:$16 sps:$4 sm:$0xff]   ;;  %v1539_v55 = vld [vmem:[%s1858_s4 + $0x2ac] ss:$16 sps:$4 sm:$0xff]  }
  0x64   : > { %v1534_v56 = vld [vmem:[%s1858_s4 + $0x1a8] ss:$16 sps:$4 sm:$0xff]   ;;  %v1542_v58 = vld [vmem:[%s1858_s4 + $0x18c] ss:$16 sps:$4 sm:$0xff]  }
  0x65   : > { %1042 = vmatpush1.bf16.msra.mxu0 %v1466_v4  ;;  %v1537_v57 = vld [vmem:[%s1858_s4 + $0x2a8] ss:$16 sps:$4 sm:$0xff]   ;;  %v1545_v59 = vld [vmem:[%s1858_s4 + $0x28c] ss:$16 sps:$4 sm:$0xff]  }
  0x66   : > { %1083 = vmatpush1.bf16.msra.mxu1 %v1467_v5  ;;  %1043 = vmatprep.subr.bf16.mxu0 %v1468_v6  ;;  %v1540_v60 = vld [vmem:[%s1858_s4 + $0x188] ss:$16 sps:$4 sm:$0xff]   ;;  %v1551_v62 = vld [vmem:[%s1858_s4 + $0x26c] ss:$16 sps:$4 sm:$0xff]  }
  0x67   : > { %1084 = vmatprep.subr.bf16.mxu1 %v1470_v7  ;;  %v1543_v61 = vld [vmem:[%s1858_s4 + $0x288] ss:$16 sps:$4 sm:$0xff]   ;;  %v1554_v1 = vld [vmem:[%s1858_s4 + $0x14c] ss:$16 sps:$4 sm:$0xff]  }
  0x68   : > { %v1546_v63 = vld [vmem:[%s1858_s4 + $0x168] ss:$16 sps:$4 sm:$0xff]   ;;  %v1557_v2 = vld [vmem:[%s1858_s4 + $0x24c] ss:$16 sps:$4 sm:$0xff]  }
  0x69   : > { %1044 = vmatpush1.bf16.msra.mxu0 %v1472_v8  ;;  %v1549_v0 = vld [vmem:[%s1858_s4 + $0x268] ss:$16 sps:$4 sm:$0xff]   ;;  %v1560_v5 = vld [vmem:[%s1858_s4 + $0x12c] ss:$16 sps:$4 sm:$0xff]  }
  0x6a   : > { %1085 = vmatpush1.bf16.msra.mxu1 %v1473_v10  ;;  %1045 = vmatprep.subr.bf16.mxu0 %v1474_v11  ;;  %v1552_v3 = vld [vmem:[%s1858_s4 + $0x148] ss:$16 sps:$4 sm:$0xff]   ;;  %v1563_v6 = vld [vmem:[%s1858_s4 + $0x22c] ss:$16 sps:$4 sm:$0xff]  }
  0x6b   : > { %1111 = vmatprep.subr.bf16.mxu1 %v1478_v12  ;;  %v1555_v4 = vld [vmem:[%s1858_s4 + $0x248] ss:$16 sps:$4 sm:$0xff]   ;;  %v1566_v10 = vld [vmem:[%s1858_s4 + $0x10c] ss:$16 sps:$4 sm:$0xff]  }
  0x6c   : > { %v1558_v7 = vld [vmem:[%s1858_s4 + $0x128] ss:$16 sps:$4 sm:$0xff]   ;;  %v1569_v11 = vld [vmem:[%s1858_s4 + $0x20c] ss:$16 sps:$4 sm:$0xff]  }
  0x6d   : > { %1103 = vmatmul.mubr.bf16.vlgmr.msra.gmra.mxu1 %v1905_v13  ;;  %1046 = vmatpush2.bf16.msra.mxu0 %v1479_v15  ;;  %v1561_v8 = vld [vmem:[%s1858_s4 + $0x228] ss:$16 sps:$4 sm:$0xff]  }
  0x6e   : > { %1112 = vmatpush1.bf16.msra.mxu1 %v1476_v14  ;;  %1047 = vmatprep.subr.bf16.mxu0 %v1480_v16  ;;  %v1564_v12 = vld [vmem:[%s1858_s4 + $0x108] ss:$16 sps:$4 sm:$0xff]  }
  0x6f   : > { %1113 = vmatprep.subr.bf16.mxu1 %v1484_v17  ;;  %1143 = vmatprep.mubr.bf16.mxu1 %v1870_v48  ;;  %v1522_v48 = vld [vmem:[%s1858_s4 + $0x1e8] ss:$16 sps:$4 sm:$0xff]  }
  0x70   : > { %v1567_v14 = vld [vmem:[%s1858_s4 + $0x208] ss:$16 sps:$4 sm:$0xff]  }
  0x71   : > { %1048 = vmatpush2.bf16.msra.mxu0 %v1485_v19  ;;  %v504_v19 = vsub.s32 0, %v1851_v34 }
  0x72   : > { %1114 = vmatpush1.bf16.msra.mxu1 %v1482_v18  ;;  %1049 = vmatprep.subr.bf16.mxu0 %v1486_v20  ;;  %v500_v20 = vld [vmem:[%s394_s8] sm:$0xf] }
  0x73   : > { %1115 = vmatprep.subr.bf16.mxu1 %v1490_v21 }
  0x75   : > { %1050 = vmatpush2.bf16.msra.mxu0 %v1491_v23 }
  0x76   : > { %1116 = vmatpush1.bf16.msra.mxu1 %v1488_v22  ;;  %1051 = vmatprep.subr.bf16.mxu0 %v1492_v24 }
  0x77   : > { %1117 = vmatprep.subr.bf16.mxu1 %v1496_v25 }
  0x79   : > { %1052 = vmatpush2.bf16.msra.mxu0 %v1497_v27 }
  0x7a   : > { %1118 = vmatpush1.bf16.msra.mxu1 %v1494_v26  ;;  %1053 = vmatprep.subr.bf16.mxu0 %v1498_v28 }
  0x7b   : > { %1119 = vmatprep.subr.bf16.mxu1 %v1502_v29 }
  0x7d   : > { %1054 = vmatpush2.bf16.msra.mxu0 %v1503_v31  ;;  %v512_v31 = vsub.s32 2, %v1851_v34 }
  0x7e   : > { %1120 = vmatpush1.bf16.msra.mxu1 %v1500_v30  ;;  %1055 = vmatprep.subr.bf16.mxu0 %v1504_v32  ;;  %v516_v32 = vsub.s32 3, %v1851_v34 }
  0x7f   : > { %1121 = vmatprep.subr.bf16.mxu1 %v1508_v35  ;;  %v1596_v35 = vmov 1983009808  }
  0x81   : > { %1056 = vmatpush2.bf16.msra.mxu0 %v1509_v37  ;;  %v513_v37 = vrot.slane %v500_v20, %v512_v31 }
  0x82   : > { %1122 = vmatpush1.bf16.msra.mxu1 %v1506_v36  ;;  %1057 = vmatprep.subr.bf16.mxu0 %v1510_v38  ;;  %v1200_v36 = vunpack.c.l.s4 %v1596_v35  ;;  %v517_v38 = vrot.slane %v500_v20, %v516_v32 }
  0x83   : > { %1123 = vmatprep.subr.bf16.mxu1 %v1514_v39 }
  0x85   : > { %1058 = vmatpush2.bf16.msra.mxu0 %v1515_v41  ;;  %v1201_v41 = vunpack.c.0.s8 %v1200_v36 }
  0x86   : > { %1124 = vmatpush1.bf16.msra.mxu1 %v1512_v40  ;;  %1059 = vmatprep.subr.bf16.mxu0 %v1516_v42 }
  0x87   : > { %1125 = vmatprep.subr.bf16.mxu1 %v1520_v43 }
  0x89   : > { %1060 = vmatpush2.bf16.msra.mxu0 %v1521_v45 }
  0x8a   : > { %1126 = vmatpush1.bf16.msra.mxu1 %v1518_v44  ;;  %1152 = vmatprep.subr.bf16.mxu0 %v1527_v47 }
  0x8b   : > { %1127 = vmatprep.subr.bf16.mxu1 %v1524_v46 }
  0x8c   : > { %1062 = vmatmul.mubr.bf16.vlgmr.msra.gmra.mxu0 %v1898_v9 }
  0x8d   : > { %1153 = vmatpush1.bf16.msra.mxu0 %v1525_v49  ;;  %1184 = vmatprep.mubr.bf16.mxu0 %v1594_v33  ;;  %v1548_v33 = vld [vmem:[%s1858_s4 + $0x16c] ss:$16 sps:$4 sm:$0xff]  }
  0x8e   : > { %1128 = vmatpush2.bf16.msra.mxu1 %v1522_v48  ;;  %1154 = vmatprep.subr.bf16.mxu0 %v1533_v51  ;;  %v1204_v48 = vsub.s32 %v1201_v41, %v1851_v34 }
  0x8f   : > { %1129 = vmatprep.subr.bf16.mxu1 %v1530_v50 }
  0x91   : > { %1155 = vmatpush1.bf16.msra.mxu0 %v1531_v53 }
  0x92   : > { %1130 = vmatpush2.bf16.msra.mxu1 %v1528_v52  ;;  %1156 = vmatprep.subr.bf16.mxu0 %v1539_v55 }
  0x93   : > { %1131 = vmatprep.subr.bf16.mxu1 %v1536_v54 }
  0x95   : > { %1157 = vmatpush1.bf16.msra.mxu0 %v1537_v57 }
  0x96   : > { %1132 = vmatpush2.bf16.msra.mxu1 %v1534_v56  ;;  %1158 = vmatprep.subr.bf16.mxu0 %v1545_v59 }
  0x97   : > { %1133 = vmatprep.subr.bf16.mxu1 %v1542_v58 }
  0x99   : > { %1159 = vmatpush1.bf16.msra.mxu0 %v1543_v61 }
  0x9a   : > { %1134 = vmatpush2.bf16.msra.mxu1 %v1540_v60  ;;  %1160 = vmatprep.subr.bf16.mxu0 %v1551_v62 }
  0x9b   : > { %1135 = vmatprep.subr.bf16.mxu1 %v1548_v33 }
  0x9d   : > { %1161 = vmatpush1.bf16.msra.mxu0 %v1549_v0 }
  0x9e   : > { %1136 = vmatpush2.bf16.msra.mxu1 %v1546_v63  ;;  %1162 = vmatprep.subr.bf16.mxu0 %v1557_v2 }
  0x9f   : > { %1137 = vmatprep.subr.bf16.mxu1 %v1554_v1 }
  0xa1   : > { %1163 = vmatpush1.bf16.msra.mxu0 %v1555_v4 }
  0xa2   : > { %1138 = vmatpush2.bf16.msra.mxu1 %v1552_v3  ;;  %1164 = vmatprep.subr.bf16.mxu0 %v1563_v6 }
  0xa3   : > { %1139 = vmatprep.subr.bf16.mxu1 %v1560_v5 }
  0xa5   : > { %1165 = vmatpush1.bf16.msra.mxu0 %v1561_v8 }
  0xa6   : > { %1140 = vmatpush2.bf16.msra.mxu1 %v1558_v7  ;;  %1166 = vmatprep.subr.bf16.mxu0 %v1569_v11 }
  0xa7   : > { %1141 = vmatprep.subr.bf16.mxu1 %v1566_v10 }
  0xa9   : > { %1167 = vmatpush1.bf16.msra.mxu0 %v1567_v14 }
  0xaa   : > { %1142 = vmatpush2.bf16.msra.mxu1 %v1564_v12 }
  0xac   : > { %1185 = vmatmul.mubr.bf16.vlgmr.msra.gmra.mxu0 %v1905_v13  ;;  %v505_v13 = vrot.slane %v500_v20, %v504_v19 }
  0xad   : > { %1144 = vmatmul.mubr.bf16.vlgmr.msra.gmra.mxu1 %v1898_v9  ;;  %v508_v9 = vsub.s32 1, %v1851_v34 }
  0xaf   : > { %v509_v21 = vrot.slane %v500_v20, %v508_v9 }
 0x12d   : > { %v1104_v15 = vpop.f32.mrf.mxu1 }
 0x12f   : > { %v1106_v16 = vpop.f32.mrf.mxu1 }
 0x131   : > { %v1108_v17 = vpop.f32.mrf.mxu1 }
 0x133   : > { %v1109_v18 = vpop.f32.mrf.mxu1 }
 0x14c   : > { %v1063_v22 = vpop.f32.mrf.mxu0 }
 0x14d   : > { %v1064_v23 = vadd.f32 %v1063_v22, %v505_v13 }
 0x14e   : > { %v1065_v24 = vpop.f32.mrf.mxu0 }
 0x14f   : > { %v1066_v25 = vadd.f32 %v1065_v24, %v509_v21  ;;  %v1105_v27 = vadd.f32 %v1104_v15, %v1064_v23 }
 0x150   : > { %v1067_v26 = vpop.f32.mrf.mxu0 }
 0x151   : > { %v1107_v28 = vadd.f32 %v1106_v16, %v1066_v25 }
 0x152   : > { %v1068_v29 = vpop.f32.mrf.mxu0 }
 0x153   : > { %v1197_v30 = vcombine.low %v1105_v27, %v1107_v28 }
 0x155   : > { %v1205_v54 = vrot.slane %v1197_v30, %v1204_v48 }
 0x16c   : > { %v1186_v40 = vpop.f32.mrf.mxu0 }
 0x16d   : > { %v1145_v39 = vpop.f32.mrf.mxu1 }
 0x16e   : > { %v1146_v42 = vadd.f32 %v1145_v39, %v513_v37  ;;  %v1188_v44 = vpop.f32.mrf.mxu0 }
 0x16f   : > { %v1147_v43 = vpop.f32.mrf.mxu1 }
 0x170   : > { %v1148_v45 = vadd.f32 %v1147_v43, %v517_v38  ;;  %v1190_v47 = vpop.f32.mrf.mxu0  ;;  %v1187_v49 = vadd.f32 %v1186_v40, %v1146_v42 }
 0x171   : > { %v1149_v46 = vpop.f32.mrf.mxu1 }
 0x172   : > { %v1189_v50 = vadd.f32 %v1188_v44, %v1148_v45  ;;  %v1191_v52 = vpop.f32.mrf.mxu0 }
 0x173   : > { %v1150_v51 = vpop.f32.mrf.mxu1 }
 0x174   : > { %v1198_v53 = vcombine.low %v1187_v49, %v1189_v50 }
 0x176   : > { %v1212_v55 = vrot.slane %v1198_v53, %v1204_v48 }
 0x178   : > { %v1213_v56 = vcombine.low %v1205_v54, %v1212_v55 }
 0x17a   : > { %1215 = vst [vmem:[%s400_s12] sm:$0xff] %v1213_v56 }
 0x17b PF: > { %p10_p9 = scmp.ge.s32.totalorder %s1634_s16, 25   ;;  %s2006_s12 = smov %s1588_s13 }
 0x17c   : > { %s2007_s13 = smov %s1643_s19  ;;  %s2008_s14 = smov %s1634_s16 }
 0x17d   :  { %12 = sbr.rel (!%p10_p9) target bundleno = 2 (0x2), region = 93 }

// kernel: geoformer_forward.6
= control target key start
LH: loop header
LB: loop body
LE: loop exit
PB: predicated region body
PF: predicated region fallthrough
CT: control target
= control target key end

     0   :  { %14 = vsyncpa [#allocation3], 0  ;;  %s3658_s0 = inlined_call_operand.vmem [shape: f32[2,256,128], index: 0, kind: input, shape index: {}]   ;;  %s3659_s1 = inlined_call_operand.vmem [shape: f32[2,256,128], index: 1, kind: input, shape index: {}]   ;;  %s3660_s2 = inlined_call_operand.vmem [shape: f32[9,256], index: 2, kind: input, shape index: {}]   ;;  %s3661_s3 = inlined_call_operand.vmem [shape: f32[128,128], index: 3, kind: input, shape index: {}]   ;;  %s3662_s4 = inlined_call_operand.vmem [shape: f32[1,128], index: 4, kind: input, shape index: {}]   ;;  %s3663_s5 = inlined_call_operand.vmem [shape: f32[9,128,128], index: 5, kind: input, shape index: {}]   ;;  %s3664_s6 = inlined_call_operand.vmem [shape: f32[1,128], index: 6, kind: input, shape index: {}]   ;;  %s3665_s7 = inlined_call_operand.hbm [shape: f32[2,256,128], index: 7, kind: output, shape index: {0}]   ;;  %s3666_s8 = inlined_call_operand.vmem [shape: f32[2,1,128], index: 8, kind: output, shape index: {1}]  }
   0x1   :  { %16 = vsyncpa [#allocation3 + $0x1], 0  ;;  %s2643_s27 = smov 0   ;;  %s2645_s28 = smov 0  }
   0x2   :  { %s2647_s29 = smov 0   ;;  %s2649_s30 = smov 0  }
   0x3 LB: > { %s2664_s9 = sadd.s32 4294967295, %s2591_s30   ;;  %s1708_s10 = sadd.s32 4294967294, %s2591_s30   ;;  %s2591_s30 = sphi %s2649_s30, %s3672_s30   ;;  %s2587_s29 = sphi %s2647_s29, %s3671_s29   ;;  %s2583_s28 = sphi %s2645_s28, %s3670_s28   ;;  %s2579_s27 = sphi %s2643_s27, %s3669_s27  }
   0x4   : > { %s2668_s11 = sadd.s32 1, %s2591_s30   ;;  %s186_s12 = sadd.s32 1, %s2587_s29 }
   0x5   : > { %s183_s13 = ssub.s32 %s2591_s30, %s2668_s11  ;;  %p196_p0 = scmp.ne.s32.totalorder %s2587_s29, %s2583_s28 }
   0x6   : > { %p184_p1 = scmp.eq.s32.totalorder %s183_s13, 0  ;;  %p197_p2 = scmp.eq.s32.totalorder %s2664_s9, 1 }
   0x7   : > { %p202_p3 = scmp.ne.s32.totalorder %s2583_s28, %s2579_s27  ;;  %p203_p4 = scmp.eq.s32.totalorder %s1708_s10, 1 }
   0x8   : > { %s2679_s14 = scalar_select %p184_p1, %s2587_s29, %s186_s12  }
   0x9   : > { %p2681_p5 = por %p197_p2, %p196_p0  ;;  %p2685_p6 = por %p203_p4, %p202_p3 }
   0xa   : > { %p1711_p7 = scmp.ge.s32.totalorder %s2591_s30, 1  ;;  %p278_p8 = scmp.lt.s32.totalorder %s2591_s30, 3 }
   0xc   : > { %p279_p9 = pnand %p1711_p7, %p278_p8 }
   0xd   : > { %p320_p10 = scmp.lt.s32.totalorder (!%p279_p9), %s2664_s9, 1  ;;  %s312_s10 = sand.u32 (!%p279_p9), 1, %s2583_s28  }
   0xe   : > { %282 = sbr.rel (%p279_p9) target bundleno = 870 (0x366), region = 48  ;;  %s1712_s25 = sshll.u32 (!%p279_p9), %s312_s10, 8 }
   0xf   : > { %s1853_s21 = sshll.u32 (!%p279_p9), %s2664_s9, 12 }
  0x10   : > { %s3605_s12 = scalar_lea.hbm (!%p279_p9), %s3665_s7, %s1853_s21 }
  0x13   : > { %v380_v0 = vld [vmem:[%s3661_s3 + $0x78] sm:$0xff]  ;;  %v379_v1 = vld [vmem:[%s3661_s3 + $0x70] sm:$0xff]  ;;  %v378_v2 = vld [vmem:[%s3661_s3 + $0x68] sm:$0xff]  ;;  %s2702_s23 = scalar_select %p320_p10, %s2664_s9, 1  ;;  %v2593_v50 = vmov 0.0   ;;  %vm2594_vm0 = vmmov 0  }
  0x14   : > { %2093 = vmatprep.subr.mxu0 %v380_v0  ;;  %v377_v3 = vld [vmem:[%s3661_s3 + $0x60] sm:$0xff]  ;;  %v376_v4 = vld [vmem:[%s3661_s3 + $0x58] sm:$0xff]  ;;  %v375_v6 = vld [vmem:[%s3661_s3 + $0x50] sm:$0xff]  ;;  %s2595_s9 = smov [#allocation2]  }
  0x15   : > { %2094 = vmatpush3.msra.mxu0 %v380_v0  ;;  %s1851_s26 = sshll.u32 %s2702_s23, 8  ;;  %v374_v7 = vld [vmem:[%s3661_s3 + $0x48] sm:$0xff]  ;;  %v373_v8 = vld [vmem:[%s3661_s3 + $0x40] sm:$0xff]  ;;  %v372_v9 = vld [vmem:[%s3661_s3 + $0x38] sm:$0xff] }
  0x16   : > { %2095 = vmatprep.subr.mxu0 %v379_v1  ;;  %s2713_s13 = scalar_lea.vmem %s3658_s0, %s1851_s26  ;;  %v371_v10 = vld [vmem:[%s3661_s3 + $0x30] sm:$0xff]  ;;  %v370_v11 = vld [vmem:[%s3661_s3 + $0x28] sm:$0xff]  ;;  %v369_v12 = vld [vmem:[%s3661_s3 + $0x20] sm:$0xff]  ;;  %s2843_s19 = scalar_lea.vmem %s3659_s1, %s1851_s26 }
  0x17   : > { %2096 = vmatpush3.msra.mxu0 %v379_v1  ;;  %v333_v5 = vld [vmem:[%s2713_s13] sm:$0xff]  ;;  %v368_v13 = vld [vmem:[%s3661_s3 + $0x18] sm:$0xff]  ;;  %v367_v14 = vld [vmem:[%s3661_s3 + $0x10] sm:$0xff]  ;;  %s2865_s26 = scalar_lea.vmem [#allocation2], %s1712_s25 }
  0x18   : > { %2097 = vmatprep.subr.mxu0 %v378_v2  ;;  %2125 = vmatprep.mubr.f32.mxu0 %v333_v5  ;;  %v366_v15 = vld [vmem:[%s3661_s3 + $0x8] sm:$0xff]  ;;  %v365_v16 = vld [vmem:[%s3661_s3] sm:$0xff]  ;;  %v335_v18 = vld [vmem:[%s2713_s13 + $0x10] sm:$0xff]  ;;  %s1612_s22 = sshll.u32 %s2865_s26, 4  ;;  %s3607_s22 = int_to_ptr.vmem [resolvable:$true] %s1612_s22 }
  0x19   : > { %2098 = vmatpush3.msra.mxu0 %v378_v2  ;;  %v334_v17 = vld [vmem:[%s2713_s13 + $0x8] sm:$0xff]  ;;  %v336_v19 = vld [vmem:[%s2713_s13 + $0x18] sm:$0xff]  ;;  %v337_v20 = vld [vmem:[%s2713_s13 + $0x20] sm:$0xff]  ;;  %s2531_s17 = scalar_lea.vmem %s3607_s22, 4096 }
  0x1a   : > { %2099 = vmatprep.subr.mxu0 %v377_v3  ;;  %v338_v21 = vld [vmem:[%s2713_s13 + $0x28] sm:$0xff]  ;;  %v339_v22 = vld [vmem:[%s2713_s13 + $0x30] sm:$0xff]  ;;  %v340_v23 = vld [vmem:[%s2713_s13 + $0x38] sm:$0xff]  ;;  %p2532_p11 = scmp.ne.s32.totalorder %s3607_s22, %s2531_s17 }
  0x1b   : > { %2100 = vmatpush3.msra.mxu0 %v377_v3  ;;  %v341_v24 = vld [vmem:[%s2713_s13 + $0x40] sm:$0xff]  ;;  %v342_v25 = vld [vmem:[%s2713_s13 + $0x48] sm:$0xff]  ;;  %v343_v26 = vld [vmem:[%s2713_s13 + $0x50] sm:$0xff] }
  0x1c   : > { %2101 = vmatprep.subr.mxu0 %v376_v4  ;;  %v344_v27 = vld [vmem:[%s2713_s13 + $0x58] sm:$0xff]  ;;  %v345_v28 = vld [vmem:[%s2713_s13 + $0x60] sm:$0xff]  ;;  %v346_v29 = vld [vmem:[%s2713_s13 + $0x68] sm:$0xff]  ;;  %p2533_p12 = pnand %p2532_p11, %p2681_p5 }
  0x1d   : > { %2102 = vmatpush3.msra.mxu0 %v376_v4  ;;  %v347_v30 = vld [vmem:[%s2713_s13 + $0x70] sm:$0xff]  ;;  %v348_v31 = vld [vmem:[%s2713_s13 + $0x78] sm:$0xff]  ;;  %v349_v32 = vld [vmem:[%s2713_s13 + $0x80] sm:$0xff] }
  0x1e   : > { %2103 = vmatprep.subr.mxu0 %v375_v6  ;;  %v350_v33 = vld [vmem:[%s2713_s13 + $0x88] sm:$0xff]  ;;  %v351_v34 = vld [vmem:[%s2713_s13 + $0x90] sm:$0xff]  ;;  %v352_v35 = vld [vmem:[%s2713_s13 + $0x98] sm:$0xff]  ;;  %p2534_p13 = pneg %p2533_p12 }
  0x1f   : > { %2104 = vmatpush3.msra.mxu0 %v375_v6  ;;  %v353_v36 = vld [vmem:[%s2713_s13 + $0xa0] sm:$0xff]  ;;  %v354_v37 = vld [vmem:[%s2713_s13 + $0xa8] sm:$0xff]  ;;  %v355_v38 = vld [vmem:[%s2713_s13 + $0xb0] sm:$0xff] }
  0x20   : > { %2105 = vmatprep.subr.mxu0 %v374_v7  ;;  %v356_v39 = vld [vmem:[%s2713_s13 + $0xb8] sm:$0xff]  ;;  %v357_v40 = vld [vmem:[%s2713_s13 + $0xc0] sm:$0xff]  ;;  %v358_v41 = vld [vmem:[%s2713_s13 + $0xc8] sm:$0xff] }
  0x21   : > { %2106 = vmatpush3.msra.mxu0 %v374_v7  ;;  %v359_v42 = vld [vmem:[%s2713_s13 + $0xd0] sm:$0xff]  ;;  %v360_v43 = vld [vmem:[%s2713_s13 + $0xd8] sm:$0xff]  ;;  %v361_v44 = vld [vmem:[%s2713_s13 + $0xe0] sm:$0xff] }
  0x22   : > { %2107 = vmatprep.subr.mxu0 %v373_v8  ;;  %v362_v45 = vld [vmem:[%s2713_s13 + $0xe8] sm:$0xff]  ;;  %v363_v46 = vld [vmem:[%s2713_s13 + $0xf0] sm:$0xff]  ;;  %v364_v47 = vld [vmem:[%s2713_s13 + $0xf8] sm:$0xff]  ;;  %s3611_s13 = scalar_lea.sflag [#allocation3], %s312_s10 }
  0x23   : > { %2108 = vmatpush3.msra.mxu0 %v373_v8  ;;  %v710_v48 = vld [vmem:[%s3660_s2 + $0x8] sm:$0xff]  ;;  %v803_v49 = vld [vmem:[%s3663_s5 + $0x78] sm:$0xff]  ;;  %v802_v51 = vld [vmem:[%s3663_s5 + $0x70] sm:$0xff] }
  0x24   : > { %2109 = vmatprep.subr.mxu0 %v372_v9  ;;  %777 = vmatprep.mubr.f32.mxu1 %v710_v48  ;;  %v801_v52 = vld [vmem:[%s3663_s5 + $0x68] sm:$0xff]  ;;  %v800_v53 = vld [vmem:[%s3663_s5 + $0x60] sm:$0xff]  ;;  %v799_v54 = vld [vmem:[%s3663_s5 + $0x58] sm:$0xff] }
  0x25   : > { %2110 = vmatpush3.msra.mxu0 %v372_v9  ;;  %v798_v55 = vld [vmem:[%s3663_s5 + $0x50] sm:$0xff]  ;;  %v797_v56 = vld [vmem:[%s3663_s5 + $0x48] sm:$0xff]  ;;  %v796_v57 = vld [vmem:[%s3663_s5 + $0x40] sm:$0xff] }
  0x26   : > { %2111 = vmatprep.subr.mxu0 %v371_v10  ;;  %v795_v58 = vld [vmem:[%s3663_s5 + $0x38] sm:$0xff]  ;;  %v794_v59 = vld [vmem:[%s3663_s5 + $0x30] sm:$0xff]  ;;  %v793_v60 = vld [vmem:[%s3663_s5 + $0x28] sm:$0xff] }
  0x27   : > { %2112 = vmatpush3.msra.mxu0 %v371_v10  ;;  %v792_v61 = vld [vmem:[%s3663_s5 + $0x20] sm:$0xff]  ;;  %v791_v62 = vld [vmem:[%s3663_s5 + $0x18] sm:$0xff]  ;;  %v790_v0 = vld [vmem:[%s3663_s5 + $0x10] sm:$0xff] }
  0x28   : > { %2113 = vmatprep.subr.mxu0 %v370_v11  ;;  %v2848_v63 = vld [vmem:[%s3662_s4] ss:$0 sm:$0xff]  ;;  %v614_v2 = vld [vmem:[%s2843_s19 + $0x8] sm:$0xff]  ;;  %v616_v9 = vld [vmem:[%s2843_s19 + $0x18] sm:$0xff] }
  0x29   : > { %2114 = vmatpush3.msra.mxu0 %v370_v11  ;;  %v613_v5 = vld [vmem:[%s2843_s19] sm:$0xff] }
  0x2a   : > { %2115 = vmatprep.subr.mxu0 %v369_v12 }
  0x2b   : > { %2116 = vmatpush3.msra.mxu0 %v369_v12 }
  0x2c   : > { %2117 = vmatprep.subr.mxu0 %v368_v13 }
  0x2d   : > { %2118 = vmatpush3.msra.mxu0 %v368_v13  ;;  %v615_v13 = vld [vmem:[%s2843_s19 + $0x10] sm:$0xff] }
  0x2e   : > { %2119 = vmatprep.subr.mxu0 %v367_v14 }
  0x2f   : > { %2120 = vmatpush3.msra.mxu0 %v367_v14 }
  0x30   : > { %2121 = vmatprep.subr.mxu0 %v366_v15 }
  0x31   : > { %2122 = vmatpush3.msra.mxu0 %v366_v15 }
  0x32   : > { %2123 = vmatprep.subr.mxu0 %v365_v16 }
  0x33   : > { %2124 = vmatpush3.msra.mxu0 %v365_v16 }
  0x34   : > { %2126 = vmatmul.mubr.f32.vlgmr.msra.gmra.mxu0 %v334_v17  ;;  %2208 = vmatprep.subr.mxu0 %v2593_v50  ;;  %v618_v17 = vld [vmem:[%s2843_s19 + $0x28] sm:$0xff] }
  0x35   : > { %2128 = vmatprep.mubr.f32.mxu0 %v335_v18  ;;  %2209 = vmatpush3.msra.mxu0 %v803_v49  ;;  %v626_v49 = vld [vmem:[%s2843_s19 + $0x68] sm:$0xff] }
  0x36   : > { %2210 = vmatprep.subr.mxu0 %v2593_v50 }
  0x37   : > { %2211 = vmatpush3.msra.mxu0 %v802_v51 }
  0x38   : > { %2129 = vmatmul.mubr.f32.gmra.mxu0 %v336_v19  ;;  %2212 = vmatprep.subr.mxu0 %v2593_v50 }
  0x39   : > { %2131 = vmatprep.mubr.f32.mxu0 %v337_v20  ;;  %2213 = vmatpush3.msra.mxu0 %v801_v52 }
  0x3a   : > { %2214 = vmatprep.subr.mxu0 %v2593_v50 }
  0x3b   : > { %2215 = vmatpush3.msra.mxu0 %v800_v53 }
  0x3c   : > { %2132 = vmatmul.mubr.f32.gmra.mxu0 %v338_v21  ;;  %2216 = vmatprep.subr.mxu0 %v2593_v50  ;;  %v617_v21 = vld [vmem:[%s2843_s19 + $0x20] sm:$0xff] }
  0x3d   : > { %2134 = vmatprep.mubr.f32.mxu0 %v339_v22  ;;  %2217 = vmatpush3.msra.mxu0 %v799_v54  ;;  %v625_v54 = vld [vmem:[%s2843_s19 + $0x60] sm:$0xff] }
  0x3e   : > { %2218 = vmatprep.subr.mxu0 %v2593_v50 }
  0x3f   : > { %2219 = vmatpush3.msra.mxu0 %v798_v55 }
  0x40   : > { %2135 = vmatmul.mubr.f32.gmra.mxu0 %v340_v23  ;;  %2220 = vmatprep.subr.mxu0 %v2593_v50 }
  0x41   : > { %2137 = vmatprep.mubr.f32.mxu0 %v341_v24  ;;  %2221 = vmatpush3.msra.mxu0 %v797_v56 }
  0x42   : > { %2222 = vmatprep.subr.mxu0 %v2593_v50 }
  0x43   : > { %2223 = vmatpush3.msra.mxu0 %v796_v57 }
  0x44   : > { %2138 = vmatmul.mubr.f32.gmra.mxu0 %v342_v25  ;;  %2224 = vmatprep.subr.mxu0 %v2593_v50  ;;  %v620_v25 = vld [vmem:[%s2843_s19 + $0x38] sm:$0xff] }
  0x45   : > { %2140 = vmatprep.mubr.f32.mxu0 %v343_v26  ;;  %2225 = vmatpush3.msra.mxu0 %v795_v58  ;;  %v628_v58 = vld [vmem:[%s2843_s19 + $0x78] sm:$0xff] }
  0x46   : > { %2226 = vmatprep.subr.mxu0 %v2593_v50 }
  0x47   : > { %2227 = vmatpush3.msra.mxu0 %v794_v59 }
  0x48   : > { %2141 = vmatmul.mubr.f32.gmra.mxu0 %v344_v27  ;;  %2228 = vmatprep.subr.mxu0 %v2593_v50 }
  0x49   : > { %2143 = vmatprep.mubr.f32.mxu0 %v345_v28  ;;  %2229 = vmatpush3.msra.mxu0 %v793_v60 }
  0x4a   : > { %2230 = vmatprep.subr.mxu0 %v2593_v50 }
  0x4b   : > { %2231 = vmatpush3.msra.mxu0 %v792_v61 }
  0x4c   : > { %2144 = vmatmul.mubr.f32.gmra.mxu0 %v346_v29  ;;  %2232 = vmatprep.subr.mxu0 %v2593_v50  ;;  %v619_v29 = vld [vmem:[%s2843_s19 + $0x30] sm:$0xff] }
  0x4d   : > { %2146 = vmatprep.mubr.f32.mxu0 %v347_v30  ;;  %2233 = vmatpush3.msra.mxu0 %v791_v62  ;;  %v627_v62 = vld [vmem:[%s2843_s19 + $0x70] sm:$0xff] }
  0x4e   : > { %2234 = vmatprep.subr.mxu0 %v2593_v50 }
  0x4f   : > { %2235 = vmatpush3.msra.mxu0 %v790_v0 }
  0x50   : > { %2147 = vmatmul.mubr.f32.gmra.mxu0 %v348_v31  ;;  %2236 = vmatprep.subr.mxu0 %v2593_v50 }
  0x51   : > { %2149 = vmatprep.mubr.f32.mxu0 %v349_v32 }
  0x54   : > { %2150 = vmatmul.mubr.f32.gmra.mxu0 %v350_v33  ;;  %v622_v33 = vld [vmem:[%s2843_s19 + $0x48] sm:$0xff] }
  0x55   : > { %2152 = vmatprep.mubr.f32.mxu0 %v351_v34 }
  0x58   : > { %2153 = vmatmul.mubr.f32.gmra.mxu0 %v352_v35 }
  0x59   : > { %2155 = vmatprep.mubr.f32.mxu0 %v353_v36 }
  0x5c   : > { %2156 = vmatmul.mubr.f32.gmra.mxu0 %v354_v37  ;;  %v621_v37 = vld [vmem:[%s2843_s19 + $0x40] sm:$0xff] }
  0x5d   : > { %2158 = vmatprep.mubr.f32.mxu0 %v355_v38 }
  0x60   : > { %2159 = vmatmul.mubr.f32.gmra.mxu0 %v356_v39 }
  0x61   : > { %2161 = vmatprep.mubr.f32.mxu0 %v357_v40 }
  0x64   : > { %2162 = vmatmul.mubr.f32.gmra.mxu0 %v358_v41  ;;  %v624_v41 = vld [vmem:[%s2843_s19 + $0x58] sm:$0xff] }
  0x65   : > { %2164 = vmatprep.mubr.f32.mxu0 %v359_v42 }
  0x68   : > { %2165 = vmatmul.mubr.f32.gmra.mxu0 %v360_v43 }
  0x69   : > { %2167 = vmatprep.mubr.f32.mxu0 %v361_v44 }
  0x6c   : > { %2168 = vmatmul.mubr.f32.gmra.mxu0 %v362_v45  ;;  %v623_v45 = vld [vmem:[%s2843_s19 + $0x50] sm:$0xff] }
  0x6d   : > { %2170 = vmatprep.mubr.f32.mxu0 %v363_v46 }
  0x70   : > { %2171 = vmatmul.mubr.f32.gmra.mxu0 %v364_v47 }
  0x71   : > { %2240 = vmatprep.mubr.msk.f32.mxu0 %vm2594_vm0, %v2593_v50 }
  0xf4   : > { %v2127_v1 = vpop.f32.mrf.mxu0 }
  0xf5   : > { %v460_v3 = vadd.f32 %v2127_v1, %v2848_v63 }
  0xf6   : > { %v454_v4 = vpop.f32.mrf.mxu0 }
  0xf7   : > { %v2861_v6 = vadd.f32 %v614_v2, %v460_v3  ;;  %v455_v7 = vadd.f32 %v2848_v63, %v454_v4  ;;  %v630_v3 = vld [vmem:[%s2843_s19 + $0x88] sm:$0xff] }
  0xf8   : > { %v2130_v8 = vpop.f32.mrf.mxu0 }
  0xf9   : > { %678 = vst [vmem:[%s2865_s26 + $0x8] sm:$0xff] %v2861_v6  ;;  %v2869_v10 = vadd.f32 %v613_v5, %v455_v7  ;;  %v470_v11 = vadd.f32 %v2130_v8, %v2848_v63  ;;  %v629_v8 = vld [vmem:[%s2843_s19 + $0x80] sm:$0xff] }
  0xfa   : > { %v464_v12 = vpop.f32.mrf.mxu0 }
  0xfb   : > { %677 = vst [vmem:[%s2865_s26] sm:$0xff] %v2869_v10  ;;  %v2875_v14 = vadd.f32 %v616_v9, %v470_v11  ;;  %v465_v15 = vadd.f32 %v2848_v63, %v464_v12 }
  0xfc   : > { %v2133_v16 = vpop.f32.mrf.mxu0 }
  0xfd   : > { %680 = vst [vmem:[%s2865_s26 + $0x18] sm:$0xff] %v2875_v14  ;;  %v2881_v18 = vadd.f32 %v615_v13, %v465_v15  ;;  %v480_v19 = vadd.f32 %v2133_v16, %v2848_v63  ;;  %v632_v13 = vld [vmem:[%s2843_s19 + $0x98] sm:$0xff] }
  0xfe   : > { %v474_v20 = vpop.f32.mrf.mxu0 }
  0xff   : > { %679 = vst [vmem:[%s2865_s26 + $0x10] sm:$0xff] %v2881_v18  ;;  %v2887_v22 = vadd.f32 %v618_v17, %v480_v19  ;;  %v475_v23 = vadd.f32 %v2848_v63, %v474_v20  ;;  %v631_v19 = vld [vmem:[%s2843_s19 + $0x90] sm:$0xff] }
 0x100   : > { %v2136_v24 = vpop.f32.mrf.mxu0 }
 0x101   : > { %682 = vst [vmem:[%s2865_s26 + $0x28] sm:$0xff] %v2887_v22  ;;  %v2893_v26 = vadd.f32 %v617_v21, %v475_v23  ;;  %v490_v27 = vadd.f32 %v2136_v24, %v2848_v63  ;;  %v634_v24 = vld [vmem:[%s2843_s19 + $0xa8] sm:$0xff] }
 0x102   : > { %v484_v28 = vpop.f32.mrf.mxu0 }
 0x103   : > { %681 = vst [vmem:[%s2865_s26 + $0x20] sm:$0xff] %v2893_v26  ;;  %v2899_v30 = vadd.f32 %v620_v25, %v490_v27  ;;  %v485_v31 = vadd.f32 %v2848_v63, %v484_v28 }
 0x104   : > { %v2139_v32 = vpop.f32.mrf.mxu0 }
 0x105   : > { %684 = vst [vmem:[%s2865_s26 + $0x38] sm:$0xff] %v2899_v30  ;;  %v2905_v34 = vadd.f32 %v619_v29, %v485_v31  ;;  %v500_v35 = vadd.f32 %v2139_v32, %v2848_v63  ;;  %v633_v29 = vld [vmem:[%s2843_s19 + $0xa0] sm:$0xff] }
 0x106   : > { %v494_v36 = vpop.f32.mrf.mxu0 }
 0x107   : > { %683 = vst [vmem:[%s2865_s26 + $0x30] sm:$0xff] %v2905_v34  ;;  %v2911_v38 = vadd.f32 %v622_v33, %v500_v35  ;;  %v495_v39 = vadd.f32 %v2848_v63, %v494_v36  ;;  %v636_v35 = vld [vmem:[%s2843_s19 + $0xb8] sm:$0xff] }
 0x108   : > { %v2142_v40 = vpop.f32.mrf.mxu0 }
 0x109   : > { %686 = vst [vmem:[%s2865_s26 + $0x48] sm:$0xff] %v2911_v38  ;;  %v2917_v42 = vadd.f32 %v621_v37, %v495_v39  ;;  %v510_v43 = vadd.f32 %v2142_v40, %v2848_v63  ;;  %v635_v40 = vld [vmem:[%s2843_s19 + $0xb0] sm:$0xff] }
 0x10a   : > { %v504_v44 = vpop.f32.mrf.mxu0 }
 0x10b   : > { %685 = vst [vmem:[%s2865_s26 + $0x40] sm:$0xff] %v2917_v42  ;;  %v2923_v46 = vadd.f32 %v624_v41, %v510_v43  ;;  %v505_v47 = vadd.f32 %v2848_v63, %v504_v44 }
 0x10c   : > { %v2145_v48 = vpop.f32.mrf.mxu0 }
 0x10d   : > { %688 = vst [vmem:[%s2865_s26 + $0x58] sm:$0xff] %v2923_v46  ;;  %v2929_v51 = vadd.f32 %v623_v45, %v505_v47  ;;  %v520_v52 = vadd.f32 %v2145_v48, %v2848_v63  ;;  %v638_v45 = vld [vmem:[%s2843_s19 + $0xc8] sm:$0xff] }
 0x10e   : > { %v514_v53 = vpop.f32.mrf.mxu0 }
 0x10f   : > { %687 = vst [vmem:[%s2865_s26 + $0x50] sm:$0xff] %v2929_v51  ;;  %v2935_v55 = vadd.f32 %v626_v49, %v520_v52  ;;  %v515_v56 = vadd.f32 %v2848_v63, %v514_v53  ;;  %v637_v52 = vld [vmem:[%s2843_s19 + $0xc0] sm:$0xff] }
 0x110   : > { %v2148_v57 = vpop.f32.mrf.mxu0 }
 0x111   : > { %690 = vst [vmem:[%s2865_s26 + $0x68] sm:$0xff] %v2935_v55  ;;  %v2941_v59 = vadd.f32 %v625_v54, %v515_v56  ;;  %v530_v60 = vadd.f32 %v2148_v57, %v2848_v63  ;;  %v640_v57 = vld [vmem:[%s2843_s19 + $0xd8] sm:$0xff] }
 0x112   : > { %v524_v61 = vpop.f32.mrf.mxu0 }
 0x113   : > { %689 = vst [vmem:[%s2865_s26 + $0x60] sm:$0xff] %v2941_v59  ;;  %v525_v0 = vadd.f32 %v2848_v63, %v524_v61  ;;  %v2948_v1 = vadd.f32 %v628_v58, %v530_v60 }
 0x114   : > { %v2151_v2 = vpop.f32.mrf.mxu0 }
 0x115   : > { %v2951_v4 = vadd.f32 %v627_v62, %v525_v0  ;;  %v540_v5 = vadd.f32 %v2151_v2, %v2848_v63  ;;  %692 = vst [vmem:[%s2865_s26 + $0x78] sm:$0xff] %v2948_v1  ;;  %v639_v62 = vld [vmem:[%s2843_s19 + $0xd0] sm:$0xff] }
 0x116   : > { %v534_v7 = vpop.f32.mrf.mxu0 }
 0x117   : > { %691 = vst [vmem:[%s2865_s26 + $0x70] sm:$0xff] %v2951_v4  ;;  %v2959_v9 = vadd.f32 %v630_v3, %v540_v5  ;;  %v535_v11 = vadd.f32 %v2848_v63, %v534_v7  ;;  %v642_v5 = vld [vmem:[%s2843_s19 + $0xe8] sm:$0xff] }
 0x118   : > { %v2154_v12 = vpop.f32.mrf.mxu0 }
 0x119   : > { %694 = vst [vmem:[%s2865_s26 + $0x88] sm:$0xff] %v2959_v9  ;;  %v2965_v15 = vadd.f32 %v629_v8, %v535_v11  ;;  %v550_v16 = vadd.f32 %v2154_v12, %v2848_v63  ;;  %v641_v12 = vld [vmem:[%s2843_s19 + $0xe0] sm:$0xff] }
 0x11a   : > { %v544_v17 = vpop.f32.mrf.mxu0 }
 0x11b   : > { %693 = vst [vmem:[%s2865_s26 + $0x80] sm:$0xff] %v2965_v15  ;;  %v2971_v20 = vadd.f32 %v632_v13, %v550_v16  ;;  %v545_v21 = vadd.f32 %v2848_v63, %v544_v17 }
 0x11c   : > { %v2157_v23 = vpop.f32.mrf.mxu0 }
 0x11d   : > { %696 = vst [vmem:[%s2865_s26 + $0x98] sm:$0xff] %v2971_v20  ;;  %v2977_v25 = vadd.f32 %v631_v19, %v545_v21  ;;  %v560_v27 = vadd.f32 %v2157_v23, %v2848_v63  ;;  %v644_v19 = vld [vmem:[%s2843_s19 + $0xf8] sm:$0xff] }
 0x11e   : > { %v554_v28 = vpop.f32.mrf.mxu0 }
 0x11f   : > { %695 = vst [vmem:[%s2865_s26 + $0x90] sm:$0xff] %v2977_v25  ;;  %v2983_v31 = vadd.f32 %v634_v24, %v560_v27  ;;  %v555_v32 = vadd.f32 %v2848_v63, %v554_v28  ;;  %v643_v27 = vld [vmem:[%s2843_s19 + $0xf0] sm:$0xff] }
 0x120   : > { %v2160_v33 = vpop.f32.mrf.mxu0 }
 0x121   : > { %698 = vst [vmem:[%s2865_s26 + $0xa8] sm:$0xff] %v2983_v31  ;;  %v2989_v36 = vadd.f32 %v633_v29, %v555_v32  ;;  %v570_v37 = vadd.f32 %v2160_v33, %v2848_v63 }
 0x122   : > { %v564_v39 = vpop.f32.mrf.mxu0 }
 0x123   : > { %697 = vst [vmem:[%s2865_s26 + $0xa0] sm:$0xff] %v2989_v36  ;;  %v668_v41 = vadd.f32 %v636_v35, %v570_v37  ;;  %v565_v43 = vadd.f32 %v2848_v63, %v564_v39  ;;  %v1749_v39 = vld [vmem:[%s3663_s5 + $0x178] sm:$0xff] }
 0x124   : > { %v2163_v44 = vpop.f32.mrf.mxu0 }
 0x125   : > { %700 = vst [vmem:[%s2865_s26 + $0xb8] sm:$0xff] %v668_v41  ;;  %v667_v47 = vadd.f32 %v635_v40, %v565_v43  ;;  %v580_v48 = vadd.f32 %v2163_v44, %v2848_v63  ;;  %v1764_v40 = vld [vmem:[%s3663_s5 + $0x1f0] sm:$0xff]  ;;  %v1763_v43 = vld [vmem:[%s3663_s5 + $0x1e8] sm:$0xff] }
 0x126   : > { %v574_v49 = vpop.f32.mrf.mxu0  ;;  %v1747_v44 = vld [vmem:[%s3663_s5 + $0x168] sm:$0xff] }
 0x127   : > { %699 = vst [vmem:[%s2865_s26 + $0xb0] sm:$0xff] %v667_v47  ;;  %v670_v53 = vadd.f32 %v638_v45, %v580_v48  ;;  %v575_v54 = vadd.f32 %v2848_v63, %v574_v49  ;;  %v1762_v45 = vld [vmem:[%s3663_s5 + $0x1e0] sm:$0xff]  ;;  %v1761_v48 = vld [vmem:[%s3663_s5 + $0x1d8] sm:$0xff] }
 0x128   : > { %v2166_v56 = vpop.f32.mrf.mxu0  ;;  %v1745_v49 = vld [vmem:[%s3663_s5 + $0x158] sm:$0xff] }
 0x129   : > { %702 = vst [vmem:[%s2865_s26 + $0xc8] sm:$0xff] %v670_v53  ;;  %v669_v58 = vadd.f32 %v637_v52, %v575_v54  ;;  %v590_v60 = vadd.f32 %v2166_v56, %v2848_v63  ;;  %v1760_v52 = vld [vmem:[%s3663_s5 + $0x1d0] sm:$0xff]  ;;  %v1759_v54 = vld [vmem:[%s3663_s5 + $0x1c8] sm:$0xff] }
 0x12a   : > { %v584_v61 = vpop.f32.mrf.mxu0  ;;  %v1743_v56 = vld [vmem:[%s3663_s5 + $0x148] sm:$0xff] }
 0x12b   : > { %701 = vst [vmem:[%s2865_s26 + $0xc0] sm:$0xff] %v669_v58  ;;  %v672_v0 = vadd.f32 %v640_v57, %v590_v60  ;;  %v585_v2 = vadd.f32 %v2848_v63, %v584_v61  ;;  %v1758_v57 = vld [vmem:[%s3663_s5 + $0x1c0] sm:$0xff]  ;;  %v1757_v60 = vld [vmem:[%s3663_s5 + $0x1b8] sm:$0xff] }
 0x12c   : > { %v2169_v3 = vpop.f32.mrf.mxu0  ;;  %v1741_v61 = vld [vmem:[%s3663_s5 + $0x138] sm:$0xff] }
 0x12d   : > { %704 = vst [vmem:[%s2865_s26 + $0xd8] sm:$0xff] %v672_v0  ;;  %v671_v7 = vadd.f32 %v639_v62, %v585_v2  ;;  %v600_v8 = vadd.f32 %v2169_v3, %v2848_v63  ;;  %v1756_v62 = vld [vmem:[%s3663_s5 + $0x1b0] sm:$0xff]  ;;  %v1755_v2 = vld [vmem:[%s3663_s5 + $0x1a8] sm:$0xff] }
 0x12e   : > { %v594_v11 = vpop.f32.mrf.mxu0  ;;  %v1739_v3 = vld [vmem:[%s3663_s5 + $0x128] sm:$0xff] }
 0x12f   : > { %703 = vst [vmem:[%s2865_s26 + $0xd0] sm:$0xff] %v671_v7  ;;  %v674_v13 = vadd.f32 %v642_v5, %v600_v8  ;;  %v595_v16 = vadd.f32 %v2848_v63, %v594_v11  ;;  %v1754_v5 = vld [vmem:[%s3663_s5 + $0x1a0] sm:$0xff]  ;;  %v1753_v8 = vld [vmem:[%s3663_s5 + $0x198] sm:$0xff] }
 0x130   : > { %v2172_v17 = vpop.f32.mrf.mxu0  ;;  %v1737_v11 = vld [vmem:[%s3663_s5 + $0x118] sm:$0xff] }
 0x131   : > { %706 = vst [vmem:[%s2865_s26 + $0xe8] sm:$0xff] %v674_v13  ;;  %v673_v21 = vadd.f32 %v641_v12, %v595_v16  ;;  %v610_v23 = vadd.f32 %v2172_v17, %v2848_v63  ;;  %v1752_v12 = vld [vmem:[%s3663_s5 + $0x190] sm:$0xff]  ;;  %v1751_v16 = vld [vmem:[%s3663_s5 + $0x188] sm:$0xff] }
 0x132   : > { %v604_v24 = vpop.f32.mrf.mxu0  ;;  %v1735_v17 = vld [vmem:[%s3663_s5 + $0x108] sm:$0xff] }
 0x133   : > { %705 = vst [vmem:[%s2865_s26 + $0xe0] sm:$0xff] %v673_v21  ;;  %v605_v28 = vadd.f32 %v2848_v63, %v604_v24  ;;  %v676_v29 = vadd.f32 %v644_v19, %v610_v23  ;;  %v709_v63 = vld [vmem:[%s3660_s2] sm:$0xff]  ;;  %v1797_v24 = vld [vmem:[%s3663_s5 + $0x2f8] sm:$0xff] }
 0x134   : > { %v1750_v19 = vld [vmem:[%s3663_s5 + $0x180] sm:$0xff] }
 0x135   : > { %v675_v32 = vadd.f32 %v643_v27, %v605_v28  ;;  %708 = vst [vmem:[%s2865_s26 + $0xf8] sm:$0xff] %v676_v29  ;;  %1902 = vmatprep.subr.mxu1 %v676_v29  ;;  %v1734_v23 = vld [vmem:[%s3663_s5 + $0x100] sm:$0xff]  ;;  %v1781_v28 = vld [vmem:[%s3663_s5 + $0x278] sm:$0xff]  ;;  %v1796_v29 = vld [vmem:[%s3663_s5 + $0x2f0] sm:$0xff] }
 0x136   : > { %1903 = vmatpush3.msra.mxu1 %v2948_v1  ;;  %v1721_v1 = vld [vmem:[%s3663_s5 + $0x98] sm:$0xff] }
 0x137   : > { %707 = vst [vmem:[%s2865_s26 + $0xf0] sm:$0xff] %v675_v32  ;;  %1904 = vmatprep.subr.mxu1 %v675_v32  ;;  %v1780_v32 = vld [vmem:[%s3663_s5 + $0x270] sm:$0xff]  ;;  %s2535_s26 = sshll.u32 %s2595_s9, 4  ;;  %s2536_s26 = int_to_ptr.vmem [resolvable:$false] %s2535_s26 }
 0x138   : > { %1905 = vmatpush3.msra.mxu1 %v2951_v4  ;;  %v1720_v4 = vld [vmem:[%s3663_s5 + $0x90] sm:$0xff]  ;;  %s2537_s18 = scalar_lea.vmem %s2536_s26, 8192  ;;  %p2538_p0 = scmp.lt.s32.totalorder %s3607_s22, %s2536_s26 }
 0x139   : > { %1906 = vmatprep.subr.mxu1 %v674_v13  ;;  %v1736_v13 = vld [vmem:[%s3663_s5 + $0x110] sm:$0xff]  ;;  %p2539_p1 = scmp.lt.s32.totalorder %s2537_s18, %s2531_s17 }
 0x13a   : > { %1907 = vmatpush3.msra.mxu1 %v2935_v55  ;;  %v1723_v55 = vld [vmem:[%s3663_s5 + $0xa8] sm:$0xff] }
 0x13b   : > { %1908 = vmatprep.subr.mxu1 %v673_v21  ;;  %p2540_p2 = por %p2539_p1, %p2538_p0 }
 0x13c   : > { %1909 = vmatpush3.msra.mxu1 %v2941_v59  ;;  %v1722_v59 = vld [vmem:[%s3663_s5 + $0xa0] sm:$0xff] }
 0x13d   : > { %1910 = vmatprep.subr.mxu1 %v672_v0  ;;  %v1740_v0 = vld [vmem:[%s3663_s5 + $0x130] sm:$0xff]  ;;  %p2541_p3 = pnand %p2540_p2, %p2534_p13 }
 0x13e   : > { %1911 = vmatpush3.msra.mxu1 %v2923_v46  ;;  %v1725_v46 = vld [vmem:[%s3663_s5 + $0xb8] sm:$0xff] }
 0x13f   : > { %1912 = vmatprep.subr.mxu1 %v671_v7  ;;  %v1738_v7 = vld [vmem:[%s3663_s5 + $0x120] sm:$0xff] }
 0x140   : > { %1913 = vmatpush3.msra.mxu1 %v2929_v51  ;;  %v1724_v51 = vld [vmem:[%s3663_s5 + $0xb0] sm:$0xff] }
 0x141   : > { %1914 = vmatprep.subr.mxu1 %v670_v53  ;;  %v1744_v53 = vld [vmem:[%s3663_s5 + $0x150] sm:$0xff] }
 0x142   : > { %1915 = vmatpush3.msra.mxu1 %v2911_v38  ;;  %v1727_v38 = vld [vmem:[%s3663_s5 + $0xc8] sm:$0xff] }
 0x143   : > { %1916 = vmatprep.subr.mxu1 %v669_v58  ;;  %v1742_v58 = vld [vmem:[%s3663_s5 + $0x140] sm:$0xff] }
 0x144   : > { %1917 = vmatpush3.msra.mxu1 %v2917_v42  ;;  %v1726_v42 = vld [vmem:[%s3663_s5 + $0xc0] sm:$0xff] }
 0x145   : > { %1918 = vmatprep.subr.mxu1 %v668_v41  ;;  %v1748_v41 = vld [vmem:[%s3663_s5 + $0x170] sm:$0xff] }
 0x146   : > { %1919 = vmatpush3.msra.mxu1 %v2899_v30  ;;  %v1729_v30 = vld [vmem:[%s3663_s5 + $0xd8] sm:$0xff] }
 0x147   : > { %1920 = vmatprep.subr.mxu1 %v667_v47  ;;  %v1746_v47 = vld [vmem:[%s3663_s5 + $0x160] sm:$0xff] }
 0x148   : > { %1921 = vmatpush3.msra.mxu1 %v2905_v34  ;;  %v1728_v34 = vld [vmem:[%s3663_s5 + $0xd0] sm:$0xff] }
 0x149   : > { %1922 = vmatprep.subr.mxu1 %v2983_v31 }
 0x14a   : > { %1923 = vmatpush3.msra.mxu1 %v2887_v22  ;;  %v712_v22 = vld [vmem:[%s3660_s2 + $0x18] sm:$0x1] }
 0x14b   : > { %1924 = vmatprep.subr.mxu1 %v2989_v36  ;;  %v1765_v36 = vld [vmem:[%s3663_s5 + $0x1f8] sm:$0xff] }
 0x14c   : > { %1925 = vmatpush3.msra.mxu1 %v2893_v26  ;;  %v1731_v26 = vld [vmem:[%s3663_s5 + $0xe8] sm:$0xff] }
 0x14d   : > { %1926 = vmatprep.subr.mxu1 %v2971_v20  ;;  %v788_v20 = vld [vmem:[%s3663_s5] sm:$0xff] }
 0x14e   : > { %1927 = vmatpush3.msra.mxu1 %v2875_v14  ;;  %v1733_v14 = vld [vmem:[%s3663_s5 + $0xf8] sm:$0xff] }
 0x14f   : > { %1928 = vmatprep.subr.mxu1 %v2977_v25  ;;  %v1718_v25 = vld [vmem:[%s3663_s5 + $0x80] sm:$0xff] }
 0x150   : > { %1929 = vmatpush3.msra.mxu1 %v2881_v18  ;;  %v711_v18 = vld [vmem:[%s3660_s2 + $0x10] sm:$0x1] }
 0x151   : > { %1930 = vmatprep.subr.mxu1 %v2959_v9  ;;  %v789_v9 = vld [vmem:[%s3663_s5 + $0x8] sm:$0xff] }
 0x152   : > { %1931 = vmatpush3.msra.mxu1 %v2861_v6  ;;  %v1732_v6 = vld [vmem:[%s3663_s5 + $0xf0] sm:$0xff]  ;;  %2237 = vmatpush3.msra.mxu0 %v789_v9  ;;  %v1771_v9 = vld [vmem:[%s3663_s5 + $0x228] sm:$0xff] }
 0x153   : > { %1932 = vmatprep.subr.mxu1 %v2965_v15  ;;  %2238 = vmatprep.subr.mxu0 %v2593_v50  ;;  %v1719_v15 = vld [vmem:[%s3663_s5 + $0x88] sm:$0xff] }
 0x154   : > { %1933 = vmatpush3.msra.mxu1 %v2869_v10  ;;  %v1730_v10 = vld [vmem:[%s3663_s5 + $0xe0] sm:$0xff]  ;;  %2239 = vmatpush3.msra.mxu0 %v788_v20 }
 0x155   : > { %778 = vmatmul.mubr.f32.vlgmr.msra.gmra.mxu1 %v709_v63  ;;  %2173 = vmatprep.subr.mxu1 %v2593_v50  ;;  %v1795_v63 = vld [vmem:[%s3663_s5 + $0x2e8] sm:$0xff]  ;;  %v1770_v20 = vld [vmem:[%s3663_s5 + $0x220] sm:$0xff] }
 0x156   : > { %782 = vmatprep.mubr.f32.mxu1 %v712_v22  ;;  %2174 = vmatpush3.msra.mxu1 %v1733_v14  ;;  %v1779_v22 = vld [vmem:[%s3663_s5 + $0x268] sm:$0xff]  ;;  %v1794_v14 = vld [vmem:[%s3663_s5 + $0x2e0] sm:$0xff] }
 0x157   : > { %2175 = vmatprep.subr.mxu1 %v2593_v50  ;;  %2278 = vmatprep.subr.mxu0 %v2593_v50 }
 0x158   : > { %2176 = vmatpush3.msra.mxu1 %v1732_v6  ;;  %v1778_v6 = vld [vmem:[%s3663_s5 + $0x260] sm:$0xff] }
 0x159   : > { %783 = vmatmul.mubr.f32.gmra.mxu1 %v711_v18  ;;  %2177 = vmatprep.subr.mxu1 %v2593_v50  ;;  %v1793_v18 = vld [vmem:[%s3663_s5 + $0x2d8] sm:$0xff] }
 0x15a   : > { %2178 = vmatpush3.msra.mxu1 %v1731_v26  ;;  %2205 = vmatprep.mubr.msk.f32.mxu1 %vm2594_vm0, %v2593_v50  ;;  %v1777_v26 = vld [vmem:[%s3663_s5 + $0x258] sm:$0xff] }
 0x15b   : > { %2179 = vmatprep.subr.mxu1 %v2593_v50 }
 0x15c   : > { %2180 = vmatpush3.msra.mxu1 %v1730_v10  ;;  %v1792_v10 = vld [vmem:[%s3663_s5 + $0x2d0] sm:$0xff] }
 0x15d   : > { %2181 = vmatprep.subr.mxu1 %v2593_v50 }
 0x15e   : > { %2182 = vmatpush3.msra.mxu1 %v1729_v30  ;;  %v1776_v30 = vld [vmem:[%s3663_s5 + $0x250] sm:$0xff] }
 0x15f   : > { %2183 = vmatprep.subr.mxu1 %v2593_v50 }
 0x160   : > { %2184 = vmatpush3.msra.mxu1 %v1728_v34  ;;  %v1791_v34 = vld [vmem:[%s3663_s5 + $0x2c8] sm:$0xff] }
 0x161   : > { %2185 = vmatprep.subr.mxu1 %v2593_v50 }
 0x162   : > { %2186 = vmatpush3.msra.mxu1 %v1727_v38  ;;  %v1775_v38 = vld [vmem:[%s3663_s5 + $0x248] sm:$0xff] }
 0x163   : > { %2187 = vmatprep.subr.mxu1 %v2593_v50 }
 0x164   : > { %2188 = vmatpush3.msra.mxu1 %v1726_v42  ;;  %v1790_v42 = vld [vmem:[%s3663_s5 + $0x2c0] sm:$0xff] }
 0x165   : > { %2189 = vmatprep.subr.mxu1 %v2593_v50 }
 0x166   : > { %2190 = vmatpush3.msra.mxu1 %v1725_v46  ;;  %v1774_v46 = vld [vmem:[%s3663_s5 + $0x240] sm:$0xff] }
 0x167   : > { %2191 = vmatprep.subr.mxu1 %v2593_v50 }
 0x168   : > { %2192 = vmatpush3.msra.mxu1 %v1724_v51  ;;  %v1789_v51 = vld [vmem:[%s3663_s5 + $0x2b8] sm:$0xff] }
 0x169   : > { %2193 = vmatprep.subr.mxu1 %v2593_v50 }
 0x16a   : > { %2194 = vmatpush3.msra.mxu1 %v1723_v55  ;;  %v1773_v55 = vld [vmem:[%s3663_s5 + $0x238] sm:$0xff] }
 0x16b   : > { %2195 = vmatprep.subr.mxu1 %v2593_v50 }
 0x16c   : > { %2196 = vmatpush3.msra.mxu1 %v1722_v59  ;;  %v1788_v59 = vld [vmem:[%s3663_s5 + $0x2b0] sm:$0xff] }
 0x16d   : > { %2197 = vmatprep.subr.mxu1 %v2593_v50 }
 0x16e   : > { %2198 = vmatpush3.msra.mxu1 %v1721_v1  ;;  %v1772_v1 = vld [vmem:[%s3663_s5 + $0x230] sm:$0xff] }
 0x16f   : > { %2199 = vmatprep.subr.mxu1 %v2593_v50 }
 0x170   : > { %2200 = vmatpush3.msra.mxu1 %v1720_v4  ;;  %v1787_v4 = vld [vmem:[%s3663_s5 + $0x2a8] sm:$0xff] }
 0x171   : > { %2201 = vmatprep.subr.mxu1 %v2593_v50 }
 0x172   : > { %2202 = vmatpush3.msra.mxu1 %v1719_v15  ;;  %v1786_v15 = vld [vmem:[%s3663_s5 + $0x2a0] sm:$0xff] }
 0x173   : > { %2203 = vmatprep.subr.mxu1 %v2593_v50 }
 0x174   : > { %2204 = vmatpush3.msra.mxu1 %v1718_v25  ;;  %v1785_v25 = vld [vmem:[%s3663_s5 + $0x298] sm:$0xff] }
 0x175   : > { %2243 = vmatprep.subr.mxu1 %v2593_v50 }
 0x215   : > { %v1934_v31 = vpop.f32.mrf.mxu1 }
 0x217   : > { %v1935_v33 = vpop.f32.mrf.mxu1 }
 0x218   : > { %v3130_v35 = vadd.f32 %v1935_v33, %v1934_v31  ;;  %v1769_v31 = vld [vmem:[%s3663_s5 + $0x218] sm:$0xff]  ;;  %v1784_v33 = vld [vmem:[%s3663_s5 + $0x290] sm:$0xff] }
 0x21a   : > { %2241 = vmatmul.mubr.f32.vlgmr.msra.gmra.mxu0 %v3130_v35  ;;  %v822_v37 = vrot.slane %v3130_v35, 1  ;;  %v1071_v21 = vrot.slane %v3130_v35, 3  ;;  %v981_v27 = vrot.slane %v3130_v35, 2 }
 0x21b   : > { %2279 = vmatpush3.msra.mxu0 %v1765_v36  ;;  %2310 = vmatprep.mubr.msk.f32.mxu0 %vm2594_vm0, %v2593_v50  ;;  %v1768_v36 = vld [vmem:[%s3663_s5 + $0x210] sm:$0xff] }
 0x21c   : > { %2280 = vmatprep.subr.mxu0 %v2593_v50  ;;  %2206 = vmatmul.mubr.f32.vlgmr.msra.gmra.mxu1 %v822_v37  ;;  %v1783_v37 = vld [vmem:[%s3663_s5 + $0x288] sm:$0xff] }
 0x21d   : > { %2244 = vmatpush3.msra.mxu1 %v1749_v39  ;;  %2281 = vmatpush3.msra.mxu0 %v1764_v40  ;;  %v1767_v39 = vld [vmem:[%s3663_s5 + $0x208] sm:$0xff]  ;;  %v1782_v40 = vld [vmem:[%s3663_s5 + $0x280] sm:$0xff] }
 0x21e   : > { %2245 = vmatprep.subr.mxu1 %v2593_v50  ;;  %2282 = vmatprep.subr.mxu0 %v2593_v50 }
 0x21f   : > { %2246 = vmatpush3.msra.mxu1 %v1748_v41  ;;  %2283 = vmatpush3.msra.mxu0 %v1763_v43  ;;  %v1251_v41 = vrot.slane %v3130_v35, 5  ;;  %v1766_v43 = vld [vmem:[%s3663_s5 + $0x200] sm:$0xff] }
 0x220   : > { %2247 = vmatprep.subr.mxu1 %v2593_v50  ;;  %2284 = vmatprep.subr.mxu0 %v2593_v50 }
 0x221   : > { %2248 = vmatpush3.msra.mxu1 %v1747_v44  ;;  %2285 = vmatpush3.msra.mxu0 %v1762_v45  ;;  %v1829_v44 = vld [vmem:[%s3663_s5 + $0x3f8] sm:$0xff]  ;;  %v1161_v45 = vrot.slane %v3130_v35, 4 }
 0x222   : > { %2249 = vmatprep.subr.mxu1 %v2593_v50  ;;  %2286 = vmatprep.subr.mxu0 %v2593_v50 }
 0x223   : > { %2250 = vmatpush3.msra.mxu1 %v1746_v47  ;;  %2287 = vmatpush3.msra.mxu0 %v1761_v48  ;;  %v1813_v47 = vld [vmem:[%s3663_s5 + $0x378] sm:$0xff]  ;;  %v1828_v48 = vld [vmem:[%s3663_s5 + $0x3f0] sm:$0xff] }
 0x224   : > { %2251 = vmatprep.subr.mxu1 %v2593_v50  ;;  %2288 = vmatprep.subr.mxu0 %v2593_v50 }
 0x225   : > { %2252 = vmatpush3.msra.mxu1 %v1745_v49  ;;  %2289 = vmatpush3.msra.mxu0 %v1760_v52  ;;  %v1812_v49 = vld [vmem:[%s3663_s5 + $0x370] sm:$0xff]  ;;  %v1827_v52 = vld [vmem:[%s3663_s5 + $0x3e8] sm:$0xff] }
 0x226   : > { %2253 = vmatprep.subr.mxu1 %v2593_v50  ;;  %2290 = vmatprep.subr.mxu0 %v2593_v50 }
 0x227   : > { %2254 = vmatpush3.msra.mxu1 %v1744_v53  ;;  %2291 = vmatpush3.msra.mxu0 %v1759_v54  ;;  %v1811_v53 = vld [vmem:[%s3663_s5 + $0x368] sm:$0xff]  ;;  %v1826_v54 = vld [vmem:[%s3663_s5 + $0x3e0] sm:$0xff] }
 0x228   : > { %2255 = vmatprep.subr.mxu1 %v2593_v50  ;;  %2292 = vmatprep.subr.mxu0 %v2593_v50 }
 0x229   : > { %2256 = vmatpush3.msra.mxu1 %v1743_v56  ;;  %2293 = vmatpush3.msra.mxu0 %v1758_v57  ;;  %v1810_v56 = vld [vmem:[%s3663_s5 + $0x360] sm:$0xff]  ;;  %v1825_v57 = vld [vmem:[%s3663_s5 + $0x3d8] sm:$0xff] }
 0x22a   : > { %2257 = vmatprep.subr.mxu1 %v2593_v50  ;;  %2294 = vmatprep.subr.mxu0 %v2593_v50 }
 0x22b   : > { %2258 = vmatpush3.msra.mxu1 %v1742_v58  ;;  %2295 = vmatpush3.msra.mxu0 %v1757_v60  ;;  %v1809_v58 = vld [vmem:[%s3663_s5 + $0x358] sm:$0xff]  ;;  %v1824_v60 = vld [vmem:[%s3663_s5 + $0x3d0] sm:$0xff] }
 0x22c   : > { %2259 = vmatprep.subr.mxu1 %v2593_v50  ;;  %2296 = vmatprep.subr.mxu0 %v2593_v50 }
 0x22d   : > { %2260 = vmatpush3.msra.mxu1 %v1741_v61  ;;  %2297 = vmatpush3.msra.mxu0 %v1756_v62  ;;  %v1808_v61 = vld [vmem:[%s3663_s5 + $0x350] sm:$0xff]  ;;  %v1823_v62 = vld [vmem:[%s3663_s5 + $0x3c8] sm:$0xff] }
 0x22e   : > { %2261 = vmatprep.subr.mxu1 %v2593_v50  ;;  %2298 = vmatprep.subr.mxu0 %v2593_v50 }
 0x22f   : > { %2262 = vmatpush3.msra.mxu1 %v1740_v0  ;;  %2299 = vmatpush3.msra.mxu0 %v1755_v2  ;;  %v1807_v0 = vld [vmem:[%s3663_s5 + $0x348] sm:$0xff]  ;;  %v1822_v2 = vld [vmem:[%s3663_s5 + $0x3c0] sm:$0xff] }
 0x230   : > { %2263 = vmatprep.subr.mxu1 %v2593_v50  ;;  %2300 = vmatprep.subr.mxu0 %v2593_v50 }
 0x231   : > { %2264 = vmatpush3.msra.mxu1 %v1739_v3  ;;  %2301 = vmatpush3.msra.mxu0 %v1754_v5  ;;  %v1806_v3 = vld [vmem:[%s3663_s5 + $0x340] sm:$0xff]  ;;  %v1821_v5 = vld [vmem:[%s3663_s5 + $0x3b8] sm:$0xff] }
 0x232   : > { %2265 = vmatprep.subr.mxu1 %v2593_v50  ;;  %2302 = vmatprep.subr.mxu0 %v2593_v50 }
 0x233   : > { %2266 = vmatpush3.msra.mxu1 %v1738_v7  ;;  %2303 = vmatpush3.msra.mxu0 %v1753_v8  ;;  %v1805_v7 = vld [vmem:[%s3663_s5 + $0x338] sm:$0xff]  ;;  %v1820_v8 = vld [vmem:[%s3663_s5 + $0x3b0] sm:$0xff] }
 0x234   : > { %2267 = vmatprep.subr.mxu1 %v2593_v50  ;;  %2304 = vmatprep.subr.mxu0 %v2593_v50 }
 0x235   : > { %2268 = vmatpush3.msra.mxu1 %v1737_v11  ;;  %2305 = vmatpush3.msra.mxu0 %v1752_v12  ;;  %v1804_v11 = vld [vmem:[%s3663_s5 + $0x330] sm:$0xff]  ;;  %v1819_v12 = vld [vmem:[%s3663_s5 + $0x3a8] sm:$0xff] }
 0x236   : > { %2269 = vmatprep.subr.mxu1 %v2593_v50  ;;  %2306 = vmatprep.subr.mxu0 %v2593_v50 }
 0x237   : > { %2270 = vmatpush3.msra.mxu1 %v1736_v13  ;;  %2307 = vmatpush3.msra.mxu0 %v1751_v16  ;;  %v1803_v13 = vld [vmem:[%s3663_s5 + $0x328] sm:$0xff]  ;;  %v1818_v16 = vld [vmem:[%s3663_s5 + $0x3a0] sm:$0xff] }
 0x238   : > { %2271 = vmatprep.subr.mxu1 %v2593_v50  ;;  %2308 = vmatprep.subr.mxu0 %v2593_v50 }
 0x239   : > { %2272 = vmatpush3.msra.mxu1 %v1735_v17  ;;  %2309 = vmatpush3.msra.mxu0 %v1750_v19  ;;  %v1802_v17 = vld [vmem:[%s3663_s5 + $0x320] sm:$0xff]  ;;  %v1817_v19 = vld [vmem:[%s3663_s5 + $0x398] sm:$0xff] }
 0x23a   : > { %2273 = vmatprep.subr.mxu1 %v2593_v50  ;;  %2311 = vmatmul.mubr.f32.vlgmr.msra.gmra.mxu0 %v1071_v21  ;;  %v1801_v21 = vld [vmem:[%s3663_s5 + $0x318] sm:$0xff] }
 0x23b   : > { %2348 = vmatprep.subr.mxu0 %v2593_v50  ;;  %2274 = vmatpush3.msra.mxu1 %v1734_v23  ;;  %v1816_v23 = vld [vmem:[%s3663_s5 + $0x390] sm:$0xff] }
 0x23c   : > { %2275 = vmatprep.mubr.msk.f32.mxu1 %vm2594_vm0, %v2593_v50  ;;  %2349 = vmatpush3.msra.mxu0 %v1797_v24  ;;  %v1800_v24 = vld [vmem:[%s3663_s5 + $0x310] sm:$0xff] }
 0x23d   : > { %2276 = vmatmul.mubr.f32.vlgmr.msra.gmra.mxu1 %v981_v27  ;;  %2313 = vmatprep.subr.mxu1 %v2593_v50  ;;  %v1815_v27 = vld [vmem:[%s3663_s5 + $0x388] sm:$0xff] }
 0x23e   : > { %2350 = vmatprep.subr.mxu0 %v2593_v50  ;;  %2314 = vmatpush3.msra.mxu1 %v1781_v28  ;;  %v1799_v28 = vld [vmem:[%s3663_s5 + $0x308] sm:$0xff] }
 0x23f   : > { %2351 = vmatpush3.msra.mxu0 %v1796_v29  ;;  %2315 = vmatprep.subr.mxu1 %v2593_v50  ;;  %v1814_v29 = vld [vmem:[%s3663_s5 + $0x380] sm:$0xff] }
 0x240   : > { %2352 = vmatprep.subr.mxu0 %v2593_v50  ;;  %2316 = vmatpush3.msra.mxu1 %v1780_v32  ;;  %v1431_v32 = vrot.slane %v3130_v35, 7 }
 0x241   : > { %2353 = vmatpush3.msra.mxu0 %v1795_v63  ;;  %2317 = vmatprep.subr.mxu1 %v2593_v50  ;;  %v1798_v63 = vld [vmem:[%s3663_s5 + $0x300] sm:$0xff] }
 0x242   : > { %2354 = vmatprep.subr.mxu0 %v2593_v50  ;;  %2318 = vmatpush3.msra.mxu1 %v1779_v22  ;;  %v1341_v22 = vrot.slane %v3130_v35, 6  ;;  %v1843_v35 = vld [vmem:[%s3663_s5 + $0x468] sm:$0xff] }
 0x243   : > { %2355 = vmatpush3.msra.mxu0 %v1794_v14  ;;  %2319 = vmatprep.subr.mxu1 %v2593_v50  ;;  %v1845_v14 = vld [vmem:[%s3663_s5 + $0x478] sm:$0xff] }
 0x244   : > { %2356 = vmatprep.subr.mxu0 %v2593_v50  ;;  %2320 = vmatpush3.msra.mxu1 %v1778_v6  ;;  %v1844_v6 = vld [vmem:[%s3663_s5 + $0x470] sm:$0xff] }
 0x245   : > { %2357 = vmatpush3.msra.mxu0 %v1793_v18  ;;  %2321 = vmatprep.subr.mxu1 %v2593_v50  ;;  %v1842_v18 = vld [vmem:[%s3663_s5 + $0x460] sm:$0xff] }
 0x246   : > { %2358 = vmatprep.subr.mxu0 %v2593_v50  ;;  %2322 = vmatpush3.msra.mxu1 %v1777_v26  ;;  %v1841_v26 = vld [vmem:[%s3663_s5 + $0x458] sm:$0xff] }
 0x247   : > { %2359 = vmatpush3.msra.mxu0 %v1792_v10  ;;  %2323 = vmatprep.subr.mxu1 %v2593_v50  ;;  %v1840_v10 = vld [vmem:[%s3663_s5 + $0x450] sm:$0xff] }
 0x248   : > { %2360 = vmatprep.subr.mxu0 %v2593_v50  ;;  %2324 = vmatpush3.msra.mxu1 %v1776_v30  ;;  %v1839_v30 = vld [vmem:[%s3663_s5 + $0x448] sm:$0xff] }
 0x249   : > { %2361 = vmatpush3.msra.mxu0 %v1791_v34  ;;  %2325 = vmatprep.subr.mxu1 %v2593_v50  ;;  %v1838_v34 = vld [vmem:[%s3663_s5 + $0x440] sm:$0xff] }
 0x24a   : > { %2362 = vmatprep.subr.mxu0 %v2593_v50  ;;  %2326 = vmatpush3.msra.mxu1 %v1775_v38  ;;  %v1837_v38 = vld [vmem:[%s3663_s5 + $0x438] sm:$0xff] }
 0x24b   : > { %2363 = vmatpush3.msra.mxu0 %v1790_v42  ;;  %2327 = vmatprep.subr.mxu1 %v2593_v50  ;;  %v1836_v42 = vld [vmem:[%s3663_s5 + $0x430] sm:$0xff] }
 0x24c   : > { %2364 = vmatprep.subr.mxu0 %v2593_v50  ;;  %2328 = vmatpush3.msra.mxu1 %v1774_v46  ;;  %v1835_v46 = vld [vmem:[%s3663_s5 + $0x428] sm:$0xff] }
 0x24d   : > { %2365 = vmatpush3.msra.mxu0 %v1789_v51  ;;  %2329 = vmatprep.subr.mxu1 %v2593_v50  ;;  %v1834_v51 = vld [vmem:[%s3663_s5 + $0x420] sm:$0xff] }
 0x24e   : > { %2366 = vmatprep.subr.mxu0 %v2593_v50  ;;  %2330 = vmatpush3.msra.mxu1 %v1773_v55  ;;  %v1833_v55 = vld [vmem:[%s3663_s5 + $0x418] sm:$0xff] }
 0x24f   : > { %2367 = vmatpush3.msra.mxu0 %v1788_v59  ;;  %2331 = vmatprep.subr.mxu1 %v2593_v50  ;;  %v1937_v59 = vpop.f32.mrf.mxu1 }
 0x250   : > { %2368 = vmatprep.subr.mxu0 %v2593_v50  ;;  %2332 = vmatpush3.msra.mxu1 %v1772_v1  ;;  %v1832_v1 = vld [vmem:[%s3663_s5 + $0x410] sm:$0xff] }
 0x251   : > { %2369 = vmatpush3.msra.mxu0 %v1787_v4  ;;  %2333 = vmatprep.subr.mxu1 %v2593_v50  ;;  %v1831_v4 = vld [vmem:[%s3663_s5 + $0x408] sm:$0xff] }
 0x252   : > { %2370 = vmatprep.subr.mxu0 %v2593_v50  ;;  %2334 = vmatpush3.msra.mxu1 %v1771_v9  ;;  %v1938_v9 = vpop.f32.mrf.mxu1 }
 0x253   : > { %2371 = vmatpush3.msra.mxu0 %v1786_v15  ;;  %2335 = vmatprep.subr.mxu1 %v2593_v50  ;;  %v1830_v15 = vld [vmem:[%s3663_s5 + $0x400] sm:$0xff] }
 0x254   : > { %2372 = vmatprep.subr.mxu0 %v2593_v50  ;;  %2336 = vmatpush3.msra.mxu1 %v1770_v20  ;;  %v1939_v20 = vadd.f32 %v1938_v9, %v1937_v59 }
 0x255   : > { %2373 = vmatpush3.msra.mxu0 %v1785_v25  ;;  %2337 = vmatprep.subr.mxu1 %v2593_v50 }
 0x256   : > { %2374 = vmatprep.subr.mxu0 %v2593_v50  ;;  %2338 = vmatpush3.msra.mxu1 %v1769_v31 }
 0x257   : > { %2375 = vmatpush3.msra.mxu0 %v1784_v33  ;;  %2339 = vmatprep.subr.mxu1 %v2593_v50 }
 0x258   : > { %2376 = vmatprep.subr.mxu0 %v2593_v50  ;;  %2340 = vmatpush3.msra.mxu1 %v1768_v36 }
 0x259   : > { %2377 = vmatpush3.msra.mxu0 %v1783_v37  ;;  %2341 = vmatprep.subr.mxu1 %v2593_v50 }
 0x25a   : > { %2378 = vmatprep.subr.mxu0 %v2593_v50  ;;  %2342 = vmatpush3.msra.mxu1 %v1767_v39 }
 0x25b   : > { %2379 = vmatpush3.msra.mxu0 %v1782_v40  ;;  %2380 = vmatprep.mubr.msk.f32.mxu0 %vm2594_vm0, %v2593_v50 }
 0x25c   : > { %2343 = vmatprep.subr.mxu1 %v2593_v50  ;;  %2381 = vmatmul.mubr.f32.vlgmr.msra.gmra.mxu0 %v1251_v41 }
 0x25d   : > { %2418 = vmatprep.subr.mxu0 %v2593_v50  ;;  %2344 = vmatpush3.msra.mxu1 %v1766_v43 }
 0x25e   : > { %2345 = vmatprep.mubr.msk.f32.mxu1 %vm2594_vm0, %v2593_v50  ;;  %2419 = vmatpush3.msra.mxu0 %v1829_v44 }
 0x25f   : > { %2346 = vmatmul.mubr.f32.vlgmr.msra.gmra.mxu1 %v1161_v45  ;;  %2383 = vmatprep.subr.mxu1 %v2593_v50 }
 0x260   : > { %2420 = vmatprep.subr.mxu0 %v2593_v50  ;;  %2384 = vmatpush3.msra.mxu1 %v1813_v47 }
 0x261   : > { %2421 = vmatpush3.msra.mxu0 %v1828_v48  ;;  %2385 = vmatprep.subr.mxu1 %v2593_v50 }
 0x262   : > { %2422 = vmatprep.subr.mxu0 %v2593_v50  ;;  %2386 = vmatpush3.msra.mxu1 %v1812_v49 }
 0x263   : > { %2423 = vmatpush3.msra.mxu0 %v1827_v52  ;;  %2387 = vmatprep.subr.mxu1 %v2593_v50 }
 0x264   : > { %2424 = vmatprep.subr.mxu0 %v2593_v50  ;;  %2388 = vmatpush3.msra.mxu1 %v1811_v53 }
 0x265   : > { %2425 = vmatpush3.msra.mxu0 %v1826_v54  ;;  %2389 = vmatprep.subr.mxu1 %v2593_v50 }
 0x266   : > { %2426 = vmatprep.subr.mxu0 %v2593_v50  ;;  %2390 = vmatpush3.msra.mxu1 %v1810_v56 }
 0x267   : > { %2427 = vmatpush3.msra.mxu0 %v1825_v57  ;;  %2391 = vmatprep.subr.mxu1 %v2593_v50 }
 0x268   : > { %2428 = vmatprep.subr.mxu0 %v2593_v50  ;;  %2392 = vmatpush3.msra.mxu1 %v1809_v58 }
 0x269   : > { %2429 = vmatpush3.msra.mxu0 %v1824_v60  ;;  %2393 = vmatprep.subr.mxu1 %v2593_v50 }
 0x26a   : > { %2430 = vmatprep.subr.mxu0 %v2593_v50  ;;  %2394 = vmatpush3.msra.mxu1 %v1808_v61 }
 0x26b   : > { %2431 = vmatpush3.msra.mxu0 %v1823_v62  ;;  %2395 = vmatprep.subr.mxu1 %v2593_v50 }
 0x26c   : > { %2432 = vmatprep.subr.mxu0 %v2593_v50  ;;  %2396 = vmatpush3.msra.mxu1 %v1807_v0 }
 0x26d   : > { %2433 = vmatpush3.msra.mxu0 %v1822_v2  ;;  %2397 = vmatprep.subr.mxu1 %v2593_v50 }
 0x26e   : > { %2434 = vmatprep.subr.mxu0 %v2593_v50  ;;  %2398 = vmatpush3.msra.mxu1 %v1806_v3 }
 0x26f   : > { %2435 = vmatpush3.msra.mxu0 %v1821_v5  ;;  %2399 = vmatprep.subr.mxu1 %v2593_v50 }
 0x270   : > { %2436 = vmatprep.subr.mxu0 %v2593_v50  ;;  %2400 = vmatpush3.msra.mxu1 %v1805_v7 }
 0x271   : > { %2437 = vmatpush3.msra.mxu0 %v1820_v8  ;;  %2401 = vmatprep.subr.mxu1 %v2593_v50 }
 0x272   : > { %2438 = vmatprep.subr.mxu0 %v2593_v50  ;;  %2402 = vmatpush3.msra.mxu1 %v1804_v11 }
 0x273   : > { %2439 = vmatpush3.msra.mxu0 %v1819_v12  ;;  %2403 = vmatprep.subr.mxu1 %v2593_v50 }
 0x274   : > { %2440 = vmatprep.subr.mxu0 %v2593_v50  ;;  %2404 = vmatpush3.msra.mxu1 %v1803_v13 }
 0x275   : > { %2441 = vmatpush3.msra.mxu0 %v1818_v16  ;;  %2405 = vmatprep.subr.mxu1 %v2593_v50 }
 0x276   : > { %2442 = vmatprep.subr.mxu0 %v2593_v50  ;;  %2406 = vmatpush3.msra.mxu1 %v1802_v17 }
 0x277   : > { %2443 = vmatpush3.msra.mxu0 %v1817_v19  ;;  %2407 = vmatprep.subr.mxu1 %v2593_v50 }
 0x278   : > { %2444 = vmatprep.subr.mxu0 %v2593_v50  ;;  %2408 = vmatpush3.msra.mxu1 %v1801_v21 }
 0x279   : > { %2445 = vmatpush3.msra.mxu0 %v1816_v23  ;;  %2409 = vmatprep.subr.mxu1 %v2593_v50 }
 0x27a   : > { %2446 = vmatprep.subr.mxu0 %v2593_v50  ;;  %2410 = vmatpush3.msra.mxu1 %v1800_v24 }
 0x27b   : > { %2447 = vmatpush3.msra.mxu0 %v1815_v27  ;;  %2411 = vmatprep.subr.mxu1 %v2593_v50 }
 0x27c   : > { %2448 = vmatprep.subr.mxu0 %v2593_v50  ;;  %2412 = vmatpush3.msra.mxu1 %v1799_v28 }
 0x27d   : > { %2449 = vmatpush3.msra.mxu0 %v1814_v29  ;;  %2450 = vmatprep.mubr.msk.f32.mxu0 %vm2594_vm0, %v2593_v50 }
 0x27e   : > { %2413 = vmatprep.subr.mxu1 %v2593_v50  ;;  %2451 = vmatmul.mubr.f32.vlgmr.msra.gmra.mxu0 %v1431_v32 }
 0x27f   : > { %2414 = vmatpush3.msra.mxu1 %v1798_v63  ;;  %2415 = vmatprep.mubr.msk.f32.mxu1 %vm2594_vm0, %v2593_v50 }
 0x280   : > { %2416 = vmatmul.mubr.f32.vlgmr.msra.gmra.mxu1 %v1341_v22  ;;  %2453 = vmatprep.subr.mxu1 %v2593_v50 }
 0x281   : > { %2454 = vmatpush3.msra.mxu1 %v1845_v14  ;;  %2485 = vmatprep.mubr.msk.f32.mxu1 %vm2594_vm0, %v2593_v50 }
 0x282   : > { %2455 = vmatprep.subr.mxu1 %v2593_v50 }
 0x283   : > { %2456 = vmatpush3.msra.mxu1 %v1844_v6 }
 0x284   : > { %2457 = vmatprep.subr.mxu1 %v2593_v50 }
 0x285   : > { %2458 = vmatpush3.msra.mxu1 %v1843_v35 }
 0x286   : > { %2459 = vmatprep.subr.mxu1 %v2593_v50 }
 0x287   : > { %2460 = vmatpush3.msra.mxu1 %v1842_v18 }
 0x288   : > { %2461 = vmatprep.subr.mxu1 %v2593_v50 }
 0x289   : > { %2462 = vmatpush3.msra.mxu1 %v1841_v26 }
 0x28a   : > { %2463 = vmatprep.subr.mxu1 %v2593_v50 }
 0x28b   : > { %2464 = vmatpush3.msra.mxu1 %v1840_v10 }
 0x28c   : > { %2465 = vmatprep.subr.mxu1 %v2593_v50 }
 0x28d   : > { %2466 = vmatpush3.msra.mxu1 %v1839_v30 }
 0x28e   : > { %2467 = vmatprep.subr.mxu1 %v2593_v50 }
 0x28f   : > { %2468 = vmatpush3.msra.mxu1 %v1838_v34 }
 0x290   : > { %2469 = vmatprep.subr.mxu1 %v2593_v50 }
 0x291   : > { %2470 = vmatpush3.msra.mxu1 %v1837_v38 }
 0x292   : > { %2471 = vmatprep.subr.mxu1 %v2593_v50 }
 0x293   : > { %2472 = vmatpush3.msra.mxu1 %v1836_v42 }
 0x294   : > { %2473 = vmatprep.subr.mxu1 %v2593_v50 }
 0x295   : > { %2474 = vmatpush3.msra.mxu1 %v1835_v46 }
 0x296   : > { %2475 = vmatprep.subr.mxu1 %v2593_v50 }
 0x297   : > { %2476 = vmatpush3.msra.mxu1 %v1834_v51 }
 0x298   : > { %2477 = vmatprep.subr.mxu1 %v2593_v50 }
 0x299   : > { %2478 = vmatpush3.msra.mxu1 %v1833_v55 }
 0x29a   : > { %2479 = vmatprep.subr.mxu1 %v2593_v50 }
 0x29b   : > { %2480 = vmatpush3.msra.mxu1 %v1832_v1 }
 0x29c   : > { %2481 = vmatprep.subr.mxu1 %v2593_v50 }
 0x29d   : > { %2482 = vmatpush3.msra.mxu1 %v1831_v4 }
 0x29e   : > { %2483 = vmatprep.subr.mxu1 %v2593_v50 }
 0x29f   : > { %2484 = vmatpush3.msra.mxu1 %v1830_v15 }
 0x2a0   : > { %2486 = vmatmul.mubr.f32.vlgmr.msra.gmra.mxu1 %v1939_v20 }
 0x2da   : > { %v960_v25 = vpop.f32.mrf.mxu0 }
 0x2dc   : > { %v890_v31 = vpop.f32.mrf.mxu1  ;;  %v2242_v33 = vpop.f32.mrf.mxu0 }
 0x2dd   : > { %v961_v36 = vadd.f32 %v960_v25, %v890_v31 }
 0x2de   : > { %v2207_v37 = vpop.f32.mrf.mxu1 }
 0x2df   : > { %2544 = shalt.err (!%p2541_p3)
}
 0x2e0   : > { %s2545_s10 = scalar_lea.hbm %s3605_s12, 4096  ;;  %s2549_s21 = scalar_lea.hbm %s3665_s7, 8192 }
 0x2e1   : > { %p2546_p4 = scmp.ne.s32.totalorder %s3605_s12, %s2545_s10  ;;  %p2550_p9 = scmp.lt.s32.totalorder %s3605_s12, %s3665_s7 }
 0x2e2   : > { %p2551_p10 = scmp.lt.s32.totalorder %s2549_s21, %s2545_s10 }
 0x2e3   : > { %p2547_p7 = pnand %p2546_p4, %p2681_p5 }
 0x2e4   : > { %p2552_p11 = por %p2551_p10, %p2550_p9 }
 0x2e5   : > { %p2548_p8 = pneg %p2547_p7 }
 0x2e7   : > { %p2553_p12 = pnand %p2552_p11, %p2548_p8 }
 0x2e9   : > { %2556 = shalt.err (!%p2553_p12)
}
 0x2ea   : > { %s2596_s17 = smov 128   ;;  %s2597_s9 = smov 8   ;;  %v1592_v0 = vld [vmem:[%s3664_s6] sm:$0x1] }
 0x2eb   : > { %2488 = dma.vmem_to_hbm [thread:$0]  (%p2681_p5), %s3607_s22, 4096, %s3605_s12, %s3611_s13, %s2596_s17, %s2596_s17, %s2597_s9  }
 0x2ec   : > { %s332_s26 = scalar_lea.vmem %s3666_s8, %s2702_s23 }
 0x2fa   : > { %v1139_v50 = vpop.f32.mrf.mxu0 }
 0x2fc   : > { %v2312_v39 = vpop.f32.mrf.mxu0 }
 0x2fd   : > { %v1049_v40 = vpop.f32.mrf.mxu1 }
 0x2fe   : > { %v1053_v41 = vadd.f32 %v1049_v40, %v961_v36 }
 0x2ff   : > { %v2277_v43 = vpop.f32.mrf.mxu1 }
 0x300   : > { %v1143_v44 = vadd.f32 %v1139_v50, %v1053_v41 }
 0x31c   : > { %v1319_v45 = vpop.f32.mrf.mxu0 }
 0x31e   : > { %v2382_v47 = vpop.f32.mrf.mxu0 }
 0x31f   : > { %v1229_v48 = vpop.f32.mrf.mxu1 }
 0x320   : > { %v1233_v57 = vadd.f32 %v1229_v48, %v1143_v44 }
 0x321   : > { %v2347_v49 = vpop.f32.mrf.mxu1 }
 0x322   : > { %v1323_v58 = vadd.f32 %v1319_v45, %v1233_v57 }
 0x33e   : > { %v1499_v52 = vpop.f32.mrf.mxu0 }
 0x340   : > { %v1409_v53 = vpop.f32.mrf.mxu1  ;;  %v2452_v54 = vpop.f32.mrf.mxu0 }
 0x341   : > { %v1413_v60 = vadd.f32 %v1409_v53, %v1323_v58 }
 0x342   : > { %v2417_v56 = vpop.f32.mrf.mxu1 }
 0x343   : > { %v1503_v61 = vadd.f32 %v1499_v52, %v1413_v60 }
 0x360   : > { %v1587_v62 = vpop.f32.mrf.mxu1 }
 0x361   : > { %v1591_v2 = vadd.f32 %v1587_v62, %v1503_v61 }
 0x362   : > { %v2487_v3 = vpop.f32.mrf.mxu1 }
 0x363   : > { %v1593_v5 = vadd.f32 %v1592_v0, %v1591_v2 }
 0x365   : > { %1594 = vst [vmem:[%s332_s26] sm:$0x1] %v1593_v5 }
 0x366 PF: > { %p2494_p5 = scmp.ge.s32.totalorder %s2591_s30, 2  ;;  %s1630_s18 = sand.u32 1, %s2579_s27  }
 0x367   : > { %s1631_s10 = scalar_lea.sflag [#allocation3], %s1630_s18 }
 0x368   : > { %p2491_p13 = pnand %p2494_p5, %p2685_p6 }
 0x36a   : > { %p2492_p0 = pneg %p2491_p13 }
 0x36c   : > { %2574 = dma.done.wait (%p2492_p0), %s1631_s10, 4096  }
 0x36d   : > { %2576 = vsyncadd (%p2492_p0), %s1631_s10, 4294963200  ;;  %p19_p1 = scmp.ge.s32.totalorder %s2668_s11, 4   ;;  %s3669_s27 = smov %s2583_s28 }
 0x36e   : > { %s3670_s28 = smov %s2587_s29  ;;  %s3671_s29 = smov %s2679_s14 }
 0x36f   : > { %s3672_s30 = smov %s2668_s11  ;;  %21 = sbr.rel (!%p19_p1) target bundleno = 3 (0x3), region = 106 }
 0x374   :  { %1642 = vsyncpa [#allocation3], 1 }
 0x375   :  { %1644 = vsyncpa [#allocation3 + $0x1], 1 }

</bundles_post_ra>
